<compile_context>
chip_gen: v7x
topology: tpu7x:2x2x1
jax: 0.10.0
libtpu: 0.0.40
codegen_flags: <defaults>
</compile_context>

<pallas_src>
import functools

import jax
import jax.numpy as jnp
import numpy as np
from jax import lax
from jax.experimental import pallas as pl
from jax.experimental.pallas import tpu as pltpu

L = 128          # spatial length; fixed by CrossAttentionLayer(key_value_dim=128)
EPS = 1e-5       # GroupNorm eps
NUM_HEADS = 2

_CUBIC = np.array([-0.01171875, -0.03515625, 0.11328125, 0.43359375,
                   0.43359375, 0.11328125, -0.03515625, -0.01171875], np.float64)


# ---------------------------------------------------------------------------
# host-side: (L, 2L) matrix implementing diffusers Upsample1d(kernel='cubic'):
# reflect-pad(2) + conv_transpose1d(kernel*2, stride=2, padding=7), depthwise.
# ---------------------------------------------------------------------------
def _upsample_matrix(length):
    k = 2.0 * _CUBIC

    def src(i):                       # padded index -> source column (reflect pad by 2)
        if i == 0:
            return 2
        if i == 1:
            return 1
        if i <= length + 1:
            return i - 2
        if i == length + 2:
            return length - 2
        return length - 3

    u = np.zeros((length, 2 * length), np.float64)
    for n in range(length):
        for j, t in enumerate((7, 5, 3, 1)):      # even output phase: y[2n]
            u[src(n + j), 2 * n] += k[t]
        for j, t in enumerate((6, 4, 2, 0)):      # odd output phase:  y[2n+1]
            u[src(n + 1 + j), 2 * n + 1] += k[t]
    return jnp.asarray(u, jnp.float32)


# ---------------------------------------------------------------------------
# the single fused kernel: one grid step per batch tile of `bt` samples
# ---------------------------------------------------------------------------
def _fused_kernel(x_ref, convw_ref, vec_ref, attnw_ref, up_ref, o_ref, *, layout, bt):
    f32 = jnp.float32
    n = bt * L
    nh = layout["num_heads"]

    # per-sample lane position (built once; used by the conv boundary masks)
    pos1 = lax.broadcasted_iota(jnp.int32, (1, L), 1)
    pos = pos1 if bt == 1 else jnp.concatenate([pos1] * bt, axis=1)            # (1, n)
    shift_mask = {off: (pos < (L - off)) if off > 0 else (pos >= (-off))
                  for off in (-2, -1, 1, 2)}

    def shift(x, off):
        # y[:, l] = x[:, l+off] within each 128-lane sample block, 0 at the block edges.
        if off == 0:
            return x
        rolled = pltpu.roll(x, shift=(-off) % n, axis=1)     # XLU lane rotate (jnp.roll semantics)
        return jnp.where(shift_mask[off], rolled, 0.0)

    def conv5(x, row, cout, cin, bcol):
        # 5-tap / pad-2 conv along lanes as ONE matmul against the sublane-stacked shifts.
        xs = jnp.concatenate([shift(x, t - 2) for t in range(5)], axis=0)      # (5*cin, n)
        w = convw_ref[row:row + cout, 0:5 * cin]
        return (jnp.dot(w, xs, preferred_element_type=f32)
                + vec_ref[0:cout, bcol:bcol + 1])

    def erf(x):
        # Abramowitz-Stegun 7.1.26, |err| < 1.5e-7; divide routed to the EUP.
        # TODO(synk): switch to lax.erf if/when a Mosaic lowering for erf is guaranteed.
        a1, a2, a3, a4, a5 = (0.254829592, -0.284496736, 1.421413741,
                              -1.453152027, 1.061405429)
        sgn = jnp.where(x >= 0.0, 1.0, -1.0)
        ax = jnp.abs(x)
        t = pl.reciprocal(1.0 + 0.3275911 * ax, approx=False)
        poly = ((((a5 * t + a4) * t + a3) * t + a2) * t + a1) * t
        return sgn * (1.0 - poly * jnp.exp(-ax * ax))

    def gelu(x):                       # torch.nn.GELU() (exact-erf formulation)
        return 0.5 * x * (1.0 + erf(x * 0.7071067811865476))

    def gn_gelu(h, cout, gcol, bcol):
        # GroupNorm(num_groups=1) per sample over its (cout, 128) tile, then GELU.
        inv = 1.0 / float(cout * L)
        pieces = []
        for b in range(bt):
            hb = h[:, b * L:(b + 1) * L]
            mu = jnp.sum(hb) * inv
            ms = jnp.sum(hb * hb) * inv                 # E[x^2] - mu^2 (independent reductions)
            var = jnp.maximum(ms - mu * mu, 0.0)
            pieces.append((hb - mu) * lax.rsqrt(var + EPS))
        hn = pieces[0] if bt == 1 else jnp.concatenate(pieces, axis=1)
        g = vec_ref[0:cout, gcol:gcol + 1]
        be = vec_ref[0:cout, bcol:bcol + 1]
        return gelu(hn * g + be)

    def resconv(x, lay):
        h = gn_gelu(conv5(x, lay["w1"], lay["cmid"], lay["cin"], lay["b1"]),
                    lay["cmid"], lay["g1"], lay["be1"])
        h = gn_gelu(conv5(h, lay["w2"], lay["cout"], lay["cmid"], lay["b2"]),
                    lay["cout"], lay["g2"], lay["be2"])
        if lay["wskip"] is not None:                     # conv_skip (1x1, no bias)
            wsk = convw_ref[lay["wskip"]:lay["wskip"] + lay["cout"], 0:lay["cin"]]
            skip = jnp.dot(wsk, x, preferred_element_type=f32)
        else:                                            # identity skip: no matmul
            skip = x
        return h + skip

    def attn(h, kv_all, s_tok, lay):
        # h: (qdim, n) query stream; kv_all: (bt*S, 128) key/value stream.
        # Head dims padded to 8 host-side; key bias dropped (cancels in softmax over keys).
        d, dp, hdp, qd = lay["d"], lay["dp"], lay["hdp"], lay["qdim"]
        wq = attnw_ref[lay["wq"]:lay["wq"] + dp, 0:qd]
        q = (jnp.dot(wq, h, preferred_element_type=f32)
             + vec_ref[0:dp, lay["bq"]:lay["bq"] + 1])                         # (dp, n)
        wk = attnw_ref[lay["wk"]:lay["wk"] + dp, 0:L]
        k_all = lax.dot_general(kv_all, wk, (((1,), (1,)), ((), ())),
                                preferred_element_type=f32)                    # (bt*S, dp)
        wv = attnw_ref[lay["wv"]:lay["wv"] + dp, 0:L]
        v_all = (lax.dot_general(wv, kv_all, (((1,), (1,)), ((), ())),
                                 preferred_element_type=f32)
                 + vec_ref[0:dp, lay["bv"]:lay["bv"] + 1])                     # (dp, bt*S)
        outs = []
        for b in range(bt):
            kb = k_all[b * s_tok:(b + 1) * s_tok, :]                           # (S, dp)
            heads = []
            for hh in range(nh):
                qh = q[hh * hdp:(hh + 1) * hdp, b * L:(b + 1) * L]             # (hdp, L)
                kh = kb[:, hh * hdp:(hh + 1) * hdp]                            # (S, hdp)
                vh = v_all[hh * hdp:(hh + 1) * hdp, b * s_tok:(b + 1) * s_tok]  # (hdp, S)
                s = jnp.dot(kh, qh, preferred_element_type=f32)                # (S, L), pre-scaled
                s = s - jnp.max(s, axis=0, keepdims=True)
                p = jnp.exp(s)
                p = p * pl.reciprocal(jnp.sum(p, axis=0, keepdims=True), approx=True)
                heads.append(jnp.dot(vh, p, preferred_element_type=f32))       # (hdp, L)
            outs.append(jnp.concatenate(heads, axis=0))                        # (dp, L)
        att = outs[0] if bt == 1 else jnp.concatenate(outs, axis=1)            # (dp, n)
        wo = attnw_ref[lay["wo"]:lay["wo"] + d, 0:dp]
        return (jnp.dot(wo, att, preferred_element_type=f32)
                + vec_ref[0:d, lay["bo"]:lay["bo"] + 1])

    x = x_ref[...]                                                             # (2*in_ch, n)
    s_tok = x.shape[0]
    # key/value stream for every attention layer: channels of the concatenated input are the
    # tokens, the 128-long spatial axis is the kv feature dim; batched along sublanes.
    kv_all = (x if bt == 1
              else jnp.concatenate([x[:, b * L:(b + 1) * L] for b in range(bt)], axis=0))

    h = x
    for lay in layout["layers"]:
        h = attn(resconv(h, lay), kv_all, s_tok, lay)

    # Upsample1d as one matmul per sample; aligned 256-lane stores (unmasked vst).
    for b in range(bt):
        o_ref[:, b * 2 * L:(b + 1) * 2 * L] = jnp.dot(
            h[:, b * L:(b + 1) * L], up_ref[...], preferred_element_type=f32)


# ---------------------------------------------------------------------------
# wrapper
# ---------------------------------------------------------------------------
def cross_attn_up_block_1d(prepared, hidden_states, res_hidden_states_tuple,
                           samples_per_step=None):
    """hidden_states / res in PyTorch NCL layout (B, in_ch, 128). Returns (B, out_ch, 256)."""
    res = res_hidden_states_tuple[-1]
    x = jnp.concatenate([hidden_states, res], axis=1).astype(jnp.float32)   # host-side concat
    B, c2, length = x.shape
    assert length == L, "CrossAttentionLayer(key_value_dim=128) requires spatial length 128"

    layout = prepared["layout"]
    c_out = layout["layers"][-1]["d"]

    if samples_per_step is None:
        # whole small batch per step (fills the 256-wide MXU, amortizes grid overhead);
        # on v7x pass B//2 explicitly so each TensorCore gets a grid step.
        samples_per_step = next(c for c in (8, 4, 2, 1) if B % c == 0)
    bt = samples_per_step
    assert B % bt == 0
    n = bt * L

    # lane-dense layouts: (C, B*128) in, (C_out, B*256) out
    x_lanes = jnp.transpose(x, (1, 0, 2)).reshape(c2, B * L)

    kernel = functools.partial(_fused_kernel, layout=layout, bt=bt)
    out_flat = pl.pallas_call(
        kernel,
        out_shape=jax.ShapeDtypeStruct((c_out, B * 2 * L), jnp.float32),
        grid_spec=pltpu.PrefetchScalarGridSpec(
            num_scalar_prefetch=0,
            grid=(B // bt,),
            in_specs=[
                pl.BlockSpec((c2, n), lambda s: (0, s)),
                pl.BlockSpec(prepared["convw"].shape, lambda s: (0, 0)),
                pl.BlockSpec(prepared["vecs"].shape, lambda s: (0, 0)),
                pl.BlockSpec(prepared["attnw"].shape, lambda s: (0, 0)),
                pl.BlockSpec(prepared["up"].shape, lambda s: (0, 0)),
            ],
            out_specs=pl.BlockSpec((c_out, 2 * n), lambda s: (0, s)),
        ),
        compiler_params=pltpu.CompilerParams(dimension_semantics=("parallel",)),
    )(x_lanes, prepared["convw"], prepared["vecs"], prepared["attnw"], prepared["up"])

    return jnp.transpose(out_flat.reshape(c_out, B, 2 * L), (1, 0, 2))


# ---------------------------------------------------------------------------
# parameters: PyTorch-layout init + host-side folding/packing into kernel slabs
# ---------------------------------------------------------------------------
def init_params(key, in_ch, out_ch, mid_ch):
    keys = iter(jax.random.split(key, 256))

    def nrm(shape, scale=0.1):
        return scale * jax.random.normal(next(keys), shape, jnp.float32)

    res_specs = [(2 * in_ch, mid_ch, mid_ch),
                 (mid_ch, mid_ch, mid_ch),
                 (mid_ch, mid_ch, out_ch)]
    resnets = []
    for cin, cmid, cout in res_specs:
        r = dict(conv1_w=nrm((cmid, cin, 5)), conv1_b=nrm((cmid,)),
                 gn1_w=1.0 + nrm((cmid,)), gn1_b=nrm((cmid,)),
                 conv2_w=nrm((cout, cmid, 5)), conv2_b=nrm((cout,)),
                 gn2_w=1.0 + nrm((cout,)), gn2_b=nrm((cout,)))
        if cin != cout:
            r["skip_w"] = nrm((cout, cin, 1))          # conv_skip (1x1, bias=False)
        resnets.append(r)

    attn_specs = [(mid_ch, 128, mid_ch), (mid_ch, 128, mid_ch), (out_ch, 128, out_ch)]
    attentions = []
    for qd, kvd, d in attn_specs:
        attentions.append(dict(
            pq_w=nrm((d, qd)), pq_b=nrm((d,)),
            pk_w=nrm((d, kvd)), pk_b=nrm((d,)),
            pv_w=nrm((d, kvd)), pv_b=nrm((d,)),
            in_proj_w=nrm((3 * d, d)), in_proj_b=nrm((3 * d,)),
            out_proj_w=nrm((d, d)), out_proj_b=nrm((d,)),
        ))
    return dict(resnets=resnets, attentions=attentions)


def prepare_params(params, num_heads=NUM_HEADS):
    """Fold projection+in_proj linears (softmax scale into Q, key bias dropped), pad heads to
    8 sublanes, reshape conv weights for the single-matmul conv, and pack everything into a
    handful of slabs (conv weights / attention weights / per-channel vectors / upsample)."""
    conv_blocks, attn_blocks, vec_list = [], [], []
    conv_row, attn_row = [0], [0]

    def add_row_block(blocks, row_ctr, blk):
        r = row_ctr[0]
        blocks.append(np.asarray(blk, np.float32))
        row_ctr[0] += ((blk.shape[0] + 7) // 8) * 8
        return r

    def add_vec(v):
        vec_list.append(np.asarray(v, np.float32).reshape(-1))
        return len(vec_list) - 1

    layers = []
    for r, a in zip(params["resnets"], params["attentions"]):
        cmid, cin, _ = r["conv1_w"].shape
        cout = r["conv2_w"].shape[0]
        lay = dict(cin=cin, cmid=cmid, cout=cout)
        lay["w1"] = add_row_block(conv_blocks, conv_row,
                                  np.transpose(np.asarray(r["conv1_w"]), (0, 2, 1)).reshape(cmid, 5 * cin))
        lay["b1"] = add_vec(r["conv1_b"]); lay["g1"] = add_vec(r["gn1_w"]); lay["be1"] = add_vec(r["gn1_b"])
        lay["w2"] = add_row_block(conv_blocks, conv_row,
                                  np.transpose(np.asarray(r["conv2_w"]), (0, 2, 1)).reshape(cout, 5 * cmid))
        lay["b2"] = add_vec(r["conv2_b"]); lay["g2"] = add_vec(r["gn2_w"]); lay["be2"] = add_vec(r["gn2_b"])
        lay["wskip"] = (add_row_block(conv_blocks, conv_row,
                                      np.asarray(r["skip_w"]).reshape(cout, cin))
                        if "skip_w" in r else None)

        d = a["out_proj_w"].shape[0]
        hd = d // num_heads
        hdp = ((hd + 7) // 8) * 8
        dp = num_heads * hdp
        scale = 1.0 / float(hd) ** 0.5
        in_w = np.asarray(a["in_proj_w"]); in_b = np.asarray(a["in_proj_b"])
        wqi, wki, wvi = in_w[:d], in_w[d:2 * d], in_w[2 * d:]
        bqi, bvi = in_b[:d], in_b[2 * d:]
        wq = scale * (wqi @ np.asarray(a["pq_w"]))                       # (d, qdim), scale folded
        bq = scale * (wqi @ np.asarray(a["pq_b"]) + bqi)
        wk = wki @ np.asarray(a["pk_w"])                                 # (d, 128); key bias dropped
        wv = wvi @ np.asarray(a["pv_w"])                                 # (d, 128)
        bv = wvi @ np.asarray(a["pv_b"]) + bvi
        wo = np.asarray(a["out_proj_w"]); bo = np.asarray(a["out_proj_b"])

        def pad_rows(m):                                                 # per-head rows -> hdp
            out = np.zeros((dp,) + m.shape[1:], np.float32)
            for hh in range(num_heads):
                out[hh * hdp:hh * hdp + hd] = m[hh * hd:(hh + 1) * hd]
            return out

        def pad_cols(m):                                                 # per-head cols -> hdp
            out = np.zeros(m.shape[:1] + (dp,), np.float32)
            for hh in range(num_heads):
                out[:, hh * hdp:hh * hdp + hd] = m[:, hh * hd:(hh + 1) * hd]
            return out

        lay["qdim"], lay["d"], lay["dp"], lay["hdp"] = wq.shape[1], d, dp, hdp
        lay["wq"] = add_row_block(attn_blocks, attn_row, pad_rows(wq))
        lay["wk"] = add_row_block(attn_blocks, attn_row, pad_rows(wk))
        lay["wv"] = add_row_block(attn_blocks, attn_row, pad_rows(wv))
        lay["wo"] = add_row_block(attn_blocks, attn_row, pad_cols(wo))
        lay["bq"] = add_vec(pad_rows(bq.reshape(-1, 1)))
        lay["bv"] = add_vec(pad_rows(bv.reshape(-1, 1)))
        lay["bo"] = add_vec(bo)
        layers.append(lay)

    def pack_row_blocks(blocks):
        cols = max(b.shape[1] for b in blocks)
        mats = []
        for b in blocks:
            pr = ((b.shape[0] + 7) // 8) * 8
            m = np.zeros((pr, cols), np.float32)
            m[:b.shape[0], :b.shape[1]] = b
            mats.append(m)
        return jnp.asarray(np.concatenate(mats, axis=0))

    convw = pack_row_blocks(conv_blocks)
    attnw = pack_row_blocks(attn_blocks)
    cvec = ((max(v.shape[0] for v in vec_list) + 7) // 8) * 8
    vecs = np.zeros((cvec, len(vec_list)), np.float32)
    for j, v in enumerate(vec_list):
        vecs[:v.shape[0], j] = v

    layout = dict(layers=layers, num_heads=num_heads)
    return dict(convw=convw, vecs=jnp.asarray(vecs), attnw=attnw,
                up=_upsample_matrix(L), layout=layout)


# ---------------------------------------------------------------------------
# pure-JAX reference (mirrors the PyTorch module) for the self-check
# ---------------------------------------------------------------------------
def _ref_gelu(x):
    return 0.5 * x * (1.0 + lax.erf(x / np.sqrt(2.0).astype(np.float32)))


def _ref_conv1d(x, w, b=None, padding=2):
    y = lax.conv_general_dilated(x, w, window_strides=(1,), padding=[(padding, padding)],
                                 dimension_numbers=("NCH", "OIH", "NCH"))
    return y if b is None else y + b[None, :, None]


def _ref_groupnorm(x, g, b):
    mu = jnp.mean(x, axis=(1, 2), keepdims=True)
    var = jnp.mean((x - mu) ** 2, axis=(1, 2), keepdims=True)
    return (x - mu) / jnp.sqrt(var + EPS) * g[None, :, None] + b[None, :, None]


def _ref_resconv(x, r):
    h = _ref_gelu(_ref_groupnorm(_ref_conv1d(x, r["conv1_w"], r["conv1_b"]), r["gn1_w"], r["gn1_b"]))
    h = _ref_gelu(_ref_groupnorm(_ref_conv1d(h, r["conv2_w"], r["conv2_b"]), r["gn2_w"], r["gn2_b"]))
    skip = _ref_conv1d(x, r["skip_w"], None, padding=0) if "skip_w" in r else x
    return h + skip


def _ref_attn(a, query, kv, num_heads=NUM_HEADS):
    q = query @ a["pq_w"].T + a["pq_b"]
    k = kv @ a["pk_w"].T + a["pk_b"]
    v = kv @ a["pv_w"].T + a["pv_b"]
    d = a["out_proj_w"].shape[0]
    wq, wk, wv = a["in_proj_w"][:d], a["in_proj_w"][d:2 * d], a["in_proj_w"][2 * d:]
    bq, bk, bv = a["in_proj_b"][:d], a["in_proj_b"][d:2 * d], a["in_proj_b"][2 * d:]
    q = q @ wq.T + bq
    k = k @ wk.T + bk
    v = v @ wv.T + bv
    B, Lq, _ = q.shape
    S = k.shape[1]
    hd = d // num_heads
    q = q.reshape(B, Lq, num_heads, hd).transpose(0, 2, 1, 3)
    k = k.reshape(B, S, num_heads, hd).transpose(0, 2, 1, 3)
    v = v.reshape(B, S, num_heads, hd).transpose(0, 2, 1, 3)
    s = jnp.einsum("bhld,bhsd->bhls", q, k) / np.sqrt(hd).astype(np.float32)
    p = jax.nn.softmax(s, axis=-1)
    o = jnp.einsum("bhls,bhsd->bhld", p, v).transpose(0, 2, 1, 3).reshape(B, Lq, d)
    return o @ a["out_proj_w"].T + a["out_proj_b"]


def _ref_upsample(x):
    C = x.shape[1]
    kk = np.zeros((C, 1, 8), np.float32)
    kk[:, 0, :] = (2.0 * _CUBIC)[::-1]          # transposed conv == dilated corr with flipped k
    xp = jnp.pad(x, ((0, 0), (0, 0), (2, 2)), mode="reflect")
    return lax.conv_general_dilated(xp, jnp.asarray(kk), window_strides=(1,), padding=[(0, 0)],
                                    lhs_dilation=(2,), feature_group_count=C,
                                    dimension_numbers=("NCH", "OIH", "NCH"))


def reference_forward(params, hidden, res):
    x = jnp.concatenate([hidden, res], axis=1)           # (B, 2*in, L)
    kv = x                                               # channels are the kv tokens
    h = x
    for r, a in zip(params["resnets"], params["attentions"]):
        h = _ref_resconv(h, r)
        h = _ref_attn(a, h.transpose(0, 2, 1), kv).transpose(0, 2, 1)
    return _ref_upsample(h)


if __name__ == "__main__":
    B = 2
    in_ch = 8
    out_ch = 8          # mid_channels defaults to out_channels
    mid_ch = out_ch

    key = jax.random.PRNGKey(0)
    k0, k1, k2 = jax.random.split(key, 3)
    hidden = jax.random.normal(k0, (B, in_ch, L), jnp.float32)
    res_hidden = jax.random.normal(k1, (B, in_ch, L), jnp.float32)

    torch_layout_params = init_params(k2, in_ch, out_ch, mid_ch)
    prepared = prepare_params(torch_layout_params)            # host-side, once

    out = cross_attn_up_block_1d(prepared, hidden, (res_hidden,))
    out = jax.block_until_ready(out)
    assert out.shape == (B, out_ch, 2 * L), out.shape
    assert bool(jnp.all(jnp.isfinite(out)))

    ref = jax.block_until_ready(reference_forward(torch_layout_params, hidden, res_hidden))
    err = float(jnp.max(jnp.abs(out - ref)))
    assert err < 2e-2, f"mismatch vs pure-JAX reference: max abs err {err}"

    print("KERNEL_OK")
</pallas_src>

<mosaic_0001>
module attributes {stable_mosaic.version = 11 : i64} {
  func.func @_fused_kernel(%arg0: i32, %arg1: memref<16x256xf32, #tpu.memory_space<vmem>>, %arg2: memref<56x80xf32, #tpu.memory_space<vmem>>, %arg3: memref<16x27xf32, #tpu.memory_space<vmem>>, %arg4: memref<168x128xf32, #tpu.memory_space<vmem>>, %arg5: memref<128x256xf32, #tpu.memory_space<vmem>>, %arg6: memref<8x512xf32, #tpu.memory_space<vmem>>) attributes {dimension_semantics = [#tpu.dimension_semantics<parallel>], iteration_bounds = array<i64: 1>, scalar_prefetch = 0 : i64, scratch_operands = 0 : i64, tpu.core_type = #tpu.core_type<tc>, window_params = [{transform_indices = @transform_0, window_bounds = array<i64: 16, 256>}, {pipeline_mode = #tpu.pipeline_mode<synchronous>, transform_indices = @transform_1, window_bounds = array<i64: 56, 80>}, {pipeline_mode = #tpu.pipeline_mode<synchronous>, transform_indices = @transform_2, window_bounds = array<i64: 16, 27>}, {pipeline_mode = #tpu.pipeline_mode<synchronous>, transform_indices = @transform_3, window_bounds = array<i64: 168, 128>}, {pipeline_mode = #tpu.pipeline_mode<synchronous>, transform_indices = @transform_4, window_bounds = array<i64: 128, 256>}, {transform_indices = @transform_5, window_bounds = array<i64: 8, 512>}]} {
    %0 = tpu.iota {dimensions = array<i32: 1>} : vector<1x128xi32>
    %1 = tpu.concatenate %0, %0 in 1 : vector<1x128xi32>, vector<1x128xi32> -> vector<1x256xi32>
    %c2_i32 = arith.constant 2 : i32
    %2 = vector.broadcast %c2_i32 : i32 to vector<1x256xi32>
    %3 = arith.cmpi sge, %1, %2 : vector<1x256xi32>
    %c1_i32 = arith.constant 1 : i32
    %4 = vector.broadcast %c1_i32 : i32 to vector<1x256xi32>
    %5 = arith.cmpi sge, %1, %4 : vector<1x256xi32>
    %c127_i32 = arith.constant 127 : i32
    %6 = vector.broadcast %c127_i32 : i32 to vector<1x256xi32>
    %7 = arith.cmpi slt, %1, %6 : vector<1x256xi32>
    %c126_i32 = arith.constant 126 : i32
    %8 = vector.broadcast %c126_i32 : i32 to vector<1x256xi32>
    %9 = arith.cmpi slt, %1, %8 : vector<1x256xi32>
    %c0 = arith.constant 0 : index
    %c0_0 = arith.constant 0 : index
    %10 = vector.load %arg1[%c0, %c0_0] : memref<16x256xf32, #tpu.memory_space<vmem>>, vector<16x256xf32>
    %11 = vector.extract_strided_slice %10 {offsets = [0, 0], sizes = [16, 128], strides = [1, 1]} : vector<16x256xf32> to vector<16x128xf32>
    %12 = vector.extract_strided_slice %10 {offsets = [0, 128], sizes = [16, 128], strides = [1, 1]} : vector<16x256xf32> to vector<16x128xf32>
    %13 = tpu.concatenate %11, %12 in 0 : vector<16x128xf32>, vector<16x128xf32> -> vector<32x128xf32>
    %c2_i32_1 = arith.constant 2 : i32
    %14 = tpu.dynamic_rotate %10 by %c2_i32_1 dim 1 : vector<16x256xf32>, i32 -> vector<16x256xf32>
    %cst = arith.constant 0.000000e+00 : f32
    %15 = vector.shape_cast %3 : vector<1x256xi1> to vector<1x256xi1>
    %16 = vector.broadcast %15 : vector<1x256xi1> to vector<16x256xi1>
    %17 = vector.broadcast %cst : f32 to vector<16x256xf32>
    %18 = arith.select %16, %14, %17 : vector<16x256xi1>, vector<16x256xf32>
    %c1_i32_2 = arith.constant 1 : i32
    %19 = tpu.dynamic_rotate %10 by %c1_i32_2 dim 1 : vector<16x256xf32>, i32 -> vector<16x256xf32>
    %cst_3 = arith.constant 0.000000e+00 : f32
    %20 = vector.shape_cast %5 : vector<1x256xi1> to vector<1x256xi1>
    %21 = vector.broadcast %20 : vector<1x256xi1> to vector<16x256xi1>
    %22 = vector.broadcast %cst_3 : f32 to vector<16x256xf32>
    %23 = arith.select %21, %19, %22 : vector<16x256xi1>, vector<16x256xf32>
    %c255_i32 = arith.constant 255 : i32
    %24 = tpu.dynamic_rotate %10 by %c255_i32 dim 1 : vector<16x256xf32>, i32 -> vector<16x256xf32>
    %cst_4 = arith.constant 0.000000e+00 : f32
    %25 = vector.shape_cast %7 : vector<1x256xi1> to vector<1x256xi1>
    %26 = vector.broadcast %25 : vector<1x256xi1> to vector<16x256xi1>
    %27 = vector.broadcast %cst_4 : f32 to vector<16x256xf32>
    %28 = arith.select %26, %24, %27 : vector<16x256xi1>, vector<16x256xf32>
    %c254_i32 = arith.constant 254 : i32
    %29 = tpu.dynamic_rotate %10 by %c254_i32 dim 1 : vector<16x256xf32>, i32 -> vector<16x256xf32>
    %cst_5 = arith.constant 0.000000e+00 : f32
    %30 = vector.shape_cast %9 : vector<1x256xi1> to vector<1x256xi1>
    %31 = vector.broadcast %30 : vector<1x256xi1> to vector<16x256xi1>
    %32 = vector.broadcast %cst_5 : f32 to vector<16x256xf32>
    %33 = arith.select %31, %29, %32 : vector<16x256xi1>, vector<16x256xf32>
    %34 = tpu.concatenate %18, %23, %10, %28, %33 in 0 : vector<16x256xf32>, vector<16x256xf32>, vector<16x256xf32>, vector<16x256xf32>, vector<16x256xf32> -> vector<80x256xf32>
    %c0_6 = arith.constant 0 : index
    %c0_7 = arith.constant 0 : index
    %35 = vector.load %arg2[%c0_6, %c0_7] : memref<56x80xf32, #tpu.memory_space<vmem>>, vector<8x80xf32>
    %cst_8 = arith.constant dense<0.000000e+00> : vector<8x256xf32>
    %36 = tpu.matmul %35, %34, %cst_8 {dimension_numbers = #tpu.dot_dimension_numbers<[1], [0], [0], [1], [0, 0, 1, 1], [], []>} : vector<8x80xf32>, vector<80x256xf32>, vector<8x256xf32> -> vector<8x256xf32>
    %c0_9 = arith.constant 0 : index
    %c0_10 = arith.constant 0 : index
    %37 = vector.load %arg3[%c0_9, %c0_10] : memref<16x27xf32, #tpu.memory_space<vmem>>, vector<8x1xf32>
    %38 = vector.broadcast %37 : vector<8x1xf32> to vector<8x256xf32>
    %39 = arith.addf %36, %38 : vector<8x256xf32>
    %40 = vector.extract_strided_slice %39 {offsets = [0, 0], sizes = [8, 128], strides = [1, 1]} : vector<8x256xf32> to vector<8x128xf32>
    %41 = vector.shape_cast %40 : vector<8x128xf32> to vector<1x8x128xf32>
    %cst_11 = arith.constant dense<0.000000e+00> : vector<1xf32>
    %42 = vector.multi_reduction <add>, %41, %cst_11 [1, 2] : vector<1x8x128xf32> to vector<1xf32>
    %43 = vector.shape_cast %42 : vector<1xf32> to vector<1x1x1xf32>
    %44 = vector.extract %43[0, 0, 0] : f32 from vector<1x1x1xf32>
    %cst_12 = arith.constant 9.765625E-4 : f32
    %45 = arith.mulf %44, %cst_12 : f32
    %46 = arith.mulf %40, %40 : vector<8x128xf32>
    %47 = vector.shape_cast %46 : vector<8x128xf32> to vector<1x8x128xf32>
    %cst_13 = arith.constant dense<0.000000e+00> : vector<1xf32>
    %48 = vector.multi_reduction <add>, %47, %cst_13 [1, 2] : vector<1x8x128xf32> to vector<1xf32>
    %49 = vector.shape_cast %48 : vector<1xf32> to vector<1x1x1xf32>
    %50 = vector.extract %49[0, 0, 0] : f32 from vector<1x1x1xf32>
    %cst_14 = arith.constant 9.765625E-4 : f32
    %51 = arith.mulf %50, %cst_14 : f32
    %52 = arith.mulf %45, %45 : f32
    %53 = arith.subf %51, %52 : f32
    %cst_15 = arith.constant 0.000000e+00 : f32
    %54 = arith.maximumf %53, %cst_15 : f32
    %55 = vector.broadcast %45 : f32 to vector<8x128xf32>
    %56 = arith.subf %40, %55 : vector<8x128xf32>
    %cst_16 = arith.constant 9.99999974E-6 : f32
    %57 = arith.addf %54, %cst_16 : f32
    %58 = math.rsqrt %57 : f32
    %59 = vector.broadcast %58 : f32 to vector<8x128xf32>
    %60 = arith.mulf %56, %59 : vector<8x128xf32>
    %61 = vector.extract_strided_slice %39 {offsets = [0, 128], sizes = [8, 128], strides = [1, 1]} : vector<8x256xf32> to vector<8x128xf32>
    %62 = vector.shape_cast %61 : vector<8x128xf32> to vector<1x8x128xf32>
    %cst_17 = arith.constant dense<0.000000e+00> : vector<1xf32>
    %63 = vector.multi_reduction <add>, %62, %cst_17 [1, 2] : vector<1x8x128xf32> to vector<1xf32>
    %64 = vector.shape_cast %63 : vector<1xf32> to vector<1x1x1xf32>
    %65 = vector.extract %64[0, 0, 0] : f32 from vector<1x1x1xf32>
    %cst_18 = arith.constant 9.765625E-4 : f32
    %66 = arith.mulf %65, %cst_18 : f32
    %67 = arith.mulf %61, %61 : vector<8x128xf32>
    %68 = vector.shape_cast %67 : vector<8x128xf32> to vector<1x8x128xf32>
    %cst_19 = arith.constant dense<0.000000e+00> : vector<1xf32>
    %69 = vector.multi_reduction <add>, %68, %cst_19 [1, 2] : vector<1x8x128xf32> to vector<1xf32>
    %70 = vector.shape_cast %69 : vector<1xf32> to vector<1x1x1xf32>
    %71 = vector.extract %70[0, 0, 0] : f32 from vector<1x1x1xf32>
    %cst_20 = arith.constant 9.765625E-4 : f32
    %72 = arith.mulf %71, %cst_20 : f32
    %73 = arith.mulf %66, %66 : f32
    %74 = arith.subf %72, %73 : f32
    %cst_21 = arith.constant 0.000000e+00 : f32
    %75 = arith.maximumf %74, %cst_21 : f32
    %76 = vector.broadcast %66 : f32 to vector<8x128xf32>
    %77 = arith.subf %61, %76 : vector<8x128xf32>
    %cst_22 = arith.constant 9.99999974E-6 : f32
    %78 = arith.addf %75, %cst_22 : f32
    %79 = math.rsqrt %78 : f32
    %80 = vector.broadcast %79 : f32 to vector<8x128xf32>
    %81 = arith.mulf %77, %80 : vector<8x128xf32>
    %82 = tpu.concatenate %60, %81 in 1 : vector<8x128xf32>, vector<8x128xf32> -> vector<8x256xf32>
    %c0_23 = arith.constant 0 : index
    %c1 = arith.constant 1 : index
    %83 = vector.load %arg3[%c0_23, %c1] : memref<16x27xf32, #tpu.memory_space<vmem>>, vector<8x1xf32>
    %c0_24 = arith.constant 0 : index
    %c2 = arith.constant 2 : index
    %84 = vector.load %arg3[%c0_24, %c2] : memref<16x27xf32, #tpu.memory_space<vmem>>, vector<8x1xf32>
    %85 = vector.broadcast %83 : vector<8x1xf32> to vector<8x256xf32>
    %86 = arith.mulf %82, %85 : vector<8x256xf32>
    %87 = vector.broadcast %84 : vector<8x1xf32> to vector<8x256xf32>
    %88 = arith.addf %86, %87 : vector<8x256xf32>
    %cst_25 = arith.constant 5.000000e-01 : f32
    %89 = vector.broadcast %cst_25 : f32 to vector<8x256xf32>
    %90 = arith.mulf %89, %88 : vector<8x256xf32>
    %cst_26 = arith.constant 0.707106769 : f32
    %91 = vector.broadcast %cst_26 : f32 to vector<8x256xf32>
    %92 = arith.mulf %88, %91 : vector<8x256xf32>
    %cst_27 = arith.constant 0.000000e+00 : f32
    %93 = vector.broadcast %cst_27 : f32 to vector<8x256xf32>
    %94 = arith.cmpf oge, %92, %93 : vector<8x256xf32>
    %cst_28 = arith.constant 1.000000e+00 : f32
    %cst_29 = arith.constant -1.000000e+00 : f32
    %95 = vector.broadcast %cst_28 : f32 to vector<8x256xf32>
    %96 = vector.broadcast %cst_29 : f32 to vector<8x256xf32>
    %97 = arith.select %94, %95, %96 : vector<8x256xi1>, vector<8x256xf32>
    %98 = math.absf %92 : vector<8x256xf32>
    %cst_30 = arith.constant 0.327591091 : f32
    %99 = vector.broadcast %cst_30 : f32 to vector<8x256xf32>
    %100 = arith.mulf %99, %98 : vector<8x256xf32>
    %cst_31 = arith.constant 1.000000e+00 : f32
    %101 = vector.broadcast %cst_31 : f32 to vector<8x256xf32>
    %102 = arith.addf %101, %100 : vector<8x256xf32>
    %103 = tpu.reciprocal %102 : vector<8x256xf32> -> vector<8x256xf32>
    %cst_32 = arith.constant 1.06140542 : f32
    %104 = vector.broadcast %cst_32 : f32 to vector<8x256xf32>
    %105 = arith.mulf %104, %103 : vector<8x256xf32>
    %cst_33 = arith.constant -1.45315206 : f32
    %106 = vector.broadcast %cst_33 : f32 to vector<8x256xf32>
    %107 = arith.addf %105, %106 : vector<8x256xf32>
    %108 = arith.mulf %107, %103 : vector<8x256xf32>
    %cst_34 = arith.constant 1.42141378 : f32
    %109 = vector.broadcast %cst_34 : f32 to vector<8x256xf32>
    %110 = arith.addf %108, %109 : vector<8x256xf32>
    %111 = arith.mulf %110, %103 : vector<8x256xf32>
    %cst_35 = arith.constant -0.284496725 : f32
    %112 = vector.broadcast %cst_35 : f32 to vector<8x256xf32>
    %113 = arith.addf %111, %112 : vector<8x256xf32>
    %114 = arith.mulf %113, %103 : vector<8x256xf32>
    %cst_36 = arith.constant 0.254829586 : f32
    %115 = vector.broadcast %cst_36 : f32 to vector<8x256xf32>
    %116 = arith.addf %114, %115 : vector<8x256xf32>
    %117 = arith.mulf %116, %103 : vector<8x256xf32>
    %cst_37 = arith.constant 0.000000e+00 : f32
    %118 = vector.broadcast %cst_37 : f32 to vector<8x256xf32>
    %119 = arith.subf %118, %98 : vector<8x256xf32>
    %120 = arith.mulf %119, %98 : vector<8x256xf32>
    %121 = math.exp %120 : vector<8x256xf32>
    %122 = arith.mulf %117, %121 : vector<8x256xf32>
    %cst_38 = arith.constant 1.000000e+00 : f32
    %123 = vector.broadcast %cst_38 : f32 to vector<8x256xf32>
    %124 = arith.subf %123, %122 : vector<8x256xf32>
    %125 = arith.mulf %97, %124 : vector<8x256xf32>
    %cst_39 = arith.constant 1.000000e+00 : f32
    %126 = vector.broadcast %cst_39 : f32 to vector<8x256xf32>
    %127 = arith.addf %126, %125 : vector<8x256xf32>
    %128 = arith.mulf %90, %127 : vector<8x256xf32>
    %c2_i32_40 = arith.constant 2 : i32
    %129 = tpu.dynamic_rotate %128 by %c2_i32_40 dim 1 : vector<8x256xf32>, i32 -> vector<8x256xf32>
    %cst_41 = arith.constant 0.000000e+00 : f32
    %130 = vector.shape_cast %3 : vector<1x256xi1> to vector<1x256xi1>
    %131 = vector.broadcast %130 : vector<1x256xi1> to vector<8x256xi1>
    %132 = vector.broadcast %cst_41 : f32 to vector<8x256xf32>
    %133 = arith.select %131, %129, %132 : vector<8x256xi1>, vector<8x256xf32>
    %c1_i32_42 = arith.constant 1 : i32
    %134 = tpu.dynamic_rotate %128 by %c1_i32_42 dim 1 : vector<8x256xf32>, i32 -> vector<8x256xf32>
    %cst_43 = arith.constant 0.000000e+00 : f32
    %135 = vector.shape_cast %5 : vector<1x256xi1> to vector<1x256xi1>
    %136 = vector.broadcast %135 : vector<1x256xi1> to vector<8x256xi1>
    %137 = vector.broadcast %cst_43 : f32 to vector<8x256xf32>
    %138 = arith.select %136, %134, %137 : vector<8x256xi1>, vector<8x256xf32>
    %c255_i32_44 = arith.constant 255 : i32
    %139 = tpu.dynamic_rotate %128 by %c255_i32_44 dim 1 : vector<8x256xf32>, i32 -> vector<8x256xf32>
    %cst_45 = arith.constant 0.000000e+00 : f32
    %140 = vector.shape_cast %7 : vector<1x256xi1> to vector<1x256xi1>
    %141 = vector.broadcast %140 : vector<1x256xi1> to vector<8x256xi1>
    %142 = vector.broadcast %cst_45 : f32 to vector<8x256xf32>
    %143 = arith.select %141, %139, %142 : vector<8x256xi1>, vector<8x256xf32>
    %c254_i32_46 = arith.constant 254 : i32
    %144 = tpu.dynamic_rotate %128 by %c254_i32_46 dim 1 : vector<8x256xf32>, i32 -> vector<8x256xf32>
    %cst_47 = arith.constant 0.000000e+00 : f32
    %145 = vector.shape_cast %9 : vector<1x256xi1> to vector<1x256xi1>
    %146 = vector.broadcast %145 : vector<1x256xi1> to vector<8x256xi1>
    %147 = vector.broadcast %cst_47 : f32 to vector<8x256xf32>
    %148 = arith.select %146, %144, %147 : vector<8x256xi1>, vector<8x256xf32>
    %149 = tpu.concatenate %133, %138, %128, %143, %148 in 0 : vector<8x256xf32>, vector<8x256xf32>, vector<8x256xf32>, vector<8x256xf32>, vector<8x256xf32> -> vector<40x256xf32>
    %c8 = arith.constant 8 : index
    %c0_48 = arith.constant 0 : index
    %150 = vector.load %arg2[%c8, %c0_48] : memref<56x80xf32, #tpu.memory_space<vmem>>, vector<8x40xf32>
    %cst_49 = arith.constant dense<0.000000e+00> : vector<8x256xf32>
    %151 = tpu.matmul %150, %149, %cst_49 {dimension_numbers = #tpu.dot_dimension_numbers<[1], [0], [0], [1], [0, 0, 1, 1], [], []>} : vector<8x40xf32>, vector<40x256xf32>, vector<8x256xf32> -> vector<8x256xf32>
    %c0_50 = arith.constant 0 : index
    %c3 = arith.constant 3 : index
    %152 = vector.load %arg3[%c0_50, %c3] : memref<16x27xf32, #tpu.memory_space<vmem>>, vector<8x1xf32>
    %153 = vector.broadcast %152 : vector<8x1xf32> to vector<8x256xf32>
    %154 = arith.addf %151, %153 : vector<8x256xf32>
    %155 = vector.extract_strided_slice %154 {offsets = [0, 0], sizes = [8, 128], strides = [1, 1]} : vector<8x256xf32> to vector<8x128xf32>
    %156 = vector.shape_cast %155 : vector<8x128xf32> to vector<1x8x128xf32>
    %cst_51 = arith.constant dense<0.000000e+00> : vector<1xf32>
    %157 = vector.multi_reduction <add>, %156, %cst_51 [1, 2] : vector<1x8x128xf32> to vector<1xf32>
    %158 = vector.shape_cast %157 : vector<1xf32> to vector<1x1x1xf32>
    %159 = vector.extract %158[0, 0, 0] : f32 from vector<1x1x1xf32>
    %cst_52 = arith.constant 9.765625E-4 : f32
    %160 = arith.mulf %159, %cst_52 : f32
    %161 = arith.mulf %155, %155 : vector<8x128xf32>
    %162 = vector.shape_cast %161 : vector<8x128xf32> to vector<1x8x128xf32>
    %cst_53 = arith.constant dense<0.000000e+00> : vector<1xf32>
    %163 = vector.multi_reduction <add>, %162, %cst_53 [1, 2] : vector<1x8x128xf32> to vector<1xf32>
    %164 = vector.shape_cast %163 : vector<1xf32> to vector<1x1x1xf32>
    %165 = vector.extract %164[0, 0, 0] : f32 from vector<1x1x1xf32>
    %cst_54 = arith.constant 9.765625E-4 : f32
    %166 = arith.mulf %165, %cst_54 : f32
    %167 = arith.mulf %160, %160 : f32
    %168 = arith.subf %166, %167 : f32
    %cst_55 = arith.constant 0.000000e+00 : f32
    %169 = arith.maximumf %168, %cst_55 : f32
    %170 = vector.broadcast %160 : f32 to vector<8x128xf32>
    %171 = arith.subf %155, %170 : vector<8x128xf32>
    %cst_56 = arith.constant 9.99999974E-6 : f32
    %172 = arith.addf %169, %cst_56 : f32
    %173 = math.rsqrt %172 : f32
    %174 = vector.broadcast %173 : f32 to vector<8x128xf32>
    %175 = arith.mulf %171, %174 : vector<8x128xf32>
    %176 = vector.extract_strided_slice %154 {offsets = [0, 128], sizes = [8, 128], strides = [1, 1]} : vector<8x256xf32> to vector<8x128xf32>
    %177 = vector.shape_cast %176 : vector<8x128xf32> to vector<1x8x128xf32>
    %cst_57 = arith.constant dense<0.000000e+00> : vector<1xf32>
    %178 = vector.multi_reduction <add>, %177, %cst_57 [1, 2] : vector<1x8x128xf32> to vector<1xf32>
    %179 = vector.shape_cast %178 : vector<1xf32> to vector<1x1x1xf32>
    %180 = vector.extract %179[0, 0, 0] : f32 from vector<1x1x1xf32>
    %cst_58 = arith.constant 9.765625E-4 : f32
    %181 = arith.mulf %180, %cst_58 : f32
    %182 = arith.mulf %176, %176 : vector<8x128xf32>
    %183 = vector.shape_cast %182 : vector<8x128xf32> to vector<1x8x128xf32>
    %cst_59 = arith.constant dense<0.000000e+00> : vector<1xf32>
    %184 = vector.multi_reduction <add>, %183, %cst_59 [1, 2] : vector<1x8x128xf32> to vector<1xf32>
    %185 = vector.shape_cast %184 : vector<1xf32> to vector<1x1x1xf32>
    %186 = vector.extract %185[0, 0, 0] : f32 from vector<1x1x1xf32>
    %cst_60 = arith.constant 9.765625E-4 : f32
    %187 = arith.mulf %186, %cst_60 : f32
    %188 = arith.mulf %181, %181 : f32
    %189 = arith.subf %187, %188 : f32
    %cst_61 = arith.constant 0.000000e+00 : f32
    %190 = arith.maximumf %189, %cst_61 : f32
    %191 = vector.broadcast %181 : f32 to vector<8x128xf32>
    %192 = arith.subf %176, %191 : vector<8x128xf32>
    %cst_62 = arith.constant 9.99999974E-6 : f32
    %193 = arith.addf %190, %cst_62 : f32
    %194 = math.rsqrt %193 : f32
    %195 = vector.broadcast %194 : f32 to vector<8x128xf32>
    %196 = arith.mulf %192, %195 : vector<8x128xf32>
    %197 = tpu.concatenate %175, %196 in 1 : vector<8x128xf32>, vector<8x128xf32> -> vector<8x256xf32>
    %c0_63 = arith.constant 0 : index
    %c4 = arith.constant 4 : index
    %198 = vector.load %arg3[%c0_63, %c4] : memref<16x27xf32, #tpu.memory_space<vmem>>, vector<8x1xf32>
    %c0_64 = arith.constant 0 : index
    %c5 = arith.constant 5 : index
    %199 = vector.load %arg3[%c0_64, %c5] : memref<16x27xf32, #tpu.memory_space<vmem>>, vector<8x1xf32>
    %200 = vector.broadcast %198 : vector<8x1xf32> to vector<8x256xf32>
    %201 = arith.mulf %197, %200 : vector<8x256xf32>
    %202 = vector.broadcast %199 : vector<8x1xf32> to vector<8x256xf32>
    %203 = arith.addf %201, %202 : vector<8x256xf32>
    %cst_65 = arith.constant 5.000000e-01 : f32
    %204 = vector.broadcast %cst_65 : f32 to vector<8x256xf32>
    %205 = arith.mulf %204, %203 : vector<8x256xf32>
    %cst_66 = arith.constant 0.707106769 : f32
    %206 = vector.broadcast %cst_66 : f32 to vector<8x256xf32>
    %207 = arith.mulf %203, %206 : vector<8x256xf32>
    %cst_67 = arith.constant 0.000000e+00 : f32
    %208 = vector.broadcast %cst_67 : f32 to vector<8x256xf32>
    %209 = arith.cmpf oge, %207, %208 : vector<8x256xf32>
    %cst_68 = arith.constant 1.000000e+00 : f32
    %cst_69 = arith.constant -1.000000e+00 : f32
    %210 = vector.broadcast %cst_68 : f32 to vector<8x256xf32>
    %211 = vector.broadcast %cst_69 : f32 to vector<8x256xf32>
    %212 = arith.select %209, %210, %211 : vector<8x256xi1>, vector<8x256xf32>
    %213 = math.absf %207 : vector<8x256xf32>
    %cst_70 = arith.constant 0.327591091 : f32
    %214 = vector.broadcast %cst_70 : f32 to vector<8x256xf32>
    %215 = arith.mulf %214, %213 : vector<8x256xf32>
    %cst_71 = arith.constant 1.000000e+00 : f32
    %216 = vector.broadcast %cst_71 : f32 to vector<8x256xf32>
    %217 = arith.addf %216, %215 : vector<8x256xf32>
    %218 = tpu.reciprocal %217 : vector<8x256xf32> -> vector<8x256xf32>
    %cst_72 = arith.constant 1.06140542 : f32
    %219 = vector.broadcast %cst_72 : f32 to vector<8x256xf32>
    %220 = arith.mulf %219, %218 : vector<8x256xf32>
    %cst_73 = arith.constant -1.45315206 : f32
    %221 = vector.broadcast %cst_73 : f32 to vector<8x256xf32>
    %222 = arith.addf %220, %221 : vector<8x256xf32>
    %223 = arith.mulf %222, %218 : vector<8x256xf32>
    %cst_74 = arith.constant 1.42141378 : f32
    %224 = vector.broadcast %cst_74 : f32 to vector<8x256xf32>
    %225 = arith.addf %223, %224 : vector<8x256xf32>
    %226 = arith.mulf %225, %218 : vector<8x256xf32>
    %cst_75 = arith.constant -0.284496725 : f32
    %227 = vector.broadcast %cst_75 : f32 to vector<8x256xf32>
    %228 = arith.addf %226, %227 : vector<8x256xf32>
    %229 = arith.mulf %228, %218 : vector<8x256xf32>
    %cst_76 = arith.constant 0.254829586 : f32
    %230 = vector.broadcast %cst_76 : f32 to vector<8x256xf32>
    %231 = arith.addf %229, %230 : vector<8x256xf32>
    %232 = arith.mulf %231, %218 : vector<8x256xf32>
    %cst_77 = arith.constant 0.000000e+00 : f32
    %233 = vector.broadcast %cst_77 : f32 to vector<8x256xf32>
    %234 = arith.subf %233, %213 : vector<8x256xf32>
    %235 = arith.mulf %234, %213 : vector<8x256xf32>
    %236 = math.exp %235 : vector<8x256xf32>
    %237 = arith.mulf %232, %236 : vector<8x256xf32>
    %cst_78 = arith.constant 1.000000e+00 : f32
    %238 = vector.broadcast %cst_78 : f32 to vector<8x256xf32>
    %239 = arith.subf %238, %237 : vector<8x256xf32>
    %240 = arith.mulf %212, %239 : vector<8x256xf32>
    %cst_79 = arith.constant 1.000000e+00 : f32
    %241 = vector.broadcast %cst_79 : f32 to vector<8x256xf32>
    %242 = arith.addf %241, %240 : vector<8x256xf32>
    %243 = arith.mulf %205, %242 : vector<8x256xf32>
    %c16 = arith.constant 16 : index
    %c0_80 = arith.constant 0 : index
    %244 = vector.load %arg2[%c16, %c0_80] : memref<56x80xf32, #tpu.memory_space<vmem>>, vector<8x16xf32>
    %cst_81 = arith.constant dense<0.000000e+00> : vector<8x256xf32>
    %245 = tpu.matmul %244, %10, %cst_81 {dimension_numbers = #tpu.dot_dimension_numbers<[1], [0], [0], [1], [0, 0, 1, 1], [], []>} : vector<8x16xf32>, vector<16x256xf32>, vector<8x256xf32> -> vector<8x256xf32>
    %246 = arith.addf %243, %245 : vector<8x256xf32>
    %c0_82 = arith.constant 0 : index
    %c0_83 = arith.constant 0 : index
    %247 = vector.load %arg4[%c0_82, %c0_83] : memref<168x128xf32, #tpu.memory_space<vmem>>, vector<16x8xf32>
    %cst_84 = arith.constant dense<0.000000e+00> : vector<16x256xf32>
    %248 = tpu.matmul %247, %246, %cst_84 {dimension_numbers = #tpu.dot_dimension_numbers<[1], [0], [0], [1], [0, 0, 1, 1], [], []>} : vector<16x8xf32>, vector<8x256xf32>, vector<16x256xf32> -> vector<16x256xf32>
    %c0_85 = arith.constant 0 : index
    %c6 = arith.constant 6 : index
    %249 = vector.load %arg3[%c0_85, %c6] : memref<16x27xf32, #tpu.memory_space<vmem>>, vector<16x1xf32>
    %250 = vector.broadcast %249 : vector<16x1xf32> to vector<16x256xf32>
    %251 = arith.addf %248, %250 : vector<16x256xf32>
    %c16_86 = arith.constant 16 : index
    %c0_87 = arith.constant 0 : index
    %252 = vector.load %arg4[%c16_86, %c0_87] : memref<168x128xf32, #tpu.memory_space<vmem>>, vector<16x128xf32>
    %cst_88 = arith.constant dense<0.000000e+00> : vector<32x16xf32>
    %253 = tpu.matmul %13, %252, %cst_88 {dimension_numbers = #tpu.dot_dimension_numbers<[1], [1], [0], [0], [0, 0, 1, 0], [], []>} : vector<32x128xf32>, vector<16x128xf32>, vector<32x16xf32> -> vector<32x16xf32>
    %c32 = arith.constant 32 : index
    %c0_89 = arith.constant 0 : index
    %254 = vector.load %arg4[%c32, %c0_89] : memref<168x128xf32, #tpu.memory_space<vmem>>, vector<16x128xf32>
    %cst_90 = arith.constant dense<0.000000e+00> : vector<16x32xf32>
    %255 = tpu.matmul %254, %13, %cst_90 {dimension_numbers = #tpu.dot_dimension_numbers<[1], [1], [0], [0], [0, 0, 1, 0], [], []>} : vector<16x128xf32>, vector<32x128xf32>, vector<16x32xf32> -> vector<16x32xf32>
    %c0_91 = arith.constant 0 : index
    %c7 = arith.constant 7 : index
    %256 = vector.load %arg3[%c0_91, %c7] : memref<16x27xf32, #tpu.memory_space<vmem>>, vector<16x1xf32>
    %257 = vector.broadcast %256 : vector<16x1xf32> to vector<16x32xf32>
    %258 = arith.addf %255, %257 : vector<16x32xf32>
    %259 = vector.extract_strided_slice %253 {offsets = [0, 0], sizes = [16, 16], strides = [1, 1]} : vector<32x16xf32> to vector<16x16xf32>
    %260 = vector.extract_strided_slice %251 {offsets = [0, 0], sizes = [8, 128], strides = [1, 1]} : vector<16x256xf32> to vector<8x128xf32>
    %261 = vector.extract_strided_slice %259 {offsets = [0, 0], sizes = [16, 8], strides = [1, 1]} : vector<16x16xf32> to vector<16x8xf32>
    %262 = vector.extract_strided_slice %258 {offsets = [0, 0], sizes = [8, 16], strides = [1, 1]} : vector<16x32xf32> to vector<8x16xf32>
    %cst_92 = arith.constant dense<0.000000e+00> : vector<16x128xf32>
    %263 = tpu.matmul %261, %260, %cst_92 {dimension_numbers = #tpu.dot_dimension_numbers<[1], [0], [0], [1], [0, 0, 1, 1], [], []>} : vector<16x8xf32>, vector<8x128xf32>, vector<16x128xf32> -> vector<16x128xf32>
    %cst_93 = arith.constant dense<0xFF800000> : vector<128xf32>
    %264 = vector.multi_reduction <maximumf>, %263, %cst_93 [0] : vector<16x128xf32> to vector<128xf32>
    %265 = vector.shape_cast %264 : vector<128xf32> to vector<1x128xf32>
    %266 = vector.broadcast %265 : vector<1x128xf32> to vector<16x128xf32>
    %267 = arith.subf %263, %266 : vector<16x128xf32>
    %268 = math.exp %267 : vector<16x128xf32>
    %cst_94 = arith.constant dense<0.000000e+00> : vector<128xf32>
    %269 = vector.multi_reduction <add>, %268, %cst_94 [0] : vector<16x128xf32> to vector<128xf32>
    %270 = vector.shape_cast %269 : vector<128xf32> to vector<1x128xf32>
    %271 = tpu.reciprocal %270 {approx = true} : vector<1x128xf32> -> vector<1x128xf32>
    %272 = vector.broadcast %271 : vector<1x128xf32> to vector<16x128xf32>
    %273 = arith.mulf %268, %272 : vector<16x128xf32>
    %cst_95 = arith.constant dense<0.000000e+00> : vector<8x128xf32>
    %274 = tpu.matmul %262, %273, %cst_95 {dimension_numbers = #tpu.dot_dimension_numbers<[1], [0], [0], [1], [0, 0, 1, 1], [], []>} : vector<8x16xf32>, vector<16x128xf32>, vector<8x128xf32> -> vector<8x128xf32>
    %275 = vector.extract_strided_slice %251 {offsets = [8, 0], sizes = [8, 128], strides = [1, 1]} : vector<16x256xf32> to vector<8x128xf32>
    %276 = vector.extract_strided_slice %259 {offsets = [0, 8], sizes = [16, 8], strides = [1, 1]} : vector<16x16xf32> to vector<16x8xf32>
    %277 = vector.extract_strided_slice %258 {offsets = [8, 0], sizes = [8, 16], strides = [1, 1]} : vector<16x32xf32> to vector<8x16xf32>
    %cst_96 = arith.constant dense<0.000000e+00> : vector<16x128xf32>
    %278 = tpu.matmul %276, %275, %cst_96 {dimension_numbers = #tpu.dot_dimension_numbers<[1], [0], [0], [1], [0, 0, 1, 1], [], []>} : vector<16x8xf32>, vector<8x128xf32>, vector<16x128xf32> -> vector<16x128xf32>
    %cst_97 = arith.constant dense<0xFF800000> : vector<128xf32>
    %279 = vector.multi_reduction <maximumf>, %278, %cst_97 [0] : vector<16x128xf32> to vector<128xf32>
    %280 = vector.shape_cast %279 : vector<128xf32> to vector<1x128xf32>
    %281 = vector.broadcast %280 : vector<1x128xf32> to vector<16x128xf32>
    %282 = arith.subf %278, %281 : vector<16x128xf32>
    %283 = math.exp %282 : vector<16x128xf32>
    %cst_98 = arith.constant dense<0.000000e+00> : vector<128xf32>
    %284 = vector.multi_reduction <add>, %283, %cst_98 [0] : vector<16x128xf32> to vector<128xf32>
    %285 = vector.shape_cast %284 : vector<128xf32> to vector<1x128xf32>
    %286 = tpu.reciprocal %285 {approx = true} : vector<1x128xf32> -> vector<1x128xf32>
    %287 = vector.broadcast %286 : vector<1x128xf32> to vector<16x128xf32>
    %288 = arith.mulf %283, %287 : vector<16x128xf32>
    %cst_99 = arith.constant dense<0.000000e+00> : vector<8x128xf32>
    %289 = tpu.matmul %277, %288, %cst_99 {dimension_numbers = #tpu.dot_dimension_numbers<[1], [0], [0], [1], [0, 0, 1, 1], [], []>} : vector<8x16xf32>, vector<16x128xf32>, vector<8x128xf32> -> vector<8x128xf32>
    %290 = tpu.concatenate %274, %289 in 0 : vector<8x128xf32>, vector<8x128xf32> -> vector<16x128xf32>
    %291 = vector.extract_strided_slice %253 {offsets = [16, 0], sizes = [16, 16], strides = [1, 1]} : vector<32x16xf32> to vector<16x16xf32>
    %292 = vector.extract_strided_slice %251 {offsets = [0, 128], sizes = [8, 128], strides = [1, 1]} : vector<16x256xf32> to vector<8x128xf32>
    %293 = vector.extract_strided_slice %291 {offsets = [0, 0], sizes = [16, 8], strides = [1, 1]} : vector<16x16xf32> to vector<16x8xf32>
    %294 = vector.extract_strided_slice %258 {offsets = [0, 16], sizes = [8, 16], strides = [1, 1]} : vector<16x32xf32> to vector<8x16xf32>
    %cst_100 = arith.constant dense<0.000000e+00> : vector<16x128xf32>
    %295 = tpu.matmul %293, %292, %cst_100 {dimension_numbers = #tpu.dot_dimension_numbers<[1], [0], [0], [1], [0, 0, 1, 1], [], []>} : vector<16x8xf32>, vector<8x128xf32>, vector<16x128xf32> -> vector<16x128xf32>
    %cst_101 = arith.constant dense<0xFF800000> : vector<128xf32>
    %296 = vector.multi_reduction <maximumf>, %295, %cst_101 [0] : vector<16x128xf32> to vector<128xf32>
    %297 = vector.shape_cast %296 : vector<128xf32> to vector<1x128xf32>
    %298 = vector.broadcast %297 : vector<1x128xf32> to vector<16x128xf32>
    %299 = arith.subf %295, %298 : vector<16x128xf32>
    %300 = math.exp %299 : vector<16x128xf32>
    %cst_102 = arith.constant dense<0.000000e+00> : vector<128xf32>
    %301 = vector.multi_reduction <add>, %300, %cst_102 [0] : vector<16x128xf32> to vector<128xf32>
    %302 = vector.shape_cast %301 : vector<128xf32> to vector<1x128xf32>
    %303 = tpu.reciprocal %302 {approx = true} : vector<1x128xf32> -> vector<1x128xf32>
    %304 = vector.broadcast %303 : vector<1x128xf32> to vector<16x128xf32>
    %305 = arith.mulf %300, %304 : vector<16x128xf32>
    %cst_103 = arith.constant dense<0.000000e+00> : vector<8x128xf32>
    %306 = tpu.matmul %294, %305, %cst_103 {dimension_numbers = #tpu.dot_dimension_numbers<[1], [0], [0], [1], [0, 0, 1, 1], [], []>} : vector<8x16xf32>, vector<16x128xf32>, vector<8x128xf32> -> vector<8x128xf32>
    %307 = vector.extract_strided_slice %251 {offsets = [8, 128], sizes = [8, 128], strides = [1, 1]} : vector<16x256xf32> to vector<8x128xf32>
    %308 = vector.extract_strided_slice %291 {offsets = [0, 8], sizes = [16, 8], strides = [1, 1]} : vector<16x16xf32> to vector<16x8xf32>
    %309 = vector.extract_strided_slice %258 {offsets = [8, 16], sizes = [8, 16], strides = [1, 1]} : vector<16x32xf32> to vector<8x16xf32>
    %cst_104 = arith.constant dense<0.000000e+00> : vector<16x128xf32>
    %310 = tpu.matmul %308, %307, %cst_104 {dimension_numbers = #tpu.dot_dimension_numbers<[1], [0], [0], [1], [0, 0, 1, 1], [], []>} : vector<16x8xf32>, vector<8x128xf32>, vector<16x128xf32> -> vector<16x128xf32>
    %cst_105 = arith.constant dense<0xFF800000> : vector<128xf32>
    %311 = vector.multi_reduction <maximumf>, %310, %cst_105 [0] : vector<16x128xf32> to vector<128xf32>
    %312 = vector.shape_cast %311 : vector<128xf32> to vector<1x128xf32>
    %313 = vector.broadcast %312 : vector<1x128xf32> to vector<16x128xf32>
    %314 = arith.subf %310, %313 : vector<16x128xf32>
    %315 = math.exp %314 : vector<16x128xf32>
    %cst_106 = arith.constant dense<0.000000e+00> : vector<128xf32>
    %316 = vector.multi_reduction <add>, %315, %cst_106 [0] : vector<16x128xf32> to vector<128xf32>
    %317 = vector.shape_cast %316 : vector<128xf32> to vector<1x128xf32>
    %318 = tpu.reciprocal %317 {approx = true} : vector<1x128xf32> -> vector<1x128xf32>
    %319 = vector.broadcast %318 : vector<1x128xf32> to vector<16x128xf32>
    %320 = arith.mulf %315, %319 : vector<16x128xf32>
    %cst_107 = arith.constant dense<0.000000e+00> : vector<8x128xf32>
    %321 = tpu.matmul %309, %320, %cst_107 {dimension_numbers = #tpu.dot_dimension_numbers<[1], [0], [0], [1], [0, 0, 1, 1], [], []>} : vector<8x16xf32>, vector<16x128xf32>, vector<8x128xf32> -> vector<8x128xf32>
    %322 = tpu.concatenate %306, %321 in 0 : vector<8x128xf32>, vector<8x128xf32> -> vector<16x128xf32>
    %323 = tpu.concatenate %290, %322 in 1 : vector<16x128xf32>, vector<16x128xf32> -> vector<16x256xf32>
    %c48 = arith.constant 48 : index
    %c0_108 = arith.constant 0 : index
    %324 = vector.load %arg4[%c48, %c0_108] : memref<168x128xf32, #tpu.memory_space<vmem>>, vector<8x16xf32>
    %cst_109 = arith.constant dense<0.000000e+00> : vector<8x256xf32>
    %325 = tpu.matmul %324, %323, %cst_109 {dimension_numbers = #tpu.dot_dimension_numbers<[1], [0], [0], [1], [0, 0, 1, 1], [], []>} : vector<8x16xf32>, vector<16x256xf32>, vector<8x256xf32> -> vector<8x256xf32>
    %c0_110 = arith.constant 0 : index
    %c8_111 = arith.constant 8 : index
    %326 = vector.load %arg3[%c0_110, %c8_111] : memref<16x27xf32, #tpu.memory_space<vmem>>, vector<8x1xf32>
    %327 = vector.broadcast %326 : vector<8x1xf32> to vector<8x256xf32>
    %328 = arith.addf %325, %327 : vector<8x256xf32>
    %c2_i32_112 = arith.constant 2 : i32
    %329 = tpu.dynamic_rotate %328 by %c2_i32_112 dim 1 : vector<8x256xf32>, i32 -> vector<8x256xf32>
    %cst_113 = arith.constant 0.000000e+00 : f32
    %330 = vector.shape_cast %3 : vector<1x256xi1> to vector<1x256xi1>
    %331 = vector.broadcast %330 : vector<1x256xi1> to vector<8x256xi1>
    %332 = vector.broadcast %cst_113 : f32 to vector<8x256xf32>
    %333 = arith.select %331, %329, %332 : vector<8x256xi1>, vector<8x256xf32>
    %c1_i32_114 = arith.constant 1 : i32
    %334 = tpu.dynamic_rotate %328 by %c1_i32_114 dim 1 : vector<8x256xf32>, i32 -> vector<8x256xf32>
    %cst_115 = arith.constant 0.000000e+00 : f32
    %335 = vector.shape_cast %5 : vector<1x256xi1> to vector<1x256xi1>
    %336 = vector.broadcast %335 : vector<1x256xi1> to vector<8x256xi1>
    %337 = vector.broadcast %cst_115 : f32 to vector<8x256xf32>
    %338 = arith.select %336, %334, %337 : vector<8x256xi1>, vector<8x256xf32>
    %c255_i32_116 = arith.constant 255 : i32
    %339 = tpu.dynamic_rotate %328 by %c255_i32_116 dim 1 : vector<8x256xf32>, i32 -> vector<8x256xf32>
    %cst_117 = arith.constant 0.000000e+00 : f32
    %340 = vector.shape_cast %7 : vector<1x256xi1> to vector<1x256xi1>
    %341 = vector.broadcast %340 : vector<1x256xi1> to vector<8x256xi1>
    %342 = vector.broadcast %cst_117 : f32 to vector<8x256xf32>
    %343 = arith.select %341, %339, %342 : vector<8x256xi1>, vector<8x256xf32>
    %c254_i32_118 = arith.constant 254 : i32
    %344 = tpu.dynamic_rotate %328 by %c254_i32_118 dim 1 : vector<8x256xf32>, i32 -> vector<8x256xf32>
    %cst_119 = arith.constant 0.000000e+00 : f32
    %345 = vector.shape_cast %9 : vector<1x256xi1> to vector<1x256xi1>
    %346 = vector.broadcast %345 : vector<1x256xi1> to vector<8x256xi1>
    %347 = vector.broadcast %cst_119 : f32 to vector<8x256xf32>
    %348 = arith.select %346, %344, %347 : vector<8x256xi1>, vector<8x256xf32>
    %349 = tpu.concatenate %333, %338, %328, %343, %348 in 0 : vector<8x256xf32>, vector<8x256xf32>, vector<8x256xf32>, vector<8x256xf32>, vector<8x256xf32> -> vector<40x256xf32>
    %c24 = arith.constant 24 : index
    %c0_120 = arith.constant 0 : index
    %350 = vector.load %arg2[%c24, %c0_120] : memref<56x80xf32, #tpu.memory_space<vmem>>, vector<8x40xf32>
    %cst_121 = arith.constant dense<0.000000e+00> : vector<8x256xf32>
    %351 = tpu.matmul %350, %349, %cst_121 {dimension_numbers = #tpu.dot_dimension_numbers<[1], [0], [0], [1], [0, 0, 1, 1], [], []>} : vector<8x40xf32>, vector<40x256xf32>, vector<8x256xf32> -> vector<8x256xf32>
    %c0_122 = arith.constant 0 : index
    %c9 = arith.constant 9 : index
    %352 = vector.load %arg3[%c0_122, %c9] : memref<16x27xf32, #tpu.memory_space<vmem>>, vector<8x1xf32>
    %353 = vector.broadcast %352 : vector<8x1xf32> to vector<8x256xf32>
    %354 = arith.addf %351, %353 : vector<8x256xf32>
    %355 = vector.extract_strided_slice %354 {offsets = [0, 0], sizes = [8, 128], strides = [1, 1]} : vector<8x256xf32> to vector<8x128xf32>
    %356 = vector.shape_cast %355 : vector<8x128xf32> to vector<1x8x128xf32>
    %cst_123 = arith.constant dense<0.000000e+00> : vector<1xf32>
    %357 = vector.multi_reduction <add>, %356, %cst_123 [1, 2] : vector<1x8x128xf32> to vector<1xf32>
    %358 = vector.shape_cast %357 : vector<1xf32> to vector<1x1x1xf32>
    %359 = vector.extract %358[0, 0, 0] : f32 from vector<1x1x1xf32>
    %cst_124 = arith.constant 9.765625E-4 : f32
    %360 = arith.mulf %359, %cst_124 : f32
    %361 = arith.mulf %355, %355 : vector<8x128xf32>
    %362 = vector.shape_cast %361 : vector<8x128xf32> to vector<1x8x128xf32>
    %cst_125 = arith.constant dense<0.000000e+00> : vector<1xf32>
    %363 = vector.multi_reduction <add>, %362, %cst_125 [1, 2] : vector<1x8x128xf32> to vector<1xf32>
    %364 = vector.shape_cast %363 : vector<1xf32> to vector<1x1x1xf32>
    %365 = vector.extract %364[0, 0, 0] : f32 from vector<1x1x1xf32>
    %cst_126 = arith.constant 9.765625E-4 : f32
    %366 = arith.mulf %365, %cst_126 : f32
    %367 = arith.mulf %360, %360 : f32
    %368 = arith.subf %366, %367 : f32
    %cst_127 = arith.constant 0.000000e+00 : f32
    %369 = arith.maximumf %368, %cst_127 : f32
    %370 = vector.broadcast %360 : f32 to vector<8x128xf32>
    %371 = arith.subf %355, %370 : vector<8x128xf32>
    %cst_128 = arith.constant 9.99999974E-6 : f32
    %372 = arith.addf %369, %cst_128 : f32
    %373 = math.rsqrt %372 : f32
    %374 = vector.broadcast %373 : f32 to vector<8x128xf32>
    %375 = arith.mulf %371, %374 : vector<8x128xf32>
    %376 = vector.extract_strided_slice %354 {offsets = [0, 128], sizes = [8, 128], strides = [1, 1]} : vector<8x256xf32> to vector<8x128xf32>
    %377 = vector.shape_cast %376 : vector<8x128xf32> to vector<1x8x128xf32>
    %cst_129 = arith.constant dense<0.000000e+00> : vector<1xf32>
    %378 = vector.multi_reduction <add>, %377, %cst_129 [1, 2] : vector<1x8x128xf32> to vector<1xf32>
    %379 = vector.shape_cast %378 : vector<1xf32> to vector<1x1x1xf32>
    %380 = vector.extract %379[0, 0, 0] : f32 from vector<1x1x1xf32>
    %cst_130 = arith.constant 9.765625E-4 : f32
    %381 = arith.mulf %380, %cst_130 : f32
    %382 = arith.mulf %376, %376 : vector<8x128xf32>
    %383 = vector.shape_cast %382 : vector<8x128xf32> to vector<1x8x128xf32>
    %cst_131 = arith.constant dense<0.000000e+00> : vector<1xf32>
    %384 = vector.multi_reduction <add>, %383, %cst_131 [1, 2] : vector<1x8x128xf32> to vector<1xf32>
    %385 = vector.shape_cast %384 : vector<1xf32> to vector<1x1x1xf32>
    %386 = vector.extract %385[0, 0, 0] : f32 from vector<1x1x1xf32>
    %cst_132 = arith.constant 9.765625E-4 : f32
    %387 = arith.mulf %386, %cst_132 : f32
    %388 = arith.mulf %381, %381 : f32
    %389 = arith.subf %387, %388 : f32
    %cst_133 = arith.constant 0.000000e+00 : f32
    %390 = arith.maximumf %389, %cst_133 : f32
    %391 = vector.broadcast %381 : f32 to vector<8x128xf32>
    %392 = arith.subf %376, %391 : vector<8x128xf32>
    %cst_134 = arith.constant 9.99999974E-6 : f32
    %393 = arith.addf %390, %cst_134 : f32
    %394 = math.rsqrt %393 : f32
    %395 = vector.broadcast %394 : f32 to vector<8x128xf32>
    %396 = arith.mulf %392, %395 : vector<8x128xf32>
    %397 = tpu.concatenate %375, %396 in 1 : vector<8x128xf32>, vector<8x128xf32> -> vector<8x256xf32>
    %c0_135 = arith.constant 0 : index
    %c10 = arith.constant 10 : index
    %398 = vector.load %arg3[%c0_135, %c10] : memref<16x27xf32, #tpu.memory_space<vmem>>, vector<8x1xf32>
    %c0_136 = arith.constant 0 : index
    %c11 = arith.constant 11 : index
    %399 = vector.load %arg3[%c0_136, %c11] : memref<16x27xf32, #tpu.memory_space<vmem>>, vector<8x1xf32>
    %400 = vector.broadcast %398 : vector<8x1xf32> to vector<8x256xf32>
    %401 = arith.mulf %397, %400 : vector<8x256xf32>
    %402 = vector.broadcast %399 : vector<8x1xf32> to vector<8x256xf32>
    %403 = arith.addf %401, %402 : vector<8x256xf32>
    %cst_137 = arith.constant 5.000000e-01 : f32
    %404 = vector.broadcast %cst_137 : f32 to vector<8x256xf32>
    %405 = arith.mulf %404, %403 : vector<8x256xf32>
    %cst_138 = arith.constant 0.707106769 : f32
    %406 = vector.broadcast %cst_138 : f32 to vector<8x256xf32>
    %407 = arith.mulf %403, %406 : vector<8x256xf32>
    %cst_139 = arith.constant 0.000000e+00 : f32
    %408 = vector.broadcast %cst_139 : f32 to vector<8x256xf32>
    %409 = arith.cmpf oge, %407, %408 : vector<8x256xf32>
    %cst_140 = arith.constant 1.000000e+00 : f32
    %cst_141 = arith.constant -1.000000e+00 : f32
    %410 = vector.broadcast %cst_140 : f32 to vector<8x256xf32>
    %411 = vector.broadcast %cst_141 : f32 to vector<8x256xf32>
    %412 = arith.select %409, %410, %411 : vector<8x256xi1>, vector<8x256xf32>
    %413 = math.absf %407 : vector<8x256xf32>
    %cst_142 = arith.constant 0.327591091 : f32
    %414 = vector.broadcast %cst_142 : f32 to vector<8x256xf32>
    %415 = arith.mulf %414, %413 : vector<8x256xf32>
    %cst_143 = arith.constant 1.000000e+00 : f32
    %416 = vector.broadcast %cst_143 : f32 to vector<8x256xf32>
    %417 = arith.addf %416, %415 : vector<8x256xf32>
    %418 = tpu.reciprocal %417 : vector<8x256xf32> -> vector<8x256xf32>
    %cst_144 = arith.constant 1.06140542 : f32
    %419 = vector.broadcast %cst_144 : f32 to vector<8x256xf32>
    %420 = arith.mulf %419, %418 : vector<8x256xf32>
    %cst_145 = arith.constant -1.45315206 : f32
    %421 = vector.broadcast %cst_145 : f32 to vector<8x256xf32>
    %422 = arith.addf %420, %421 : vector<8x256xf32>
    %423 = arith.mulf %422, %418 : vector<8x256xf32>
    %cst_146 = arith.constant 1.42141378 : f32
    %424 = vector.broadcast %cst_146 : f32 to vector<8x256xf32>
    %425 = arith.addf %423, %424 : vector<8x256xf32>
    %426 = arith.mulf %425, %418 : vector<8x256xf32>
    %cst_147 = arith.constant -0.284496725 : f32
    %427 = vector.broadcast %cst_147 : f32 to vector<8x256xf32>
    %428 = arith.addf %426, %427 : vector<8x256xf32>
    %429 = arith.mulf %428, %418 : vector<8x256xf32>
    %cst_148 = arith.constant 0.254829586 : f32
    %430 = vector.broadcast %cst_148 : f32 to vector<8x256xf32>
    %431 = arith.addf %429, %430 : vector<8x256xf32>
    %432 = arith.mulf %431, %418 : vector<8x256xf32>
    %cst_149 = arith.constant 0.000000e+00 : f32
    %433 = vector.broadcast %cst_149 : f32 to vector<8x256xf32>
    %434 = arith.subf %433, %413 : vector<8x256xf32>
    %435 = arith.mulf %434, %413 : vector<8x256xf32>
    %436 = math.exp %435 : vector<8x256xf32>
    %437 = arith.mulf %432, %436 : vector<8x256xf32>
    %cst_150 = arith.constant 1.000000e+00 : f32
    %438 = vector.broadcast %cst_150 : f32 to vector<8x256xf32>
    %439 = arith.subf %438, %437 : vector<8x256xf32>
    %440 = arith.mulf %412, %439 : vector<8x256xf32>
    %cst_151 = arith.constant 1.000000e+00 : f32
    %441 = vector.broadcast %cst_151 : f32 to vector<8x256xf32>
    %442 = arith.addf %441, %440 : vector<8x256xf32>
    %443 = arith.mulf %405, %442 : vector<8x256xf32>
    %c2_i32_152 = arith.constant 2 : i32
    %444 = tpu.dynamic_rotate %443 by %c2_i32_152 dim 1 : vector<8x256xf32>, i32 -> vector<8x256xf32>
    %cst_153 = arith.constant 0.000000e+00 : f32
    %445 = vector.shape_cast %3 : vector<1x256xi1> to vector<1x256xi1>
    %446 = vector.broadcast %445 : vector<1x256xi1> to vector<8x256xi1>
    %447 = vector.broadcast %cst_153 : f32 to vector<8x256xf32>
    %448 = arith.select %446, %444, %447 : vector<8x256xi1>, vector<8x256xf32>
    %c1_i32_154 = arith.constant 1 : i32
    %449 = tpu.dynamic_rotate %443 by %c1_i32_154 dim 1 : vector<8x256xf32>, i32 -> vector<8x256xf32>
    %cst_155 = arith.constant 0.000000e+00 : f32
    %450 = vector.shape_cast %5 : vector<1x256xi1> to vector<1x256xi1>
    %451 = vector.broadcast %450 : vector<1x256xi1> to vector<8x256xi1>
    %452 = vector.broadcast %cst_155 : f32 to vector<8x256xf32>
    %453 = arith.select %451, %449, %452 : vector<8x256xi1>, vector<8x256xf32>
    %c255_i32_156 = arith.constant 255 : i32
    %454 = tpu.dynamic_rotate %443 by %c255_i32_156 dim 1 : vector<8x256xf32>, i32 -> vector<8x256xf32>
    %cst_157 = arith.constant 0.000000e+00 : f32
    %455 = vector.shape_cast %7 : vector<1x256xi1> to vector<1x256xi1>
    %456 = vector.broadcast %455 : vector<1x256xi1> to vector<8x256xi1>
    %457 = vector.broadcast %cst_157 : f32 to vector<8x256xf32>
    %458 = arith.select %456, %454, %457 : vector<8x256xi1>, vector<8x256xf32>
    %c254_i32_158 = arith.constant 254 : i32
    %459 = tpu.dynamic_rotate %443 by %c254_i32_158 dim 1 : vector<8x256xf32>, i32 -> vector<8x256xf32>
    %cst_159 = arith.constant 0.000000e+00 : f32
    %460 = vector.shape_cast %9 : vector<1x256xi1> to vector<1x256xi1>
    %461 = vector.broadcast %460 : vector<1x256xi1> to vector<8x256xi1>
    %462 = vector.broadcast %cst_159 : f32 to vector<8x256xf32>
    %463 = arith.select %461, %459, %462 : vector<8x256xi1>, vector<8x256xf32>
    %464 = tpu.concatenate %448, %453, %443, %458, %463 in 0 : vector<8x256xf32>, vector<8x256xf32>, vector<8x256xf32>, vector<8x256xf32>, vector<8x256xf32> -> vector<40x256xf32>
    %c32_160 = arith.constant 32 : index
    %c0_161 = arith.constant 0 : index
    %465 = vector.load %arg2[%c32_160, %c0_161] : memref<56x80xf32, #tpu.memory_space<vmem>>, vector<8x40xf32>
    %cst_162 = arith.constant dense<0.000000e+00> : vector<8x256xf32>
    %466 = tpu.matmul %465, %464, %cst_162 {dimension_numbers = #tpu.dot_dimension_numbers<[1], [0], [0], [1], [0, 0, 1, 1], [], []>} : vector<8x40xf32>, vector<40x256xf32>, vector<8x256xf32> -> vector<8x256xf32>
    %c0_163 = arith.constant 0 : index
    %c12 = arith.constant 12 : index
    %467 = vector.load %arg3[%c0_163, %c12] : memref<16x27xf32, #tpu.memory_space<vmem>>, vector<8x1xf32>
    %468 = vector.broadcast %467 : vector<8x1xf32> to vector<8x256xf32>
    %469 = arith.addf %466, %468 : vector<8x256xf32>
    %470 = vector.extract_strided_slice %469 {offsets = [0, 0], sizes = [8, 128], strides = [1, 1]} : vector<8x256xf32> to vector<8x128xf32>
    %471 = vector.shape_cast %470 : vector<8x128xf32> to vector<1x8x128xf32>
    %cst_164 = arith.constant dense<0.000000e+00> : vector<1xf32>
    %472 = vector.multi_reduction <add>, %471, %cst_164 [1, 2] : vector<1x8x128xf32> to vector<1xf32>
    %473 = vector.shape_cast %472 : vector<1xf32> to vector<1x1x1xf32>
    %474 = vector.extract %473[0, 0, 0] : f32 from vector<1x1x1xf32>
    %cst_165 = arith.constant 9.765625E-4 : f32
    %475 = arith.mulf %474, %cst_165 : f32
    %476 = arith.mulf %470, %470 : vector<8x128xf32>
    %477 = vector.shape_cast %476 : vector<8x128xf32> to vector<1x8x128xf32>
    %cst_166 = arith.constant dense<0.000000e+00> : vector<1xf32>
    %478 = vector.multi_reduction <add>, %477, %cst_166 [1, 2] : vector<1x8x128xf32> to vector<1xf32>
    %479 = vector.shape_cast %478 : vector<1xf32> to vector<1x1x1xf32>
    %480 = vector.extract %479[0, 0, 0] : f32 from vector<1x1x1xf32>
    %cst_167 = arith.constant 9.765625E-4 : f32
    %481 = arith.mulf %480, %cst_167 : f32
    %482 = arith.mulf %475, %475 : f32
    %483 = arith.subf %481, %482 : f32
    %cst_168 = arith.constant 0.000000e+00 : f32
    %484 = arith.maximumf %483, %cst_168 : f32
    %485 = vector.broadcast %475 : f32 to vector<8x128xf32>
    %486 = arith.subf %470, %485 : vector<8x128xf32>
    %cst_169 = arith.constant 9.99999974E-6 : f32
    %487 = arith.addf %484, %cst_169 : f32
    %488 = math.rsqrt %487 : f32
    %489 = vector.broadcast %488 : f32 to vector<8x128xf32>
    %490 = arith.mulf %486, %489 : vector<8x128xf32>
    %491 = vector.extract_strided_slice %469 {offsets = [0, 128], sizes = [8, 128], strides = [1, 1]} : vector<8x256xf32> to vector<8x128xf32>
    %492 = vector.shape_cast %491 : vector<8x128xf32> to vector<1x8x128xf32>
    %cst_170 = arith.constant dense<0.000000e+00> : vector<1xf32>
    %493 = vector.multi_reduction <add>, %492, %cst_170 [1, 2] : vector<1x8x128xf32> to vector<1xf32>
    %494 = vector.shape_cast %493 : vector<1xf32> to vector<1x1x1xf32>
    %495 = vector.extract %494[0, 0, 0] : f32 from vector<1x1x1xf32>
    %cst_171 = arith.constant 9.765625E-4 : f32
    %496 = arith.mulf %495, %cst_171 : f32
    %497 = arith.mulf %491, %491 : vector<8x128xf32>
    %498 = vector.shape_cast %497 : vector<8x128xf32> to vector<1x8x128xf32>
    %cst_172 = arith.constant dense<0.000000e+00> : vector<1xf32>
    %499 = vector.multi_reduction <add>, %498, %cst_172 [1, 2] : vector<1x8x128xf32> to vector<1xf32>
    %500 = vector.shape_cast %499 : vector<1xf32> to vector<1x1x1xf32>
    %501 = vector.extract %500[0, 0, 0] : f32 from vector<1x1x1xf32>
    %cst_173 = arith.constant 9.765625E-4 : f32
    %502 = arith.mulf %501, %cst_173 : f32
    %503 = arith.mulf %496, %496 : f32
    %504 = arith.subf %502, %503 : f32
    %cst_174 = arith.constant 0.000000e+00 : f32
    %505 = arith.maximumf %504, %cst_174 : f32
    %506 = vector.broadcast %496 : f32 to vector<8x128xf32>
    %507 = arith.subf %491, %506 : vector<8x128xf32>
    %cst_175 = arith.constant 9.99999974E-6 : f32
    %508 = arith.addf %505, %cst_175 : f32
    %509 = math.rsqrt %508 : f32
    %510 = vector.broadcast %509 : f32 to vector<8x128xf32>
    %511 = arith.mulf %507, %510 : vector<8x128xf32>
    %512 = tpu.concatenate %490, %511 in 1 : vector<8x128xf32>, vector<8x128xf32> -> vector<8x256xf32>
    %c0_176 = arith.constant 0 : index
    %c13 = arith.constant 13 : index
    %513 = vector.load %arg3[%c0_176, %c13] : memref<16x27xf32, #tpu.memory_space<vmem>>, vector<8x1xf32>
    %c0_177 = arith.constant 0 : index
    %c14 = arith.constant 14 : index
    %514 = vector.load %arg3[%c0_177, %c14] : memref<16x27xf32, #tpu.memory_space<vmem>>, vector<8x1xf32>
    %515 = vector.broadcast %513 : vector<8x1xf32> to vector<8x256xf32>
    %516 = arith.mulf %512, %515 : vector<8x256xf32>
    %517 = vector.broadcast %514 : vector<8x1xf32> to vector<8x256xf32>
    %518 = arith.addf %516, %517 : vector<8x256xf32>
    %cst_178 = arith.constant 5.000000e-01 : f32
    %519 = vector.broadcast %cst_178 : f32 to vector<8x256xf32>
    %520 = arith.mulf %519, %518 : vector<8x256xf32>
    %cst_179 = arith.constant 0.707106769 : f32
    %521 = vector.broadcast %cst_179 : f32 to vector<8x256xf32>
    %522 = arith.mulf %518, %521 : vector<8x256xf32>
    %cst_180 = arith.constant 0.000000e+00 : f32
    %523 = vector.broadcast %cst_180 : f32 to vector<8x256xf32>
    %524 = arith.cmpf oge, %522, %523 : vector<8x256xf32>
    %cst_181 = arith.constant 1.000000e+00 : f32
    %cst_182 = arith.constant -1.000000e+00 : f32
    %525 = vector.broadcast %cst_181 : f32 to vector<8x256xf32>
    %526 = vector.broadcast %cst_182 : f32 to vector<8x256xf32>
    %527 = arith.select %524, %525, %526 : vector<8x256xi1>, vector<8x256xf32>
    %528 = math.absf %522 : vector<8x256xf32>
    %cst_183 = arith.constant 0.327591091 : f32
    %529 = vector.broadcast %cst_183 : f32 to vector<8x256xf32>
    %530 = arith.mulf %529, %528 : vector<8x256xf32>
    %cst_184 = arith.constant 1.000000e+00 : f32
    %531 = vector.broadcast %cst_184 : f32 to vector<8x256xf32>
    %532 = arith.addf %531, %530 : vector<8x256xf32>
    %533 = tpu.reciprocal %532 : vector<8x256xf32> -> vector<8x256xf32>
    %cst_185 = arith.constant 1.06140542 : f32
    %534 = vector.broadcast %cst_185 : f32 to vector<8x256xf32>
    %535 = arith.mulf %534, %533 : vector<8x256xf32>
    %cst_186 = arith.constant -1.45315206 : f32
    %536 = vector.broadcast %cst_186 : f32 to vector<8x256xf32>
    %537 = arith.addf %535, %536 : vector<8x256xf32>
    %538 = arith.mulf %537, %533 : vector<8x256xf32>
    %cst_187 = arith.constant 1.42141378 : f32
    %539 = vector.broadcast %cst_187 : f32 to vector<8x256xf32>
    %540 = arith.addf %538, %539 : vector<8x256xf32>
    %541 = arith.mulf %540, %533 : vector<8x256xf32>
    %cst_188 = arith.constant -0.284496725 : f32
    %542 = vector.broadcast %cst_188 : f32 to vector<8x256xf32>
    %543 = arith.addf %541, %542 : vector<8x256xf32>
    %544 = arith.mulf %543, %533 : vector<8x256xf32>
    %cst_189 = arith.constant 0.254829586 : f32
    %545 = vector.broadcast %cst_189 : f32 to vector<8x256xf32>
    %546 = arith.addf %544, %545 : vector<8x256xf32>
    %547 = arith.mulf %546, %533 : vector<8x256xf32>
    %cst_190 = arith.constant 0.000000e+00 : f32
    %548 = vector.broadcast %cst_190 : f32 to vector<8x256xf32>
    %549 = arith.subf %548, %528 : vector<8x256xf32>
    %550 = arith.mulf %549, %528 : vector<8x256xf32>
    %551 = math.exp %550 : vector<8x256xf32>
    %552 = arith.mulf %547, %551 : vector<8x256xf32>
    %cst_191 = arith.constant 1.000000e+00 : f32
    %553 = vector.broadcast %cst_191 : f32 to vector<8x256xf32>
    %554 = arith.subf %553, %552 : vector<8x256xf32>
    %555 = arith.mulf %527, %554 : vector<8x256xf32>
    %cst_192 = arith.constant 1.000000e+00 : f32
    %556 = vector.broadcast %cst_192 : f32 to vector<8x256xf32>
    %557 = arith.addf %556, %555 : vector<8x256xf32>
    %558 = arith.mulf %520, %557 : vector<8x256xf32>
    %559 = arith.addf %558, %328 : vector<8x256xf32>
    %c56 = arith.constant 56 : index
    %c0_193 = arith.constant 0 : index
    %560 = vector.load %arg4[%c56, %c0_193] : memref<168x128xf32, #tpu.memory_space<vmem>>, vector<16x8xf32>
    %cst_194 = arith.constant dense<0.000000e+00> : vector<16x256xf32>
    %561 = tpu.matmul %560, %559, %cst_194 {dimension_numbers = #tpu.dot_dimension_numbers<[1], [0], [0], [1], [0, 0, 1, 1], [], []>} : vector<16x8xf32>, vector<8x256xf32>, vector<16x256xf32> -> vector<16x256xf32>
    %c0_195 = arith.constant 0 : index
    %c15 = arith.constant 15 : index
    %562 = vector.load %arg3[%c0_195, %c15] : memref<16x27xf32, #tpu.memory_space<vmem>>, vector<16x1xf32>
    %563 = vector.broadcast %562 : vector<16x1xf32> to vector<16x256xf32>
    %564 = arith.addf %561, %563 : vector<16x256xf32>
    %c72 = arith.constant 72 : index
    %c0_196 = arith.constant 0 : index
    %565 = vector.load %arg4[%c72, %c0_196] : memref<168x128xf32, #tpu.memory_space<vmem>>, vector<16x128xf32>
    %cst_197 = arith.constant dense<0.000000e+00> : vector<32x16xf32>
    %566 = tpu.matmul %13, %565, %cst_197 {dimension_numbers = #tpu.dot_dimension_numbers<[1], [1], [0], [0], [0, 0, 1, 0], [], []>} : vector<32x128xf32>, vector<16x128xf32>, vector<32x16xf32> -> vector<32x16xf32>
    %c88 = arith.constant 88 : index
    %c0_198 = arith.constant 0 : index
    %567 = vector.load %arg4[%c88, %c0_198] : memref<168x128xf32, #tpu.memory_space<vmem>>, vector<16x128xf32>
    %cst_199 = arith.constant dense<0.000000e+00> : vector<16x32xf32>
    %568 = tpu.matmul %567, %13, %cst_199 {dimension_numbers = #tpu.dot_dimension_numbers<[1], [1], [0], [0], [0, 0, 1, 0], [], []>} : vector<16x128xf32>, vector<32x128xf32>, vector<16x32xf32> -> vector<16x32xf32>
    %c0_200 = arith.constant 0 : index
    %c16_201 = arith.constant 16 : index
    %569 = vector.load %arg3[%c0_200, %c16_201] : memref<16x27xf32, #tpu.memory_space<vmem>>, vector<16x1xf32>
    %570 = vector.broadcast %569 : vector<16x1xf32> to vector<16x32xf32>
    %571 = arith.addf %568, %570 : vector<16x32xf32>
    %572 = vector.extract_strided_slice %566 {offsets = [0, 0], sizes = [16, 16], strides = [1, 1]} : vector<32x16xf32> to vector<16x16xf32>
    %573 = vector.extract_strided_slice %564 {offsets = [0, 0], sizes = [8, 128], strides = [1, 1]} : vector<16x256xf32> to vector<8x128xf32>
    %574 = vector.extract_strided_slice %572 {offsets = [0, 0], sizes = [16, 8], strides = [1, 1]} : vector<16x16xf32> to vector<16x8xf32>
    %575 = vector.extract_strided_slice %571 {offsets = [0, 0], sizes = [8, 16], strides = [1, 1]} : vector<16x32xf32> to vector<8x16xf32>
    %cst_202 = arith.constant dense<0.000000e+00> : vector<16x128xf32>
    %576 = tpu.matmul %574, %573, %cst_202 {dimension_numbers = #tpu.dot_dimension_numbers<[1], [0], [0], [1], [0, 0, 1, 1], [], []>} : vector<16x8xf32>, vector<8x128xf32>, vector<16x128xf32> -> vector<16x128xf32>
    %cst_203 = arith.constant dense<0xFF800000> : vector<128xf32>
    %577 = vector.multi_reduction <maximumf>, %576, %cst_203 [0] : vector<16x128xf32> to vector<128xf32>
    %578 = vector.shape_cast %577 : vector<128xf32> to vector<1x128xf32>
    %579 = vector.broadcast %578 : vector<1x128xf32> to vector<16x128xf32>
    %580 = arith.subf %576, %579 : vector<16x128xf32>
    %581 = math.exp %580 : vector<16x128xf32>
    %cst_204 = arith.constant dense<0.000000e+00> : vector<128xf32>
    %582 = vector.multi_reduction <add>, %581, %cst_204 [0] : vector<16x128xf32> to vector<128xf32>
    %583 = vector.shape_cast %582 : vector<128xf32> to vector<1x128xf32>
    %584 = tpu.reciprocal %583 {approx = true} : vector<1x128xf32> -> vector<1x128xf32>
    %585 = vector.broadcast %584 : vector<1x128xf32> to vector<16x128xf32>
    %586 = arith.mulf %581, %585 : vector<16x128xf32>
    %cst_205 = arith.constant dense<0.000000e+00> : vector<8x128xf32>
    %587 = tpu.matmul %575, %586, %cst_205 {dimension_numbers = #tpu.dot_dimension_numbers<[1], [0], [0], [1], [0, 0, 1, 1], [], []>} : vector<8x16xf32>, vector<16x128xf32>, vector<8x128xf32> -> vector<8x128xf32>
    %588 = vector.extract_strided_slice %564 {offsets = [8, 0], sizes = [8, 128], strides = [1, 1]} : vector<16x256xf32> to vector<8x128xf32>
    %589 = vector.extract_strided_slice %572 {offsets = [0, 8], sizes = [16, 8], strides = [1, 1]} : vector<16x16xf32> to vector<16x8xf32>
    %590 = vector.extract_strided_slice %571 {offsets = [8, 0], sizes = [8, 16], strides = [1, 1]} : vector<16x32xf32> to vector<8x16xf32>
    %cst_206 = arith.constant dense<0.000000e+00> : vector<16x128xf32>
    %591 = tpu.matmul %589, %588, %cst_206 {dimension_numbers = #tpu.dot_dimension_numbers<[1], [0], [0], [1], [0, 0, 1, 1], [], []>} : vector<16x8xf32>, vector<8x128xf32>, vector<16x128xf32> -> vector<16x128xf32>
    %cst_207 = arith.constant dense<0xFF800000> : vector<128xf32>
    %592 = vector.multi_reduction <maximumf>, %591, %cst_207 [0] : vector<16x128xf32> to vector<128xf32>
    %593 = vector.shape_cast %592 : vector<128xf32> to vector<1x128xf32>
    %594 = vector.broadcast %593 : vector<1x128xf32> to vector<16x128xf32>
    %595 = arith.subf %591, %594 : vector<16x128xf32>
    %596 = math.exp %595 : vector<16x128xf32>
    %cst_208 = arith.constant dense<0.000000e+00> : vector<128xf32>
    %597 = vector.multi_reduction <add>, %596, %cst_208 [0] : vector<16x128xf32> to vector<128xf32>
    %598 = vector.shape_cast %597 : vector<128xf32> to vector<1x128xf32>
    %599 = tpu.reciprocal %598 {approx = true} : vector<1x128xf32> -> vector<1x128xf32>
    %600 = vector.broadcast %599 : vector<1x128xf32> to vector<16x128xf32>
    %601 = arith.mulf %596, %600 : vector<16x128xf32>
    %cst_209 = arith.constant dense<0.000000e+00> : vector<8x128xf32>
    %602 = tpu.matmul %590, %601, %cst_209 {dimension_numbers = #tpu.dot_dimension_numbers<[1], [0], [0], [1], [0, 0, 1, 1], [], []>} : vector<8x16xf32>, vector<16x128xf32>, vector<8x128xf32> -> vector<8x128xf32>
    %603 = tpu.concatenate %587, %602 in 0 : vector<8x128xf32>, vector<8x128xf32> -> vector<16x128xf32>
    %604 = vector.extract_strided_slice %566 {offsets = [16, 0], sizes = [16, 16], strides = [1, 1]} : vector<32x16xf32> to vector<16x16xf32>
    %605 = vector.extract_strided_slice %564 {offsets = [0, 128], sizes = [8, 128], strides = [1, 1]} : vector<16x256xf32> to vector<8x128xf32>
    %606 = vector.extract_strided_slice %604 {offsets = [0, 0], sizes = [16, 8], strides = [1, 1]} : vector<16x16xf32> to vector<16x8xf32>
    %607 = vector.extract_strided_slice %571 {offsets = [0, 16], sizes = [8, 16], strides = [1, 1]} : vector<16x32xf32> to vector<8x16xf32>
    %cst_210 = arith.constant dense<0.000000e+00> : vector<16x128xf32>
    %608 = tpu.matmul %606, %605, %cst_210 {dimension_numbers = #tpu.dot_dimension_numbers<[1], [0], [0], [1], [0, 0, 1, 1], [], []>} : vector<16x8xf32>, vector<8x128xf32>, vector<16x128xf32> -> vector<16x128xf32>
    %cst_211 = arith.constant dense<0xFF800000> : vector<128xf32>
    %609 = vector.multi_reduction <maximumf>, %608, %cst_211 [0] : vector<16x128xf32> to vector<128xf32>
    %610 = vector.shape_cast %609 : vector<128xf32> to vector<1x128xf32>
    %611 = vector.broadcast %610 : vector<1x128xf32> to vector<16x128xf32>
    %612 = arith.subf %608, %611 : vector<16x128xf32>
    %613 = math.exp %612 : vector<16x128xf32>
    %cst_212 = arith.constant dense<0.000000e+00> : vector<128xf32>
    %614 = vector.multi_reduction <add>, %613, %cst_212 [0] : vector<16x128xf32> to vector<128xf32>
    %615 = vector.shape_cast %614 : vector<128xf32> to vector<1x128xf32>
    %616 = tpu.reciprocal %615 {approx = true} : vector<1x128xf32> -> vector<1x128xf32>
    %617 = vector.broadcast %616 : vector<1x128xf32> to vector<16x128xf32>
    %618 = arith.mulf %613, %617 : vector<16x128xf32>
    %cst_213 = arith.constant dense<0.000000e+00> : vector<8x128xf32>
    %619 = tpu.matmul %607, %618, %cst_213 {dimension_numbers = #tpu.dot_dimension_numbers<[1], [0], [0], [1], [0, 0, 1, 1], [], []>} : vector<8x16xf32>, vector<16x128xf32>, vector<8x128xf32> -> vector<8x128xf32>
    %620 = vector.extract_strided_slice %564 {offsets = [8, 128], sizes = [8, 128], strides = [1, 1]} : vector<16x256xf32> to vector<8x128xf32>
    %621 = vector.extract_strided_slice %604 {offsets = [0, 8], sizes = [16, 8], strides = [1, 1]} : vector<16x16xf32> to vector<16x8xf32>
    %622 = vector.extract_strided_slice %571 {offsets = [8, 16], sizes = [8, 16], strides = [1, 1]} : vector<16x32xf32> to vector<8x16xf32>
    %cst_214 = arith.constant dense<0.000000e+00> : vector<16x128xf32>
    %623 = tpu.matmul %621, %620, %cst_214 {dimension_numbers = #tpu.dot_dimension_numbers<[1], [0], [0], [1], [0, 0, 1, 1], [], []>} : vector<16x8xf32>, vector<8x128xf32>, vector<16x128xf32> -> vector<16x128xf32>
    %cst_215 = arith.constant dense<0xFF800000> : vector<128xf32>
    %624 = vector.multi_reduction <maximumf>, %623, %cst_215 [0] : vector<16x128xf32> to vector<128xf32>
    %625 = vector.shape_cast %624 : vector<128xf32> to vector<1x128xf32>
    %626 = vector.broadcast %625 : vector<1x128xf32> to vector<16x128xf32>
    %627 = arith.subf %623, %626 : vector<16x128xf32>
    %628 = math.exp %627 : vector<16x128xf32>
    %cst_216 = arith.constant dense<0.000000e+00> : vector<128xf32>
    %629 = vector.multi_reduction <add>, %628, %cst_216 [0] : vector<16x128xf32> to vector<128xf32>
    %630 = vector.shape_cast %629 : vector<128xf32> to vector<1x128xf32>
    %631 = tpu.reciprocal %630 {approx = true} : vector<1x128xf32> -> vector<1x128xf32>
    %632 = vector.broadcast %631 : vector<1x128xf32> to vector<16x128xf32>
    %633 = arith.mulf %628, %632 : vector<16x128xf32>
    %cst_217 = arith.constant dense<0.000000e+00> : vector<8x128xf32>
    %634 = tpu.matmul %622, %633, %cst_217 {dimension_numbers = #tpu.dot_dimension_numbers<[1], [0], [0], [1], [0, 0, 1, 1], [], []>} : vector<8x16xf32>, vector<16x128xf32>, vector<8x128xf32> -> vector<8x128xf32>
    %635 = tpu.concatenate %619, %634 in 0 : vector<8x128xf32>, vector<8x128xf32> -> vector<16x128xf32>
    %636 = tpu.concatenate %603, %635 in 1 : vector<16x128xf32>, vector<16x128xf32> -> vector<16x256xf32>
    %c104 = arith.constant 104 : index
    %c0_218 = arith.constant 0 : index
    %637 = vector.load %arg4[%c104, %c0_218] : memref<168x128xf32, #tpu.memory_space<vmem>>, vector<8x16xf32>
    %cst_219 = arith.constant dense<0.000000e+00> : vector<8x256xf32>
    %638 = tpu.matmul %637, %636, %cst_219 {dimension_numbers = #tpu.dot_dimension_numbers<[1], [0], [0], [1], [0, 0, 1, 1], [], []>} : vector<8x16xf32>, vector<16x256xf32>, vector<8x256xf32> -> vector<8x256xf32>
    %c0_220 = arith.constant 0 : index
    %c17 = arith.constant 17 : index
    %639 = vector.load %arg3[%c0_220, %c17] : memref<16x27xf32, #tpu.memory_space<vmem>>, vector<8x1xf32>
    %640 = vector.broadcast %639 : vector<8x1xf32> to vector<8x256xf32>
    %641 = arith.addf %638, %640 : vector<8x256xf32>
    %c2_i32_221 = arith.constant 2 : i32
    %642 = tpu.dynamic_rotate %641 by %c2_i32_221 dim 1 : vector<8x256xf32>, i32 -> vector<8x256xf32>
    %cst_222 = arith.constant 0.000000e+00 : f32
    %643 = vector.shape_cast %3 : vector<1x256xi1> to vector<1x256xi1>
    %644 = vector.broadcast %643 : vector<1x256xi1> to vector<8x256xi1>
    %645 = vector.broadcast %cst_222 : f32 to vector<8x256xf32>
    %646 = arith.select %644, %642, %645 : vector<8x256xi1>, vector<8x256xf32>
    %c1_i32_223 = arith.constant 1 : i32
    %647 = tpu.dynamic_rotate %641 by %c1_i32_223 dim 1 : vector<8x256xf32>, i32 -> vector<8x256xf32>
    %cst_224 = arith.constant 0.000000e+00 : f32
    %648 = vector.shape_cast %5 : vector<1x256xi1> to vector<1x256xi1>
    %649 = vector.broadcast %648 : vector<1x256xi1> to vector<8x256xi1>
    %650 = vector.broadcast %cst_224 : f32 to vector<8x256xf32>
    %651 = arith.select %649, %647, %650 : vector<8x256xi1>, vector<8x256xf32>
    %c255_i32_225 = arith.constant 255 : i32
    %652 = tpu.dynamic_rotate %641 by %c255_i32_225 dim 1 : vector<8x256xf32>, i32 -> vector<8x256xf32>
    %cst_226 = arith.constant 0.000000e+00 : f32
    %653 = vector.shape_cast %7 : vector<1x256xi1> to vector<1x256xi1>
    %654 = vector.broadcast %653 : vector<1x256xi1> to vector<8x256xi1>
    %655 = vector.broadcast %cst_226 : f32 to vector<8x256xf32>
    %656 = arith.select %654, %652, %655 : vector<8x256xi1>, vector<8x256xf32>
    %c254_i32_227 = arith.constant 254 : i32
    %657 = tpu.dynamic_rotate %641 by %c254_i32_227 dim 1 : vector<8x256xf32>, i32 -> vector<8x256xf32>
    %cst_228 = arith.constant 0.000000e+00 : f32
    %658 = vector.shape_cast %9 : vector<1x256xi1> to vector<1x256xi1>
    %659 = vector.broadcast %658 : vector<1x256xi1> to vector<8x256xi1>
    %660 = vector.broadcast %cst_228 : f32 to vector<8x256xf32>
    %661 = arith.select %659, %657, %660 : vector<8x256xi1>, vector<8x256xf32>
    %662 = tpu.concatenate %646, %651, %641, %656, %661 in 0 : vector<8x256xf32>, vector<8x256xf32>, vector<8x256xf32>, vector<8x256xf32>, vector<8x256xf32> -> vector<40x256xf32>
    %c40 = arith.constant 40 : index
    %c0_229 = arith.constant 0 : index
    %663 = vector.load %arg2[%c40, %c0_229] : memref<56x80xf32, #tpu.memory_space<vmem>>, vector<8x40xf32>
    %cst_230 = arith.constant dense<0.000000e+00> : vector<8x256xf32>
    %664 = tpu.matmul %663, %662, %cst_230 {dimension_numbers = #tpu.dot_dimension_numbers<[1], [0], [0], [1], [0, 0, 1, 1], [], []>} : vector<8x40xf32>, vector<40x256xf32>, vector<8x256xf32> -> vector<8x256xf32>
    %c0_231 = arith.constant 0 : index
    %c18 = arith.constant 18 : index
    %665 = vector.load %arg3[%c0_231, %c18] : memref<16x27xf32, #tpu.memory_space<vmem>>, vector<8x1xf32>
    %666 = vector.broadcast %665 : vector<8x1xf32> to vector<8x256xf32>
    %667 = arith.addf %664, %666 : vector<8x256xf32>
    %668 = vector.extract_strided_slice %667 {offsets = [0, 0], sizes = [8, 128], strides = [1, 1]} : vector<8x256xf32> to vector<8x128xf32>
    %669 = vector.shape_cast %668 : vector<8x128xf32> to vector<1x8x128xf32>
    %cst_232 = arith.constant dense<0.000000e+00> : vector<1xf32>
    %670 = vector.multi_reduction <add>, %669, %cst_232 [1, 2] : vector<1x8x128xf32> to vector<1xf32>
    %671 = vector.shape_cast %670 : vector<1xf32> to vector<1x1x1xf32>
    %672 = vector.extract %671[0, 0, 0] : f32 from vector<1x1x1xf32>
    %cst_233 = arith.constant 9.765625E-4 : f32
    %673 = arith.mulf %672, %cst_233 : f32
    %674 = arith.mulf %668, %668 : vector<8x128xf32>
    %675 = vector.shape_cast %674 : vector<8x128xf32> to vector<1x8x128xf32>
    %cst_234 = arith.constant dense<0.000000e+00> : vector<1xf32>
    %676 = vector.multi_reduction <add>, %675, %cst_234 [1, 2] : vector<1x8x128xf32> to vector<1xf32>
    %677 = vector.shape_cast %676 : vector<1xf32> to vector<1x1x1xf32>
    %678 = vector.extract %677[0, 0, 0] : f32 from vector<1x1x1xf32>
    %cst_235 = arith.constant 9.765625E-4 : f32
    %679 = arith.mulf %678, %cst_235 : f32
    %680 = arith.mulf %673, %673 : f32
    %681 = arith.subf %679, %680 : f32
    %cst_236 = arith.constant 0.000000e+00 : f32
    %682 = arith.maximumf %681, %cst_236 : f32
    %683 = vector.broadcast %673 : f32 to vector<8x128xf32>
    %684 = arith.subf %668, %683 : vector<8x128xf32>
    %cst_237 = arith.constant 9.99999974E-6 : f32
    %685 = arith.addf %682, %cst_237 : f32
    %686 = math.rsqrt %685 : f32
    %687 = vector.broadcast %686 : f32 to vector<8x128xf32>
    %688 = arith.mulf %684, %687 : vector<8x128xf32>
    %689 = vector.extract_strided_slice %667 {offsets = [0, 128], sizes = [8, 128], strides = [1, 1]} : vector<8x256xf32> to vector<8x128xf32>
    %690 = vector.shape_cast %689 : vector<8x128xf32> to vector<1x8x128xf32>
    %cst_238 = arith.constant dense<0.000000e+00> : vector<1xf32>
    %691 = vector.multi_reduction <add>, %690, %cst_238 [1, 2] : vector<1x8x128xf32> to vector<1xf32>
    %692 = vector.shape_cast %691 : vector<1xf32> to vector<1x1x1xf32>
    %693 = vector.extract %692[0, 0, 0] : f32 from vector<1x1x1xf32>
    %cst_239 = arith.constant 9.765625E-4 : f32
    %694 = arith.mulf %693, %cst_239 : f32
    %695 = arith.mulf %689, %689 : vector<8x128xf32>
    %696 = vector.shape_cast %695 : vector<8x128xf32> to vector<1x8x128xf32>
    %cst_240 = arith.constant dense<0.000000e+00> : vector<1xf32>
    %697 = vector.multi_reduction <add>, %696, %cst_240 [1, 2] : vector<1x8x128xf32> to vector<1xf32>
    %698 = vector.shape_cast %697 : vector<1xf32> to vector<1x1x1xf32>
    %699 = vector.extract %698[0, 0, 0] : f32 from vector<1x1x1xf32>
    %cst_241 = arith.constant 9.765625E-4 : f32
    %700 = arith.mulf %699, %cst_241 : f32
    %701 = arith.mulf %694, %694 : f32
    %702 = arith.subf %700, %701 : f32
    %cst_242 = arith.constant 0.000000e+00 : f32
    %703 = arith.maximumf %702, %cst_242 : f32
    %704 = vector.broadcast %694 : f32 to vector<8x128xf32>
    %705 = arith.subf %689, %704 : vector<8x128xf32>
    %cst_243 = arith.constant 9.99999974E-6 : f32
    %706 = arith.addf %703, %cst_243 : f32
    %707 = math.rsqrt %706 : f32
    %708 = vector.broadcast %707 : f32 to vector<8x128xf32>
    %709 = arith.mulf %705, %708 : vector<8x128xf32>
    %710 = tpu.concatenate %688, %709 in 1 : vector<8x128xf32>, vector<8x128xf32> -> vector<8x256xf32>
    %c0_244 = arith.constant 0 : index
    %c19 = arith.constant 19 : index
    %711 = vector.load %arg3[%c0_244, %c19] : memref<16x27xf32, #tpu.memory_space<vmem>>, vector<8x1xf32>
    %c0_245 = arith.constant 0 : index
    %c20 = arith.constant 20 : index
    %712 = vector.load %arg3[%c0_245, %c20] : memref<16x27xf32, #tpu.memory_space<vmem>>, vector<8x1xf32>
    %713 = vector.broadcast %711 : vector<8x1xf32> to vector<8x256xf32>
    %714 = arith.mulf %710, %713 : vector<8x256xf32>
    %715 = vector.broadcast %712 : vector<8x1xf32> to vector<8x256xf32>
    %716 = arith.addf %714, %715 : vector<8x256xf32>
    %cst_246 = arith.constant 5.000000e-01 : f32
    %717 = vector.broadcast %cst_246 : f32 to vector<8x256xf32>
    %718 = arith.mulf %717, %716 : vector<8x256xf32>
    %cst_247 = arith.constant 0.707106769 : f32
    %719 = vector.broadcast %cst_247 : f32 to vector<8x256xf32>
    %720 = arith.mulf %716, %719 : vector<8x256xf32>
    %cst_248 = arith.constant 0.000000e+00 : f32
    %721 = vector.broadcast %cst_248 : f32 to vector<8x256xf32>
    %722 = arith.cmpf oge, %720, %721 : vector<8x256xf32>
    %cst_249 = arith.constant 1.000000e+00 : f32
    %cst_250 = arith.constant -1.000000e+00 : f32
    %723 = vector.broadcast %cst_249 : f32 to vector<8x256xf32>
    %724 = vector.broadcast %cst_250 : f32 to vector<8x256xf32>
    %725 = arith.select %722, %723, %724 : vector<8x256xi1>, vector<8x256xf32>
    %726 = math.absf %720 : vector<8x256xf32>
    %cst_251 = arith.constant 0.327591091 : f32
    %727 = vector.broadcast %cst_251 : f32 to vector<8x256xf32>
    %728 = arith.mulf %727, %726 : vector<8x256xf32>
    %cst_252 = arith.constant 1.000000e+00 : f32
    %729 = vector.broadcast %cst_252 : f32 to vector<8x256xf32>
    %730 = arith.addf %729, %728 : vector<8x256xf32>
    %731 = tpu.reciprocal %730 : vector<8x256xf32> -> vector<8x256xf32>
    %cst_253 = arith.constant 1.06140542 : f32
    %732 = vector.broadcast %cst_253 : f32 to vector<8x256xf32>
    %733 = arith.mulf %732, %731 : vector<8x256xf32>
    %cst_254 = arith.constant -1.45315206 : f32
    %734 = vector.broadcast %cst_254 : f32 to vector<8x256xf32>
    %735 = arith.addf %733, %734 : vector<8x256xf32>
    %736 = arith.mulf %735, %731 : vector<8x256xf32>
    %cst_255 = arith.constant 1.42141378 : f32
    %737 = vector.broadcast %cst_255 : f32 to vector<8x256xf32>
    %738 = arith.addf %736, %737 : vector<8x256xf32>
    %739 = arith.mulf %738, %731 : vector<8x256xf32>
    %cst_256 = arith.constant -0.284496725 : f32
    %740 = vector.broadcast %cst_256 : f32 to vector<8x256xf32>
    %741 = arith.addf %739, %740 : vector<8x256xf32>
    %742 = arith.mulf %741, %731 : vector<8x256xf32>
    %cst_257 = arith.constant 0.254829586 : f32
    %743 = vector.broadcast %cst_257 : f32 to vector<8x256xf32>
    %744 = arith.addf %742, %743 : vector<8x256xf32>
    %745 = arith.mulf %744, %731 : vector<8x256xf32>
    %cst_258 = arith.constant 0.000000e+00 : f32
    %746 = vector.broadcast %cst_258 : f32 to vector<8x256xf32>
    %747 = arith.subf %746, %726 : vector<8x256xf32>
    %748 = arith.mulf %747, %726 : vector<8x256xf32>
    %749 = math.exp %748 : vector<8x256xf32>
    %750 = arith.mulf %745, %749 : vector<8x256xf32>
    %cst_259 = arith.constant 1.000000e+00 : f32
    %751 = vector.broadcast %cst_259 : f32 to vector<8x256xf32>
    %752 = arith.subf %751, %750 : vector<8x256xf32>
    %753 = arith.mulf %725, %752 : vector<8x256xf32>
    %cst_260 = arith.constant 1.000000e+00 : f32
    %754 = vector.broadcast %cst_260 : f32 to vector<8x256xf32>
    %755 = arith.addf %754, %753 : vector<8x256xf32>
    %756 = arith.mulf %718, %755 : vector<8x256xf32>
    %c2_i32_261 = arith.constant 2 : i32
    %757 = tpu.dynamic_rotate %756 by %c2_i32_261 dim 1 : vector<8x256xf32>, i32 -> vector<8x256xf32>
    %cst_262 = arith.constant 0.000000e+00 : f32
    %758 = vector.shape_cast %3 : vector<1x256xi1> to vector<1x256xi1>
    %759 = vector.broadcast %758 : vector<1x256xi1> to vector<8x256xi1>
    %760 = vector.broadcast %cst_262 : f32 to vector<8x256xf32>
    %761 = arith.select %759, %757, %760 : vector<8x256xi1>, vector<8x256xf32>
    %c1_i32_263 = arith.constant 1 : i32
    %762 = tpu.dynamic_rotate %756 by %c1_i32_263 dim 1 : vector<8x256xf32>, i32 -> vector<8x256xf32>
    %cst_264 = arith.constant 0.000000e+00 : f32
    %763 = vector.shape_cast %5 : vector<1x256xi1> to vector<1x256xi1>
    %764 = vector.broadcast %763 : vector<1x256xi1> to vector<8x256xi1>
    %765 = vector.broadcast %cst_264 : f32 to vector<8x256xf32>
    %766 = arith.select %764, %762, %765 : vector<8x256xi1>, vector<8x256xf32>
    %c255_i32_265 = arith.constant 255 : i32
    %767 = tpu.dynamic_rotate %756 by %c255_i32_265 dim 1 : vector<8x256xf32>, i32 -> vector<8x256xf32>
    %cst_266 = arith.constant 0.000000e+00 : f32
    %768 = vector.shape_cast %7 : vector<1x256xi1> to vector<1x256xi1>
    %769 = vector.broadcast %768 : vector<1x256xi1> to vector<8x256xi1>
    %770 = vector.broadcast %cst_266 : f32 to vector<8x256xf32>
    %771 = arith.select %769, %767, %770 : vector<8x256xi1>, vector<8x256xf32>
    %c254_i32_267 = arith.constant 254 : i32
    %772 = tpu.dynamic_rotate %756 by %c254_i32_267 dim 1 : vector<8x256xf32>, i32 -> vector<8x256xf32>
    %cst_268 = arith.constant 0.000000e+00 : f32
    %773 = vector.shape_cast %9 : vector<1x256xi1> to vector<1x256xi1>
    %774 = vector.broadcast %773 : vector<1x256xi1> to vector<8x256xi1>
    %775 = vector.broadcast %cst_268 : f32 to vector<8x256xf32>
    %776 = arith.select %774, %772, %775 : vector<8x256xi1>, vector<8x256xf32>
    %777 = tpu.concatenate %761, %766, %756, %771, %776 in 0 : vector<8x256xf32>, vector<8x256xf32>, vector<8x256xf32>, vector<8x256xf32>, vector<8x256xf32> -> vector<40x256xf32>
    %c48_269 = arith.constant 48 : index
    %c0_270 = arith.constant 0 : index
    %778 = vector.load %arg2[%c48_269, %c0_270] : memref<56x80xf32, #tpu.memory_space<vmem>>, vector<8x40xf32>
    %cst_271 = arith.constant dense<0.000000e+00> : vector<8x256xf32>
    %779 = tpu.matmul %778, %777, %cst_271 {dimension_numbers = #tpu.dot_dimension_numbers<[1], [0], [0], [1], [0, 0, 1, 1], [], []>} : vector<8x40xf32>, vector<40x256xf32>, vector<8x256xf32> -> vector<8x256xf32>
    %c0_272 = arith.constant 0 : index
    %c21 = arith.constant 21 : index
    %780 = vector.load %arg3[%c0_272, %c21] : memref<16x27xf32, #tpu.memory_space<vmem>>, vector<8x1xf32>
    %781 = vector.broadcast %780 : vector<8x1xf32> to vector<8x256xf32>
    %782 = arith.addf %779, %781 : vector<8x256xf32>
    %783 = vector.extract_strided_slice %782 {offsets = [0, 0], sizes = [8, 128], strides = [1, 1]} : vector<8x256xf32> to vector<8x128xf32>
    %784 = vector.shape_cast %783 : vector<8x128xf32> to vector<1x8x128xf32>
    %cst_273 = arith.constant dense<0.000000e+00> : vector<1xf32>
    %785 = vector.multi_reduction <add>, %784, %cst_273 [1, 2] : vector<1x8x128xf32> to vector<1xf32>
    %786 = vector.shape_cast %785 : vector<1xf32> to vector<1x1x1xf32>
    %787 = vector.extract %786[0, 0, 0] : f32 from vector<1x1x1xf32>
    %cst_274 = arith.constant 9.765625E-4 : f32
    %788 = arith.mulf %787, %cst_274 : f32
    %789 = arith.mulf %783, %783 : vector<8x128xf32>
    %790 = vector.shape_cast %789 : vector<8x128xf32> to vector<1x8x128xf32>
    %cst_275 = arith.constant dense<0.000000e+00> : vector<1xf32>
    %791 = vector.multi_reduction <add>, %790, %cst_275 [1, 2] : vector<1x8x128xf32> to vector<1xf32>
    %792 = vector.shape_cast %791 : vector<1xf32> to vector<1x1x1xf32>
    %793 = vector.extract %792[0, 0, 0] : f32 from vector<1x1x1xf32>
    %cst_276 = arith.constant 9.765625E-4 : f32
    %794 = arith.mulf %793, %cst_276 : f32
    %795 = arith.mulf %788, %788 : f32
    %796 = arith.subf %794, %795 : f32
    %cst_277 = arith.constant 0.000000e+00 : f32
    %797 = arith.maximumf %796, %cst_277 : f32
    %798 = vector.broadcast %788 : f32 to vector<8x128xf32>
    %799 = arith.subf %783, %798 : vector<8x128xf32>
    %cst_278 = arith.constant 9.99999974E-6 : f32
    %800 = arith.addf %797, %cst_278 : f32
    %801 = math.rsqrt %800 : f32
    %802 = vector.broadcast %801 : f32 to vector<8x128xf32>
    %803 = arith.mulf %799, %802 : vector<8x128xf32>
    %804 = vector.extract_strided_slice %782 {offsets = [0, 128], sizes = [8, 128], strides = [1, 1]} : vector<8x256xf32> to vector<8x128xf32>
    %805 = vector.shape_cast %804 : vector<8x128xf32> to vector<1x8x128xf32>
    %cst_279 = arith.constant dense<0.000000e+00> : vector<1xf32>
    %806 = vector.multi_reduction <add>, %805, %cst_279 [1, 2] : vector<1x8x128xf32> to vector<1xf32>
    %807 = vector.shape_cast %806 : vector<1xf32> to vector<1x1x1xf32>
    %808 = vector.extract %807[0, 0, 0] : f32 from vector<1x1x1xf32>
    %cst_280 = arith.constant 9.765625E-4 : f32
    %809 = arith.mulf %808, %cst_280 : f32
    %810 = arith.mulf %804, %804 : vector<8x128xf32>
    %811 = vector.shape_cast %810 : vector<8x128xf32> to vector<1x8x128xf32>
    %cst_281 = arith.constant dense<0.000000e+00> : vector<1xf32>
    %812 = vector.multi_reduction <add>, %811, %cst_281 [1, 2] : vector<1x8x128xf32> to vector<1xf32>
    %813 = vector.shape_cast %812 : vector<1xf32> to vector<1x1x1xf32>
    %814 = vector.extract %813[0, 0, 0] : f32 from vector<1x1x1xf32>
    %cst_282 = arith.constant 9.765625E-4 : f32
    %815 = arith.mulf %814, %cst_282 : f32
    %816 = arith.mulf %809, %809 : f32
    %817 = arith.subf %815, %816 : f32
    %cst_283 = arith.constant 0.000000e+00 : f32
    %818 = arith.maximumf %817, %cst_283 : f32
    %819 = vector.broadcast %809 : f32 to vector<8x128xf32>
    %820 = arith.subf %804, %819 : vector<8x128xf32>
    %cst_284 = arith.constant 9.99999974E-6 : f32
    %821 = arith.addf %818, %cst_284 : f32
    %822 = math.rsqrt %821 : f32
    %823 = vector.broadcast %822 : f32 to vector<8x128xf32>
    %824 = arith.mulf %820, %823 : vector<8x128xf32>
    %825 = tpu.concatenate %803, %824 in 1 : vector<8x128xf32>, vector<8x128xf32> -> vector<8x256xf32>
    %c0_285 = arith.constant 0 : index
    %c22 = arith.constant 22 : index
    %826 = vector.load %arg3[%c0_285, %c22] : memref<16x27xf32, #tpu.memory_space<vmem>>, vector<8x1xf32>
    %c0_286 = arith.constant 0 : index
    %c23 = arith.constant 23 : index
    %827 = vector.load %arg3[%c0_286, %c23] : memref<16x27xf32, #tpu.memory_space<vmem>>, vector<8x1xf32>
    %828 = vector.broadcast %826 : vector<8x1xf32> to vector<8x256xf32>
    %829 = arith.mulf %825, %828 : vector<8x256xf32>
    %830 = vector.broadcast %827 : vector<8x1xf32> to vector<8x256xf32>
    %831 = arith.addf %829, %830 : vector<8x256xf32>
    %cst_287 = arith.constant 5.000000e-01 : f32
    %832 = vector.broadcast %cst_287 : f32 to vector<8x256xf32>
    %833 = arith.mulf %832, %831 : vector<8x256xf32>
    %cst_288 = arith.constant 0.707106769 : f32
    %834 = vector.broadcast %cst_288 : f32 to vector<8x256xf32>
    %835 = arith.mulf %831, %834 : vector<8x256xf32>
    %cst_289 = arith.constant 0.000000e+00 : f32
    %836 = vector.broadcast %cst_289 : f32 to vector<8x256xf32>
    %837 = arith.cmpf oge, %835, %836 : vector<8x256xf32>
    %cst_290 = arith.constant 1.000000e+00 : f32
    %cst_291 = arith.constant -1.000000e+00 : f32
    %838 = vector.broadcast %cst_290 : f32 to vector<8x256xf32>
    %839 = vector.broadcast %cst_291 : f32 to vector<8x256xf32>
    %840 = arith.select %837, %838, %839 : vector<8x256xi1>, vector<8x256xf32>
    %841 = math.absf %835 : vector<8x256xf32>
    %cst_292 = arith.constant 0.327591091 : f32
    %842 = vector.broadcast %cst_292 : f32 to vector<8x256xf32>
    %843 = arith.mulf %842, %841 : vector<8x256xf32>
    %cst_293 = arith.constant 1.000000e+00 : f32
    %844 = vector.broadcast %cst_293 : f32 to vector<8x256xf32>
    %845 = arith.addf %844, %843 : vector<8x256xf32>
    %846 = tpu.reciprocal %845 : vector<8x256xf32> -> vector<8x256xf32>
    %cst_294 = arith.constant 1.06140542 : f32
    %847 = vector.broadcast %cst_294 : f32 to vector<8x256xf32>
    %848 = arith.mulf %847, %846 : vector<8x256xf32>
    %cst_295 = arith.constant -1.45315206 : f32
    %849 = vector.broadcast %cst_295 : f32 to vector<8x256xf32>
    %850 = arith.addf %848, %849 : vector<8x256xf32>
    %851 = arith.mulf %850, %846 : vector<8x256xf32>
    %cst_296 = arith.constant 1.42141378 : f32
    %852 = vector.broadcast %cst_296 : f32 to vector<8x256xf32>
    %853 = arith.addf %851, %852 : vector<8x256xf32>
    %854 = arith.mulf %853, %846 : vector<8x256xf32>
    %cst_297 = arith.constant -0.284496725 : f32
    %855 = vector.broadcast %cst_297 : f32 to vector<8x256xf32>
    %856 = arith.addf %854, %855 : vector<8x256xf32>
    %857 = arith.mulf %856, %846 : vector<8x256xf32>
    %cst_298 = arith.constant 0.254829586 : f32
    %858 = vector.broadcast %cst_298 : f32 to vector<8x256xf32>
    %859 = arith.addf %857, %858 : vector<8x256xf32>
    %860 = arith.mulf %859, %846 : vector<8x256xf32>
    %cst_299 = arith.constant 0.000000e+00 : f32
    %861 = vector.broadcast %cst_299 : f32 to vector<8x256xf32>
    %862 = arith.subf %861, %841 : vector<8x256xf32>
    %863 = arith.mulf %862, %841 : vector<8x256xf32>
    %864 = math.exp %863 : vector<8x256xf32>
    %865 = arith.mulf %860, %864 : vector<8x256xf32>
    %cst_300 = arith.constant 1.000000e+00 : f32
    %866 = vector.broadcast %cst_300 : f32 to vector<8x256xf32>
    %867 = arith.subf %866, %865 : vector<8x256xf32>
    %868 = arith.mulf %840, %867 : vector<8x256xf32>
    %cst_301 = arith.constant 1.000000e+00 : f32
    %869 = vector.broadcast %cst_301 : f32 to vector<8x256xf32>
    %870 = arith.addf %869, %868 : vector<8x256xf32>
    %871 = arith.mulf %833, %870 : vector<8x256xf32>
    %872 = arith.addf %871, %641 : vector<8x256xf32>
    %c112 = arith.constant 112 : index
    %c0_302 = arith.constant 0 : index
    %873 = vector.load %arg4[%c112, %c0_302] : memref<168x128xf32, #tpu.memory_space<vmem>>, vector<16x8xf32>
    %cst_303 = arith.constant dense<0.000000e+00> : vector<16x256xf32>
    %874 = tpu.matmul %873, %872, %cst_303 {dimension_numbers = #tpu.dot_dimension_numbers<[1], [0], [0], [1], [0, 0, 1, 1], [], []>} : vector<16x8xf32>, vector<8x256xf32>, vector<16x256xf32> -> vector<16x256xf32>
    %c0_304 = arith.constant 0 : index
    %c24_305 = arith.constant 24 : index
    %875 = vector.load %arg3[%c0_304, %c24_305] : memref<16x27xf32, #tpu.memory_space<vmem>>, vector<16x1xf32>
    %876 = vector.broadcast %875 : vector<16x1xf32> to vector<16x256xf32>
    %877 = arith.addf %874, %876 : vector<16x256xf32>
    %c128 = arith.constant 128 : index
    %c0_306 = arith.constant 0 : index
    %878 = vector.load %arg4[%c128, %c0_306] : memref<168x128xf32, #tpu.memory_space<vmem>>, vector<16x128xf32>
    %cst_307 = arith.constant dense<0.000000e+00> : vector<32x16xf32>
    %879 = tpu.matmul %13, %878, %cst_307 {dimension_numbers = #tpu.dot_dimension_numbers<[1], [1], [0], [0], [0, 0, 1, 0], [], []>} : vector<32x128xf32>, vector<16x128xf32>, vector<32x16xf32> -> vector<32x16xf32>
    %c144 = arith.constant 144 : index
    %c0_308 = arith.constant 0 : index
    %880 = vector.load %arg4[%c144, %c0_308] : memref<168x128xf32, #tpu.memory_space<vmem>>, vector<16x128xf32>
    %cst_309 = arith.constant dense<0.000000e+00> : vector<16x32xf32>
    %881 = tpu.matmul %880, %13, %cst_309 {dimension_numbers = #tpu.dot_dimension_numbers<[1], [1], [0], [0], [0, 0, 1, 0], [], []>} : vector<16x128xf32>, vector<32x128xf32>, vector<16x32xf32> -> vector<16x32xf32>
    %c0_310 = arith.constant 0 : index
    %c25 = arith.constant 25 : index
    %882 = vector.load %arg3[%c0_310, %c25] : memref<16x27xf32, #tpu.memory_space<vmem>>, vector<16x1xf32>
    %883 = vector.broadcast %882 : vector<16x1xf32> to vector<16x32xf32>
    %884 = arith.addf %881, %883 : vector<16x32xf32>
    %885 = vector.extract_strided_slice %879 {offsets = [0, 0], sizes = [16, 16], strides = [1, 1]} : vector<32x16xf32> to vector<16x16xf32>
    %886 = vector.extract_strided_slice %877 {offsets = [0, 0], sizes = [8, 128], strides = [1, 1]} : vector<16x256xf32> to vector<8x128xf32>
    %887 = vector.extract_strided_slice %885 {offsets = [0, 0], sizes = [16, 8], strides = [1, 1]} : vector<16x16xf32> to vector<16x8xf32>
    %888 = vector.extract_strided_slice %884 {offsets = [0, 0], sizes = [8, 16], strides = [1, 1]} : vector<16x32xf32> to vector<8x16xf32>
    %cst_311 = arith.constant dense<0.000000e+00> : vector<16x128xf32>
    %889 = tpu.matmul %887, %886, %cst_311 {dimension_numbers = #tpu.dot_dimension_numbers<[1], [0], [0], [1], [0, 0, 1, 1], [], []>} : vector<16x8xf32>, vector<8x128xf32>, vector<16x128xf32> -> vector<16x128xf32>
    %cst_312 = arith.constant dense<0xFF800000> : vector<128xf32>
    %890 = vector.multi_reduction <maximumf>, %889, %cst_312 [0] : vector<16x128xf32> to vector<128xf32>
    %891 = vector.shape_cast %890 : vector<128xf32> to vector<1x128xf32>
    %892 = vector.broadcast %891 : vector<1x128xf32> to vector<16x128xf32>
    %893 = arith.subf %889, %892 : vector<16x128xf32>
    %894 = math.exp %893 : vector<16x128xf32>
    %cst_313 = arith.constant dense<0.000000e+00> : vector<128xf32>
    %895 = vector.multi_reduction <add>, %894, %cst_313 [0] : vector<16x128xf32> to vector<128xf32>
    %896 = vector.shape_cast %895 : vector<128xf32> to vector<1x128xf32>
    %897 = tpu.reciprocal %896 {approx = true} : vector<1x128xf32> -> vector<1x128xf32>
    %898 = vector.broadcast %897 : vector<1x128xf32> to vector<16x128xf32>
    %899 = arith.mulf %894, %898 : vector<16x128xf32>
    %cst_314 = arith.constant dense<0.000000e+00> : vector<8x128xf32>
    %900 = tpu.matmul %888, %899, %cst_314 {dimension_numbers = #tpu.dot_dimension_numbers<[1], [0], [0], [1], [0, 0, 1, 1], [], []>} : vector<8x16xf32>, vector<16x128xf32>, vector<8x128xf32> -> vector<8x128xf32>
    %901 = vector.extract_strided_slice %877 {offsets = [8, 0], sizes = [8, 128], strides = [1, 1]} : vector<16x256xf32> to vector<8x128xf32>
    %902 = vector.extract_strided_slice %885 {offsets = [0, 8], sizes = [16, 8], strides = [1, 1]} : vector<16x16xf32> to vector<16x8xf32>
    %903 = vector.extract_strided_slice %884 {offsets = [8, 0], sizes = [8, 16], strides = [1, 1]} : vector<16x32xf32> to vector<8x16xf32>
    %cst_315 = arith.constant dense<0.000000e+00> : vector<16x128xf32>
    %904 = tpu.matmul %902, %901, %cst_315 {dimension_numbers = #tpu.dot_dimension_numbers<[1], [0], [0], [1], [0, 0, 1, 1], [], []>} : vector<16x8xf32>, vector<8x128xf32>, vector<16x128xf32> -> vector<16x128xf32>
    %cst_316 = arith.constant dense<0xFF800000> : vector<128xf32>
    %905 = vector.multi_reduction <maximumf>, %904, %cst_316 [0] : vector<16x128xf32> to vector<128xf32>
    %906 = vector.shape_cast %905 : vector<128xf32> to vector<1x128xf32>
    %907 = vector.broadcast %906 : vector<1x128xf32> to vector<16x128xf32>
    %908 = arith.subf %904, %907 : vector<16x128xf32>
    %909 = math.exp %908 : vector<16x128xf32>
    %cst_317 = arith.constant dense<0.000000e+00> : vector<128xf32>
    %910 = vector.multi_reduction <add>, %909, %cst_317 [0] : vector<16x128xf32> to vector<128xf32>
    %911 = vector.shape_cast %910 : vector<128xf32> to vector<1x128xf32>
    %912 = tpu.reciprocal %911 {approx = true} : vector<1x128xf32> -> vector<1x128xf32>
    %913 = vector.broadcast %912 : vector<1x128xf32> to vector<16x128xf32>
    %914 = arith.mulf %909, %913 : vector<16x128xf32>
    %cst_318 = arith.constant dense<0.000000e+00> : vector<8x128xf32>
    %915 = tpu.matmul %903, %914, %cst_318 {dimension_numbers = #tpu.dot_dimension_numbers<[1], [0], [0], [1], [0, 0, 1, 1], [], []>} : vector<8x16xf32>, vector<16x128xf32>, vector<8x128xf32> -> vector<8x128xf32>
    %916 = tpu.concatenate %900, %915 in 0 : vector<8x128xf32>, vector<8x128xf32> -> vector<16x128xf32>
    %917 = vector.extract_strided_slice %879 {offsets = [16, 0], sizes = [16, 16], strides = [1, 1]} : vector<32x16xf32> to vector<16x16xf32>
    %918 = vector.extract_strided_slice %877 {offsets = [0, 128], sizes = [8, 128], strides = [1, 1]} : vector<16x256xf32> to vector<8x128xf32>
    %919 = vector.extract_strided_slice %917 {offsets = [0, 0], sizes = [16, 8], strides = [1, 1]} : vector<16x16xf32> to vector<16x8xf32>
    %920 = vector.extract_strided_slice %884 {offsets = [0, 16], sizes = [8, 16], strides = [1, 1]} : vector<16x32xf32> to vector<8x16xf32>
    %cst_319 = arith.constant dense<0.000000e+00> : vector<16x128xf32>
    %921 = tpu.matmul %919, %918, %cst_319 {dimension_numbers = #tpu.dot_dimension_numbers<[1], [0], [0], [1], [0, 0, 1, 1], [], []>} : vector<16x8xf32>, vector<8x128xf32>, vector<16x128xf32> -> vector<16x128xf32>
    %cst_320 = arith.constant dense<0xFF800000> : vector<128xf32>
    %922 = vector.multi_reduction <maximumf>, %921, %cst_320 [0] : vector<16x128xf32> to vector<128xf32>
    %923 = vector.shape_cast %922 : vector<128xf32> to vector<1x128xf32>
    %924 = vector.broadcast %923 : vector<1x128xf32> to vector<16x128xf32>
    %925 = arith.subf %921, %924 : vector<16x128xf32>
    %926 = math.exp %925 : vector<16x128xf32>
    %cst_321 = arith.constant dense<0.000000e+00> : vector<128xf32>
    %927 = vector.multi_reduction <add>, %926, %cst_321 [0] : vector<16x128xf32> to vector<128xf32>
    %928 = vector.shape_cast %927 : vector<128xf32> to vector<1x128xf32>
    %929 = tpu.reciprocal %928 {approx = true} : vector<1x128xf32> -> vector<1x128xf32>
    %930 = vector.broadcast %929 : vector<1x128xf32> to vector<16x128xf32>
    %931 = arith.mulf %926, %930 : vector<16x128xf32>
    %cst_322 = arith.constant dense<0.000000e+00> : vector<8x128xf32>
    %932 = tpu.matmul %920, %931, %cst_322 {dimension_numbers = #tpu.dot_dimension_numbers<[1], [0], [0], [1], [0, 0, 1, 1], [], []>} : vector<8x16xf32>, vector<16x128xf32>, vector<8x128xf32> -> vector<8x128xf32>
    %933 = vector.extract_strided_slice %877 {offsets = [8, 128], sizes = [8, 128], strides = [1, 1]} : vector<16x256xf32> to vector<8x128xf32>
    %934 = vector.extract_strided_slice %917 {offsets = [0, 8], sizes = [16, 8], strides = [1, 1]} : vector<16x16xf32> to vector<16x8xf32>
    %935 = vector.extract_strided_slice %884 {offsets = [8, 16], sizes = [8, 16], strides = [1, 1]} : vector<16x32xf32> to vector<8x16xf32>
    %cst_323 = arith.constant dense<0.000000e+00> : vector<16x128xf32>
    %936 = tpu.matmul %934, %933, %cst_323 {dimension_numbers = #tpu.dot_dimension_numbers<[1], [0], [0], [1], [0, 0, 1, 1], [], []>} : vector<16x8xf32>, vector<8x128xf32>, vector<16x128xf32> -> vector<16x128xf32>
    %cst_324 = arith.constant dense<0xFF800000> : vector<128xf32>
    %937 = vector.multi_reduction <maximumf>, %936, %cst_324 [0] : vector<16x128xf32> to vector<128xf32>
    %938 = vector.shape_cast %937 : vector<128xf32> to vector<1x128xf32>
    %939 = vector.broadcast %938 : vector<1x128xf32> to vector<16x128xf32>
    %940 = arith.subf %936, %939 : vector<16x128xf32>
    %941 = math.exp %940 : vector<16x128xf32>
    %cst_325 = arith.constant dense<0.000000e+00> : vector<128xf32>
    %942 = vector.multi_reduction <add>, %941, %cst_325 [0] : vector<16x128xf32> to vector<128xf32>
    %943 = vector.shape_cast %942 : vector<128xf32> to vector<1x128xf32>
    %944 = tpu.reciprocal %943 {approx = true} : vector<1x128xf32> -> vector<1x128xf32>
    %945 = vector.broadcast %944 : vector<1x128xf32> to vector<16x128xf32>
    %946 = arith.mulf %941, %945 : vector<16x128xf32>
    %cst_326 = arith.constant dense<0.000000e+00> : vector<8x128xf32>
    %947 = tpu.matmul %935, %946, %cst_326 {dimension_numbers = #tpu.dot_dimension_numbers<[1], [0], [0], [1], [0, 0, 1, 1], [], []>} : vector<8x16xf32>, vector<16x128xf32>, vector<8x128xf32> -> vector<8x128xf32>
    %948 = tpu.concatenate %932, %947 in 0 : vector<8x128xf32>, vector<8x128xf32> -> vector<16x128xf32>
    %949 = tpu.concatenate %916, %948 in 1 : vector<16x128xf32>, vector<16x128xf32> -> vector<16x256xf32>
    %c160 = arith.constant 160 : index
    %c0_327 = arith.constant 0 : index
    %950 = vector.load %arg4[%c160, %c0_327] : memref<168x128xf32, #tpu.memory_space<vmem>>, vector<8x16xf32>
    %cst_328 = arith.constant dense<0.000000e+00> : vector<8x256xf32>
    %951 = tpu.matmul %950, %949, %cst_328 {dimension_numbers = #tpu.dot_dimension_numbers<[1], [0], [0], [1], [0, 0, 1, 1], [], []>} : vector<8x16xf32>, vector<16x256xf32>, vector<8x256xf32> -> vector<8x256xf32>
    %c0_329 = arith.constant 0 : index
    %c26 = arith.constant 26 : index
    %952 = vector.load %arg3[%c0_329, %c26] : memref<16x27xf32, #tpu.memory_space<vmem>>, vector<8x1xf32>
    %953 = vector.broadcast %952 : vector<8x1xf32> to vector<8x256xf32>
    %954 = arith.addf %951, %953 : vector<8x256xf32>
    %955 = vector.extract_strided_slice %954 {offsets = [0, 0], sizes = [8, 128], strides = [1, 1]} : vector<8x256xf32> to vector<8x128xf32>
    %c0_330 = arith.constant 0 : index
    %c0_331 = arith.constant 0 : index
    %956 = vector.load %arg5[%c0_330, %c0_331] : memref<128x256xf32, #tpu.memory_space<vmem>>, vector<128x256xf32>
    %cst_332 = arith.constant dense<0.000000e+00> : vector<8x256xf32>
    %957 = tpu.matmul %955, %956, %cst_332 {dimension_numbers = #tpu.dot_dimension_numbers<[1], [0], [0], [1], [0, 0, 1, 1], [], []>} : vector<8x128xf32>, vector<128x256xf32>, vector<8x256xf32> -> vector<8x256xf32>
    %c0_333 = arith.constant 0 : index
    %c0_334 = arith.constant 0 : index
    %958 = vector.load %arg6[%c0_333, %c0_334] : memref<8x512xf32, #tpu.memory_space<vmem>>, vector<8x256xf32>
    tpu.vector_store %arg6[%c0_333, %c0_334], %957 {strides = array<i32>} : memref<8x512xf32, #tpu.memory_space<vmem>>, vector<8x256xf32>,
    %959 = vector.extract_strided_slice %954 {offsets = [0, 128], sizes = [8, 128], strides = [1, 1]} : vector<8x256xf32> to vector<8x128xf32>
    %c0_335 = arith.constant 0 : index
    %c0_336 = arith.constant 0 : index
    %960 = vector.load %arg5[%c0_335, %c0_336] : memref<128x256xf32, #tpu.memory_space<vmem>>, vector<128x256xf32>
    %cst_337 = arith.constant dense<0.000000e+00> : vector<8x256xf32>
    %961 = tpu.matmul %959, %960, %cst_337 {dimension_numbers = #tpu.dot_dimension_numbers<[1], [0], [0], [1], [0, 0, 1, 1], [], []>} : vector<8x128xf32>, vector<128x256xf32>, vector<8x256xf32> -> vector<8x256xf32>
    %c0_338 = arith.constant 0 : index
    %c256 = arith.constant 256 : index
    %962 = vector.load %arg6[%c0_338, %c256] : memref<8x512xf32, #tpu.memory_space<vmem>>, vector<8x256xf32>
    tpu.vector_store %arg6[%c0_338, %c256], %961 {strides = array<i32>} : memref<8x512xf32, #tpu.memory_space<vmem>>, vector<8x256xf32>,
    return
  }
  func.func @transform_0(%arg0: i32) -> (i32, i32) {
    %c0_i32 = arith.constant 0 : i32
    %c0_i32_0 = arith.constant 0 : i32
    return %c0_i32, %arg0 : i32, i32
  }
  func.func @transform_1(%arg0: i32) -> (i32, i32) {
    %c0_i32 = arith.constant 0 : i32
    %c0_i32_0 = arith.constant 0 : i32
    %c0_i32_1 = arith.constant 0 : i32
    return %c0_i32, %c0_i32_0 : i32, i32
  }
  func.func @transform_2(%arg0: i32) -> (i32, i32) {
    %c0_i32 = arith.constant 0 : i32
    %c0_i32_0 = arith.constant 0 : i32
    %c0_i32_1 = arith.constant 0 : i32
    return %c0_i32, %c0_i32_0 : i32, i32
  }
  func.func @transform_3(%arg0: i32) -> (i32, i32) {
    %c0_i32 = arith.constant 0 : i32
    %c0_i32_0 = arith.constant 0 : i32
    %c0_i32_1 = arith.constant 0 : i32
    return %c0_i32, %c0_i32_0 : i32, i32
  }
  func.func @transform_4(%arg0: i32) -> (i32, i32) {
    %c0_i32 = arith.constant 0 : i32
    %c0_i32_0 = arith.constant 0 : i32
    %c0_i32_1 = arith.constant 0 : i32
    return %c0_i32, %c0_i32_0 : i32, i32
  }
  func.func @transform_5(%arg0: i32) -> (i32, i32) {
    %c0_i32 = arith.constant 0 : i32
    %c0_i32_0 = arith.constant 0 : i32
    return %c0_i32, %arg0 : i32, i32
  }
}

</mosaic_0001>

<bundles_post_ra>
// kernel: tpu_custom_call.1
= control target key start
LH: loop header
LB: loop body
LE: loop exit
PB: predicated region body
PF: predicated region fallthrough
CT: control target
= control target key end

     0   :  { %10 = vsyncpa [#allocation3], 0  ;;  %s7143_s0 = inlined_call_operand.hbm [shape: f32[16,256], index: 0, kind: input, shape index: {}]   ;;  %s7144_s1 = inlined_call_operand.hbm [shape: f32[56,80], index: 1, kind: input, shape index: {}]   ;;  %s7145_s2 = inlined_call_operand.hbm [shape: f32[16,27], index: 2, kind: input, shape index: {}]   ;;  %s7146_s3 = inlined_call_operand.hbm [shape: f32[168,128], index: 3, kind: input, shape index: {}]   ;;  %s7147_s4 = inlined_call_operand.hbm [shape: f32[128,256], index: 4, kind: input, shape index: {}]   ;;  %s7148_s5 = inlined_call_operand.hbm [shape: f32[8,512], index: 5, kind: output, shape index: {}]  }
   0x1   :  { %11 = vsyncpa [#allocation6], 0 }
   0x2   :  { %12 = vsyncpa [#allocation9], 0 }
   0x3   :  { %13 = vsyncpa [#allocation4], 0  ;;  %s6309_s18 = smov [#allocation5]   ;;  %s6169_s22 = scalar_lea.hbm %s7144_s1, 896 }
   0x4   :  { %s31_s19 = sshll.u32 %s6309_s18, 4  ;;  %p6170_p0 = scmp.ne.s32.totalorder %s7144_s1, %s6169_s22  ;;  %s32_s19 = int_to_ptr.vmem [resolvable:$true] %s31_s19 }
   0x5   :  { %p6173_p1 = scmp.lt.u32.totalorder %s6169_s22, %s7144_s1 }
   0x7   :  { %p6175_p2 = pnand %p6173_p1, %p6170_p0 }
   0x9   :  { %6178 = shalt.err (!%p6175_p2)
}
   0xa   :  { %s6179_s27 = scalar_lea.vmem %s32_s19, 896  ;;  %p6184_p4 = scmp.lt.s32.totalorder %s32_s19, %s32_s19 }
   0xb   :  { %p6180_p3 = scmp.ne.s32.totalorder %s32_s19, %s6179_s27  ;;  %p6185_p5 = scmp.lt.s32.totalorder %s6179_s27, %s6179_s27 }
   0xd   :  { %p6186_p6 = por %p6185_p5, %p6184_p4 }
   0xf   :  { %p6187_p7 = pnand %p6186_p6, %p6180_p3 }
  0x11   :  { %6190 = shalt.err (!%p6187_p7)
}
  0x12   :  { %s6310_s28 = smov 128   ;;  %s6311_s29 = smov 8  }
  0x13   :  { %37 = dma.hbm_to_vmem [thread:$0]  %s7144_s1, 896, %s32_s19, [#allocation6], %s6310_s28, %s6310_s28, %s6311_s29  }
  0x14   :  { %s6312_s7 = smov [#allocation8]   ;;  %s6313_s9 = smov [#allocation2]  }
  0x15   :  { %s55_s8 = sshll.u32 %s6312_s7, 4  ;;  %s19_s10 = sshll.u32 %s6313_s9, 4  ;;  %s56_s8 = int_to_ptr.vmem [resolvable:$true] %s55_s8  ;;  %s20_s10 = int_to_ptr.vmem [resolvable:$true] %s19_s10 }
  0x16   :  { %s6191_s13 = scalar_lea.hbm %s7146_s3, 2688 }
  0x17   :  { %p6192_p8 = scmp.ne.s32.totalorder %s7146_s3, %s6191_s13  ;;  %p6195_p9 = scmp.lt.u32.totalorder %s6191_s13, %s7146_s3 }
  0x19   :  { %p6197_p10 = pnand %p6195_p9, %p6192_p8 }
  0x1b   :  { %6200 = shalt.err (!%p6197_p10)
}
  0x1c   :  { %s6201_s1 = scalar_lea.vmem %s56_s8, 2688  ;;  %p6206_p12 = scmp.lt.s32.totalorder %s56_s8, %s56_s8 }
  0x1d   :  { %p6202_p11 = scmp.ne.s32.totalorder %s56_s8, %s6201_s1  ;;  %p6207_p13 = scmp.lt.s32.totalorder %s6201_s1, %s6201_s1 }
  0x1f   :  { %p6208_p0 = por %p6207_p13, %p6206_p12 }
  0x21   :  { %p6209_p1 = pnand %p6208_p0, %p6202_p11 }
  0x23   :  { %6212 = shalt.err (!%p6209_p1)
}
  0x24   :  { %61 = dma.hbm_to_vmem [thread:$0]  %s7146_s3, 2688, %s56_s8, [#allocation9], %s6310_s28, %s6310_s28, %s6311_s29  }
  0x25   :  { %s6213_s22 = scalar_lea.hbm %s7143_s0, 512 }
  0x26   :  { %p6214_p2 = scmp.ne.s32.totalorder %s7143_s0, %s6213_s22  ;;  %p6217_p3 = scmp.lt.u32.totalorder %s6213_s22, %s7143_s0 }
  0x28   :  { %p6219_p4 = pnand %p6217_p3, %p6214_p2 }
  0x2a   :  { %6222 = shalt.err (!%p6219_p4)
}
  0x2b   :  { %s6223_s27 = scalar_lea.vmem %s20_s10, 512  ;;  %p6228_p6 = scmp.lt.s32.totalorder %s20_s10, %s20_s10 }
  0x2c   :  { %p6224_p5 = scmp.ne.s32.totalorder %s20_s10, %s6223_s27  ;;  %p6229_p7 = scmp.lt.s32.totalorder %s6223_s27, %s6223_s27 }
  0x2e   :  { %p6230_p8 = por %p6229_p7, %p6228_p6 }
  0x30   :  { %p6231_p9 = pnand %p6230_p8, %p6224_p5 }
  0x32   :  { %6234 = shalt.err (!%p6231_p9)
}
  0x33   :  { %s6314_s3 = smov 256   ;;  %s6315_s30 = smov 16  }
  0x34   :  { %25 = dma.hbm_to_vmem [thread:$0]  %s7143_s0, 512, %s20_s10, [#allocation3], %s6314_s3, %s6314_s3, %s6315_s30  }
  0x35   :  { %s6316_s8 = smov [#allocation7]   ;;  %s6317_s11 = smov [#allocation10]  }
  0x36   :  { %s43_s9 = sshll.u32 %s6316_s8, 4  ;;  %s67_s12 = sshll.u32 %s6317_s11, 4  ;;  %s44_s9 = int_to_ptr.vmem [resolvable:$true] %s43_s9  ;;  %s68_s12 = int_to_ptr.vmem [resolvable:$true] %s67_s12 }
  0x37   :  { %s6235_s15 = scalar_lea.hbm %s7145_s2, 256 }
  0x38   :  { %p6236_p10 = scmp.ne.s32.totalorder %s7145_s2, %s6235_s15  ;;  %p6239_p11 = scmp.lt.u32.totalorder %s6235_s15, %s7145_s2 }
  0x3a   :  { %p6241_p12 = pnand %p6239_p11, %p6236_p10 }
  0x3c   :  { %6244 = shalt.err (!%p6241_p12)
}
  0x3d   :  { %s6245_s0 = scalar_lea.vmem %s44_s9, 256  ;;  %p6250_p0 = scmp.lt.s32.totalorder %s44_s9, %s44_s9 }
  0x3e   :  { %p6246_p13 = scmp.ne.s32.totalorder %s44_s9, %s6245_s0  ;;  %p6251_p1 = scmp.lt.s32.totalorder %s6245_s0, %s6245_s0 }
  0x40   :  { %p6252_p2 = por %p6251_p1, %p6250_p0 }
  0x42   :  { %p6253_p3 = pnand %p6252_p2, %p6246_p13 }
  0x44   :  { %6256 = shalt.err (!%p6253_p3)
}
  0x45   :  { %49 = dma.hbm_to_vmem [thread:$0]  %s7145_s2, 256, %s44_s9, [#allocation6], %s6310_s28, %s6310_s28, %s6311_s29  }
  0x46   :  { %s6257_s22 = scalar_lea.hbm %s7147_s4, 4096 }
  0x47   :  { %p6258_p4 = scmp.ne.s32.totalorder %s7147_s4, %s6257_s22  ;;  %p6261_p5 = scmp.lt.u32.totalorder %s6257_s22, %s7147_s4 }
  0x49   :  { %p6263_p6 = pnand %p6261_p5, %p6258_p4 }
  0x4b   :  { %6266 = shalt.err (!%p6263_p6)
}
  0x4c   :  { %s6267_s27 = scalar_lea.vmem %s68_s12, 4096  ;;  %p6272_p8 = scmp.lt.s32.totalorder %s68_s12, %s68_s12 }
  0x4d   :  { %p6268_p7 = scmp.ne.s32.totalorder %s68_s12, %s6267_s27  ;;  %p6273_p9 = scmp.lt.s32.totalorder %s6267_s27, %s6267_s27 }
  0x4f   :  { %p6274_p10 = por %p6273_p9, %p6272_p8 }
  0x51   :  { %p6275_p11 = pnand %p6274_p10, %p6268_p7 }
  0x53   :  { %6278 = shalt.err (!%p6275_p11)
}
  0x54   :  { %73 = dma.hbm_to_vmem [thread:$0]  %s7147_s4, 4096, %s68_s12, [#allocation9], %s6314_s3, %s6314_s3, %s6315_s30  }
  0x55   :  { %6301 = dma.done.wait [#allocation3], 512  }
  0x56   :  { %6302 = vsyncadd [#allocation3], 4294966784 }
  0x57   :  { %6303 = dma.done.wait [#allocation6], 1152  }
  0x58   :  { %6304 = vsyncadd [#allocation6], 4294966144 }
  0x59   :  { %6305 = dma.done.wait [#allocation9], 6784  }
  0x5a   :  { %6306 = vsyncadd [#allocation9], 4294960512  ;;  %v89_v0 = vlaneseq  ;;  %v6318_v3 = vmov 0   ;;  %v6472_v7 = vld [vmem:[#allocation2] sm:$0xff]  ;;  %v6474_v8 = vld [vmem:[#allocation2 + $0x10] sm:$0xff]  ;;  %s6319_s4 = smov 1  }
  0x5b   :  { %5907 = vset.pattern.permute.xlu0 %v6318_v3  ;;  %v6476_v9 = vld [vmem:[#allocation2 + $0x8] sm:$0xff]  ;;  %v5877_v12 = vpack.i.bf16 %v6474_v8, %v6472_v7  ;;  %v6482_v13 = vld [vmem:[#allocation2 + $0x18] sm:$0xff]  ;;  %s6320_s29 = smov 2   ;;  %s6321_s3 = smov 127   ;;  %v6323_v18 = vmov 0.0   ;;  %vm196_vm15 = vcmask 654336  }
  0x5c   :  { %v6463_v1 = vand.u32 127, %v89_v0  ;;  %v114_v2 = vshrl.u32 %v89_v0, 7  ;;  %v5882_v14 = vpack.i.bf16 %v6482_v13, %v6476_v9  ;;  %s6322_s30 = smov 126   ;;  %264 = vmatprep.mubr.f32.mxu0 %v6323_v18  ;;  %504 = vmatprep.mubr.f32.mxu1 %v6323_v18  ;;  %v6512_v19 = vld [vmem:[#allocation7] sm:$0xff]  ;;  %v6569_v57 = vpack.c.bf16 %v6482_v13, %v6476_v9  ;;  %s6326_s13 = smov 0.0   ;;  %v6163_v17 = vld [vmem:[#allocation2] sm:$0xff] }
  0x5d   :  { %5878 = vrot.lane.b32.xlu1 %v5877_v12, %s6319_s4  ;;  %5868 = vrot.lane.b32.xlu0 %v5877_v12, %s6320_s29  ;;  %v6583_v0 = vpack.c.bf16 %v6474_v8, %v6472_v7 }
  0x5e   :  { %vm91_vm0 = vcmp.ge.s32.totalorder %v6463_v1, 2  ;;  %vm92_vm1 = vcmp.ge.s32.totalorder %v6463_v1, 1  ;;  %v6469_v5 = vsub.s32 0, %v114_v2  ;;  %vm130_vm5 = vcmp.lt.s32.totalorder %v6463_v1, 1 }
  0x5f   :  { %v112_v4 = vsel %vm91_vm0, 1, %v6318_v3  ;;  %v135_v6 = vsel %vm92_vm1, 1, %v6318_v3  ;;  %vm107_vm6 = vcmp.lt.s32.totalorder %v6463_v1, 2  ;;  %vm93_vm7 = vcmp.lt.s32.totalorder %v6463_v1, 127 }
  0x60   :  { %v116_v10 = vrot.slane %v112_v4, %v6469_v5  ;;  %v139_v11 = vrot.slane %v135_v6, %v6469_v5  ;;  %vm94_vm8 = vcmp.lt.s32.totalorder %v6463_v1, 126  ;;  %v157_v34 = vsel %vm93_vm7, 1, %v6318_v3 }
  0x61   :  { %5883 = vrot.lane.b32.xlu1 %v5882_v14, %s6319_s4  ;;  %5873 = vrot.lane.b32.xlu0 %v5882_v14, %s6320_s29  ;;  %v161_v50 = vrot.slane %v157_v34, %v6469_v5  ;;  %v179_v51 = vsel %vm94_vm8, 1, %v6318_v3 }
  0x62   :  { %vm6488_vm2 = vcmp.eq.s32.totalorder %v116_v10, 1  ;;  %vm6492_vm3 = vcmp.eq.s32.totalorder %v139_v11, 1  ;;  %v183_v62 = vrot.slane %v179_v51, %v6469_v5 }
  0x63   :  { %vm6500_vm4 = vmpackc.low %vm6492_vm3, %vm6488_vm2  ;;  %vm6572_vm11 = vcmp.eq.s32.totalorder %v161_v50, 1 }
  0x64   :  { %vm5507_vm9 = vmpackc.low %vm6488_vm2, %vm6488_vm2  ;;  %vm6597_vm13 = vcmp.eq.s32.totalorder %v183_v62, 1  ;;  %vm6329_vm2 = vmmov 1  }
  0x65   :  { %5893 = vrot.lane.b32.xlu1 %v5882_v14, %s6321_s3  ;;  %5888 = vrot.lane.b32.xlu0 %v5877_v12, %s6321_s3  ;;  %vm5513_vm10 = vmpackc.low %vm6492_vm3, %vm6492_vm3 }
  0x66   :  { %vm5523_vm12 = vmpackc.low %vm6572_vm11, %vm6572_vm11 }
  0x67   :  { %vm5529_vm14 = vmpackc.low %vm6597_vm13, %vm6597_vm13 }
  0x68   :  { %vm6643_vm3 = vmpackc.low %vm6572_vm11, %vm6329_vm2 }
  0x69   :  { %5903 = vrot.lane.b32.xlu1 %v5882_v14, %s6322_s30  ;;  %5898 = vrot.lane.b32.xlu0 %v5877_v12, %s6322_s30 }
  0x6d   :  { %193 = vperm.xlu0 %5907, %v6512_v19  }
  0xcf   :  { %v5879_v20 = vpop.permute.xlu1 %5878  ;;  %v5869_v21 = vpop.permute.xlu0 %5868 }
  0xd0   :  { %v5881_v22 = vunpack.i.h.bf16 %v5879_v20  ;;  %v5880_v23 = vunpack.i.l.bf16 %v5879_v20  ;;  %v5871_v30 = vunpack.i.h.bf16 %v5869_v21  ;;  %v5870_v31 = vunpack.i.l.bf16 %v5869_v21  ;;  %v189_v20 = vld [vmem:[#allocation5] sm:$0xff] }
  0xd3   :  { %v5884_v24 = vpop.permute.xlu1 %5883  ;;  %v5874_v25 = vpop.permute.xlu0 %5873 }
  0xd4   :  { %v5886_v26 = vunpack.i.h.bf16 %v5884_v24  ;;  %v5885_v27 = vunpack.i.l.bf16 %v5884_v24  ;;  %v5876_v28 = vunpack.i.h.bf16 %v5874_v25  ;;  %v5875_v29 = vunpack.i.l.bf16 %v5874_v25 }
  0xd6   :  { %v131_v32 = vsel %vm130_vm5, %v5880_v23, %v5885_v27  ;;  %v132_v33 = vsel %vm130_vm5, %v5881_v22, %v5886_v26  ;;  %v108_v35 = vsel %vm107_vm6, %v5870_v31, %v5875_v29  ;;  %v109_v36 = vsel %vm107_vm6, %v5871_v30, %v5876_v28 }
  0xd7   :  { %v110_v37 = vsel %vm107_vm6, %v5875_v29, %v5870_v31  ;;  %v111_v38 = vsel %vm107_vm6, %v5876_v28, %v5871_v30  ;;  %v5894_v39 = vpop.permute.xlu1 %5893  ;;  %v5889_v40 = vpop.permute.xlu0 %5888  ;;  %v133_v41 = vsel %vm130_vm5, %v5885_v27, %v5880_v23  ;;  %v134_v42 = vsel %vm130_vm5, %v5886_v26, %v5881_v22 }
  0xd8   :  { %v5506_v43 = vpack.c.bf16 %v109_v36, %v108_v35  ;;  %v5509_v44 = vpack.c.bf16 %v111_v38, %v110_v37  ;;  %v5896_v45 = vunpack.i.h.bf16 %v5894_v39  ;;  %v5895_v46 = vunpack.i.l.bf16 %v5894_v39 }
  0xd9   :  { %v5891_v47 = vunpack.i.h.bf16 %v5889_v40  ;;  %v5890_v48 = vunpack.i.l.bf16 %v5889_v40  ;;  %v5512_v49 = vpack.c.bf16 %v132_v33, %v131_v32  ;;  %v5515_v54 = vpack.c.bf16 %v134_v42, %v133_v41 }
  0xda   :  { %5508 = vmatprep.subr.msk.bf16.mxu0 %vm5507_vm9, %v5506_v43  ;;  %v6324_v28 = vmov 1   ;;  %v6325_v29 = vmov 2  }
  0xdb   :  { %5511 = vmatpush1.bf16.msk.msra.mxu0 %vm5507_vm9, %v5509_v44  ;;  %v5904_v52 = vpop.permute.xlu1 %5903  ;;  %v5899_v53 = vpop.permute.xlu0 %5898  ;;  %v156_v55 = vsel %vm93_vm7, %v5896_v45, %v5891_v47  ;;  %v155_v56 = vsel %vm93_vm7, %v5895_v46, %v5890_v48  ;;  %v154_v2 = vsel %vm93_vm7, %v5891_v47, %v5896_v45  ;;  %v153_v3 = vsel %vm93_vm7, %v5890_v48, %v5895_v46 }
  0xdc   :  { %5514 = vmatprep.subr.msk.bf16.mxu0 %vm5513_vm10, %v5512_v49  ;;  %v5906_v58 = vunpack.i.h.bf16 %v5904_v52  ;;  %v5905_v59 = vunpack.i.l.bf16 %v5904_v52  ;;  %v5901_v60 = vunpack.i.h.bf16 %v5899_v53  ;;  %v5900_v61 = vunpack.i.l.bf16 %v5899_v53  ;;  %5908 = vset.pattern.permute.xlu1 %v6324_v28 }
  0xdd   :  { %v5522_v4 = vpack.c.bf16 %v156_v55, %v155_v56  ;;  %v5525_v11 = vpack.c.bf16 %v154_v2, %v153_v3  ;;  %5909 = vset.pattern.permute.xlu0 %v6325_v29  ;;  %vm436_vm9 = vcmask 326656  }
  0xde   :  { %v178_v5 = vsel %vm94_vm8, %v5906_v58, %v5901_v60  ;;  %v177_v6 = vsel %vm94_vm8, %v5905_v59, %v5900_v61  ;;  %v176_v12 = vsel %vm94_vm8, %v5901_v60, %v5906_v58  ;;  %v175_v14 = vsel %vm94_vm8, %v5900_v61, %v5905_v59 }
  0xdf   :  { %5517 = vmatpush1.bf16.msk.msra.mxu0 %vm5513_vm10, %v5515_v54  ;;  %v5528_v15 = vpack.c.bf16 %v178_v5, %v177_v6  ;;  %v5531_v16 = vpack.c.bf16 %v176_v12, %v175_v14  ;;  %vm640_vm10 = vcmask 130048  }
  0xe0   :  { %5519 = vmatprep.subr.bf16.mxu0 %v6569_v57 }
  0xe3   :  { %5521 = vmatpush1.bf16.msra.mxu0 %v6583_v0 }
  0xe4   :  { %5524 = vmatprep.subr.msk.bf16.mxu0 %vm5523_vm12, %v5522_v4 }
  0xe7   :  { %5527 = vmatpush1.bf16.msk.msra.mxu0 %vm5523_vm12, %v5525_v11 }
  0xe8   :  { %5530 = vmatprep.subr.msk.bf16.mxu0 %vm5529_vm14, %v5528_v15 }
  0xeb   :  { %5533 = vmatpush1.bf16.msk.msra.mxu0 %vm5529_vm14, %v5531_v16  ;;  %vm731_vm14 = vcmask 64512  }
  0xec   :  { %5555 = vmatprep.subr.bf16.mxu0 %v6583_v0  ;;  %v194_v21 = vpop.permute.xlu0 %193 }
  0xee   :  { %5099 = vmatmul.mubr.msk.f32.vlgmr.msra.gmra.mrb[0].mxu0 %vm196_vm15, %v189_v20  ;;  %vm6336_vm15 = vmmov 0  }
  0xf4   :  { %5557 = vmatpush3.bf16.xpose.msra.mxu0 %v6583_v0 }
  0xf5   :  { %5559 = vmatprep.subr.bf16.mxu0 %v6569_v57 }
  0xfc   :  { %5561 = vmatpush3.bf16.xpose.msra.mxu0 %v6569_v57 }
 0x1c1   :  { %v266_v22 = vpop.f32.mrb[0].mxu0 }
 0x1c2   :  { %v267_v23 = vadd.f32 %v266_v22, %v194_v21  ;;  %v268_v24 = vpop.f32.mrb[1].mxu0 }
 0x1c3   :  { %v6613_v25 = vadd.f32 %v268_v24, %v194_v21 }
 0x1c4   :  { %271 = vadd.xlane.f32.xlu1 %v267_v23  ;;  %v281_v26 = vmul.f32 %v267_v23, %v267_v23 }
 0x1c5   :  { %v313_v27 = vmul.f32 %v6613_v25, %v6613_v25 }
 0x1c6   :  { %282 = vadd.xlane.f32.xlu0 %v281_v26 }
 0x1c8   :  { %303 = vadd.xlane.f32.xlu1 %v6613_v25 }
 0x1ca   :  { %314 = vadd.xlane.f32.xlu0 %v313_v27 }
 0x1d9   :  { %336 = vperm.xlu1 %5908, %v6512_v19  }
 0x1e0   :  { %342 = vperm.xlu0 %5909, %v6512_v19  }
 0x251   :  { %v272_v30 = vpop.xlane.xlu1 %271 }
 0x252   :  { %v273_v31 = vrot.slane %v272_v30, 4 }
 0x253   :  { %v283_v32 = vpop.xlane.xlu0 %282 }
 0x254   :  { %v274_v33 = vadd.f32 %v273_v31, %v272_v30  ;;  %v284_v34 = vrot.slane %v283_v32, 4 }
 0x255   :  { %v304_v44 = vpop.xlane.xlu1 %303 }
 0x256   :  { %v285_v35 = vadd.f32 %v284_v34, %v283_v32  ;;  %v275_v36 = vrot.slane %v274_v33, 2  ;;  %v305_v46 = vrot.slane %v304_v44, 4 }
 0x257   :  { %v315_v45 = vpop.xlane.xlu0 %314 }
 0x258   :  { %v286_v37 = vrot.slane %v285_v35, 2  ;;  %v276_v38 = vadd.f32 %v275_v36, %v274_v33  ;;  %v316_v47 = vrot.slane %v315_v45, 4  ;;  %v306_v48 = vadd.f32 %v305_v46, %v304_v44 }
 0x259   :  { %v337_v6 = vpop.permute.xlu1 %336 }
 0x25a   :  { %v277_v39 = vrot.slane %v276_v38, 1  ;;  %v287_v40 = vadd.f32 %v286_v37, %v285_v35  ;;  %v317_v49 = vadd.f32 %v316_v47, %v315_v45  ;;  %v307_v50 = vrot.slane %v306_v48, 2 }
 0x25c   :  { %v278_v41 = vadd.f32 %v277_v39, %v276_v38  ;;  %v288_v42 = vrot.slane %v287_v40, 1  ;;  %v318_v51 = vrot.slane %v317_v49, 2  ;;  %v308_v53 = vadd.f32 %v307_v50, %v306_v48 }
 0x25e   :  { %5746 = vpush %v278_v41  ;;  %v289_v43 = vadd.f32 %v288_v42, %v287_v40  ;;  %v319_v54 = vadd.f32 %v318_v51, %v317_v49  ;;  %v309_v55 = vrot.slane %v308_v53, 1 }
 0x25f   :  { %v343_v12 = vpop.permute.xlu0 %342 }
 0x260   :  { %5748 = vpush %v289_v43  ;;  %v320_v56 = vrot.slane %v319_v54, 1  ;;  %v310_v59 = vadd.f32 %v309_v55, %v308_v53 }
 0x262   :  { %v321_v60 = vadd.f32 %v320_v56, %v319_v54 }
 0x28f   :  { %s5747_s6 = spop %5746 }
 0x290   :  { %s280_s7 = smul.f32 0.0009765625, %s5747_s6 }
 0x291   :  { %s5749_s8 = spop %5748 }
 0x292   :  { %s292_s9 = smul.f32 %s280_s7, %s280_s7  ;;  %v295_v61 = vstv %s280_s7 }
 0x293   :  { %s291_s11 = smul.f32 0.0009765625, %s5749_s8  ;;  %v296_v62 = vsub.f32 %v267_v23, %v295_v61 }
 0x295   :  { %s293_s12 = ssub.f32 %s291_s11, %s292_s9 }
 0x297   :  { %s294_s14 = smax.f32 %s6326_s13, %s293_s12 }
 0x298   :  { %s297_s15 = sadd.f32 1e-05, %s294_s14 }
 0x29a   :  { %v298_v52 = vstv %s297_s15 }
 0x29b   :  { %6012 = vrsqrt.f32 %v298_v52 }
 0x2a5   :  { %v6013_v58 = vpop.eup %6012 }
 0x2a6   :  { %5750 = vpush %v6013_v58 }
 0x2a7   :  { %5752 = vpush %v310_v59 }
 0x2a8   :  { %5754 = vpush %v321_v60 }
 0x2d7   :  { %s5751_s16 = spop %5750 }
 0x2d8   :  { %v301_v2 = vstv %s5751_s16  ;;  %s5753_s17 = spop %5752 }
 0x2d9   :  { %v302_v3 = vmul.f32 %v301_v2, %v296_v62  ;;  %s312_s1 = smul.f32 0.0009765625, %s5753_s17  ;;  %s5755_s18 = spop %5754  ;;  %v6327_v2 = vmov -1.0  }
 0x2da   :  { %s323_s0 = smul.f32 0.0009765625, %s5755_s18  ;;  %s6333_s18 = smov 120  }
 0x2db   :  { %s324_s10 = smul.f32 %s312_s1, %s312_s1  ;;  %v339_v11 = vmul.f32 %v337_v6, %v302_v3  ;;  %v327_v22 = vstv %s312_s1 }
 0x2dc   :  { %v328_v24 = vsub.f32 %v6613_v25, %v327_v22 }
 0x2dd   :  { %s325_s19 = ssub.f32 %s323_s0, %s324_s10  ;;  %v345_v14 = vadd.f32 %v343_v12, %v339_v11  ;;  %s6337_s0 = smov 112  }
 0x2df   :  { %s326_s20 = smax.f32 %s6326_s13, %s325_s19  ;;  %v349_v15 = vmul.f32 0.70710677, %v345_v14 }
 0x2e0   :  { %s329_s21 = sadd.f32 1e-05, %s326_s20 }
 0x2e1   :  { %v355_v16 = vand.u32 2147483647, %v349_v15  ;;  %vm351_vm0 = vcmp.ge.f32.partialorder %v349_v15, 0.0 }
 0x2e2   :  { %v330_v4 = vstv %s329_s21  ;;  %v353_v3 = vsel %vm351_vm0, 1.0, %v6327_v2 }
 0x2e3   :  { %6014 = vrsqrt.f32 %v330_v4  ;;  %v357_v20 = vmul.f32 0.3275911, %v355_v16  ;;  %v381_v37 = vsub.f32 0.0, %v355_v16 }
 0x2e5   :  { %v359_v21 = vadd.f32 1.0, %v357_v20  ;;  %v383_v40 = vmul.f32 %v381_v37, %v355_v16  ;;  %v347_v20 = vmul.f32 0.5, %v345_v14 }
 0x2e7   :  { %6016 = vrcp.f32 %v359_v21  ;;  %v385_v42 = vmul.f32 1.442695, %v383_v40 }
 0x2ed   :  { %v6015_v5 = vpop.eup %6014 }
 0x2ee   :  { %5756 = vpush %v6015_v5 }
 0x2f1   :  { %v6017_v23 = vpop.eup %6016 }
 0x2f2   :  { %v363_v26 = vmul.f32 1.0614054, %v6017_v23 }
 0x2f4   :  { %v365_v30 = vadd.f32 -1.4531521, %v363_v26  ;;  %v6328_v26 = vmov 3  }
 0x2f5   :  { %5925 = vset.pattern.permute.xlu1 %v6328_v26 }
 0x2f6   :  { %v367_v33 = vmul.f32 %v6017_v23, %v365_v30 }
 0x2f8   :  { %v369_v36 = vadd.f32 1.4214138, %v367_v33 }
 0x2fa   :  { %v371_v39 = vmul.f32 %v6017_v23, %v369_v36 }
 0x2fc   :  { %v373_v41 = vadd.f32 -0.28449672, %v371_v39 }
 0x2fe   :  { %v375_v43 = vmul.f32 %v6017_v23, %v373_v41 }
 0x300   :  { %v377_v47 = vadd.f32 0.2548296, %v375_v43 }
 0x302   :  { %v379_v51 = vmul.f32 %v6017_v23, %v377_v47 }
 0x31f   :  { %s5757_s22 = spop %5756 }
 0x320   :  { %v333_v27 = vstv %s5757_s22 }
 0x321   :  { %v334_v28 = vmul.f32 %v333_v27, %v328_v24 }
 0x323   :  { %v340_v29 = vmul.f32 %v337_v6, %v334_v28 }
 0x325   :  { %v346_v31 = vadd.f32 %v343_v12, %v340_v29 }
 0x327   :  { %v350_v32 = vmul.f32 0.70710677, %v346_v31  ;;  %v348_v21 = vmul.f32 0.5, %v346_v31 }
 0x329   :  { %v356_v34 = vand.u32 2147483647, %v350_v32  ;;  %vm352_vm1 = vcmp.ge.f32.partialorder %v350_v32, 0.0 }
 0x32a   :  { %v354_v11 = vsel %vm352_vm1, 1.0, %v6327_v2 }
 0x32b   :  { %v358_v35 = vmul.f32 0.3275911, %v356_v34  ;;  %v382_v25 = vsub.f32 0.0, %v356_v34 }
 0x32d   :  { %v360_v38 = vadd.f32 1.0, %v358_v35  ;;  %v384_v45 = vmul.f32 %v382_v25, %v356_v34 }
 0x32f   :  { %6018 = vrcp.f32 %v360_v38  ;;  %v387_v49 = vmul.f32 1.442695, %v384_v45 }
 0x330   :  { %6020 = vpow2.f32 %v385_v42 }
 0x331   :  { %6022 = vpow2.f32 %v387_v49  ;;  %v639_v49 = vld [vmem:[#allocation5 + $0x10] sm:$0xff] }
 0x339   :  { %v6019_v44 = vpop.eup %6018 }
 0x33a   :  { %v364_v46 = vmul.f32 1.0614054, %v6019_v44  ;;  %v6021_v54 = vpop.eup %6020 }
 0x33b   :  { %v389_v55 = vmul.f32 %v6021_v54, %v379_v51  ;;  %v6023_v62 = vpop.eup %6022 }
 0x33c   :  { %v366_v48 = vadd.f32 -1.4531521, %v364_v46 }
 0x33d   :  { %v391_v59 = vsub.f32 1.0, %v389_v55 }
 0x33e   :  { %v368_v50 = vmul.f32 %v6019_v44, %v366_v48  ;;  %v431_v48 = vld [vmem:[#allocation5 + $0x8] sm:$0xff] }
 0x33f   :  { %v393_v4 = vmul.f32 %v391_v59, %v353_v3  ;;  %v6331_v59 = vmov 5  }
 0x340   :  { %v370_v52 = vadd.f32 1.4214138, %v368_v50  ;;  %5927 = vset.pattern.permute.xlu0 %v6331_v59 }
 0x341   :  { %v395_v12 = vadd.f32 1.0, %v393_v4 }
 0x342   :  { %v372_v53 = vmul.f32 %v6019_v44, %v370_v52 }
 0x343   :  { %v397_v23 = vmul.f32 %v395_v12, %v347_v20 }
 0x344   :  { %v374_v56 = vadd.f32 -0.28449672, %v372_v53 }
 0x346   :  { %v376_v58 = vmul.f32 %v6019_v44, %v374_v56 }
 0x348   :  { %v378_v60 = vadd.f32 0.2548296, %v376_v58  ;;  %v6330_v58 = vmov 4  }
 0x34a   :  { %v380_v61 = vmul.f32 %v6019_v44, %v378_v60 }
 0x34c   :  { %v390_v5 = vmul.f32 %v6023_v62, %v380_v61 }
 0x34e   :  { %v392_v6 = vsub.f32 1.0, %v390_v5 }
 0x350   :  { %v394_v16 = vmul.f32 %v392_v6, %v354_v11 }
 0x352   :  { %v396_v22 = vadd.f32 1.0, %v394_v16 }
 0x354   :  { %v398_v15 = vmul.f32 %v396_v22, %v348_v21 }
 0x356   :  { %v5910_v24 = vpack.i.bf16 %v398_v15, %v397_v23 }
 0x358   :  { %5911 = vrot.lane.b32.xlu1 %v5910_v24, %s6320_s29 }
 0x35c   :  { %5916 = vrot.lane.b32.xlu1 %v5910_v24, %s6319_s4 }
 0x360   :  { %5921 = vrot.lane.b32.xlu1 %v5910_v24, %s6321_s3 }
 0x364   :  { %423 = vrot.lane.b32.xlu1 %v397_v23, %s6322_s30 }
 0x368   :  { %425 = vrot.lane.b32.xlu1 %v398_v15, %s6322_s30 }
 0x36c   :  { %433 = vperm.xlu1 %5925, %v6512_v19  }
 0x370   :  { %5926 = vset.pattern.permute.xlu1 %v6330_v58  ;;  %v6689_v58 = vld [vmem:[#allocation7 + $0x8] sm:$0xff] }
 0x3ca   :  { %v5912_v14 = vpop.permute.xlu1 %5911 }
 0x3cb   :  { %v5914_v27 = vunpack.i.h.bf16 %v5912_v14  ;;  %v5913_v28 = vunpack.i.l.bf16 %v5912_v14 }
 0x3cd   :  { %v403_v32 = vsel %vm107_vm6, %v5913_v28, %v5914_v27  ;;  %v404_v34 = vsel %vm107_vm6, %v5914_v27, %v5913_v28 }
 0x3ce   :  { %v5917_v29 = vpop.permute.xlu1 %5916 }
 0x3cf   :  { %v5919_v30 = vunpack.i.h.bf16 %v5917_v29  ;;  %v5918_v31 = vunpack.i.l.bf16 %v5917_v29 }
 0x3d1   :  { %v411_v33 = vsel %vm130_vm5, %v5918_v31, %v5919_v30  ;;  %v412_v35 = vsel %vm130_vm5, %v5919_v30, %v5918_v31 }
 0x3d2   :  { %v5922_v36 = vpop.permute.xlu1 %5921  ;;  %v5534_v37 = vpack.c.bf16 %v411_v33, %v403_v32  ;;  %v5537_v38 = vpack.c.bf16 %v412_v35, %v404_v34 }
 0x3d3   :  { %v5924_v39 = vunpack.i.h.bf16 %v5922_v36  ;;  %v5923_v40 = vunpack.i.l.bf16 %v5922_v36 }
 0x3d4   :  { %5536 = vmatprep.subr.msk.bf16.mxu1 %vm6500_vm4, %v5534_v37 }
 0x3d5   :  { %v419_v42 = vsel %vm93_vm7, %v5923_v40, %v5924_v39  ;;  %v420_v25 = vsel %vm93_vm7, %v5924_v39, %v5923_v40  ;;  %5539 = vmatpush1.bf16.msk.msra.mxu1 %vm6500_vm4, %v5537_v38 }
 0x3d6   :  { %v424_v43 = vpop.permute.xlu1 %423  ;;  %v5540_v44 = vpack.c.bf16 %v420_v25, %v398_v15  ;;  %v5543_v45 = vpack.c.bf16 %v419_v42, %v397_v23 }
 0x3d8   :  { %5542 = vmatprep.subr.msk.bf16.mxu1 %vm6643_vm3, %v5540_v44 }
 0x3d9   :  { %5545 = vmatpush1.bf16.msk.msra.mxu1 %vm6643_vm3, %v5543_v45 }
 0x3da   :  { %v426_v63 = vpop.permute.xlu1 %425 }
 0x3db   :  { %v428_v46 = vsel %vm94_vm8, %v426_v63, %v424_v43  ;;  %v427_v47 = vsel %vm94_vm8, %v424_v43, %v426_v63 }
 0x3dc   :  { %5106 = vmatprep.subr.msk.mxu1 %vm6597_vm13, %v428_v46 }
 0x3dd   :  { %5107 = vmatpush1.msk.msra.mxu1 %vm6597_vm13, %v427_v47 }
 0x3de   :  { %5108 = vmatmul.mubr.msk.f32.vlgmr.msra.gmra.mrb[0].mxu1 %vm436_vm9, %v431_v48  ;;  %5547 = vmatprep.subr.bf16.mxu1 %v6569_v57 }
 0x3df   :  { %5549 = vmatpush1.bf16.msra.mxu1 %v6583_v0  ;;  %708 = vmatprep.mubr.f32.mxu1 %v6323_v18 }
 0x3e2   :  { %5109 = vmatmul.mubr.msk.f32.vlgmr.msra.gmra.mrb[2].mxu1 %vm640_vm10, %v639_v49 }
 0x3e3   :  { %802 = vmatprep.mubr.f32.mxu1 %v6323_v18 }
 0x3eb   :  { %v434_v50 = vpop.permute.xlu1 %433 }
 0x4b1   :  { %v506_v51 = vpop.f32.mrb[0].mxu1 }
 0x4b2   :  { %v507_v52 = vadd.f32 %v506_v51, %v434_v50  ;;  %v508_v53 = vpop.f32.mrb[1].mxu1 }
 0x4b3   :  { %v6671_v54 = vadd.f32 %v508_v53, %v434_v50  ;;  %v6332_v53 = vmov 6  }
 0x4b4   :  { %511 = vadd.xlane.f32.xlu1 %v507_v52  ;;  %v521_v55 = vmul.f32 %v507_v52, %v507_v52 }
 0x4b5   :  { %v553_v56 = vmul.f32 %v6671_v54, %v6671_v54  ;;  %v6678_v15 = vpop.f32.mrb[2].mxu1 }
 0x4b6   :  { %522 = vadd.xlane.f32.xlu0 %v521_v55  ;;  %v6681_v42 = vpop.f32.mrb[3].mxu1 }
 0x4b8   :  { %543 = vadd.xlane.f32.xlu1 %v6671_v54 }
 0x4ba   :  { %554 = vadd.xlane.f32.xlu0 %v553_v56 }
 0x4c9   :  { %576 = vperm.xlu1 %5926, %v6512_v19  }
 0x4cd   :  { %5928 = vset.pattern.permute.xlu1 %v6332_v53 }
 0x4ce   :  { %723 = vperm.xlu1 %5928, %v6512_v19  }
 0x4d0   :  { %582 = vperm.xlu0 %5927, %v6512_v19  }
 0x4d2   :  { %728 = vperm.xlu1 %5928, %v6689_v58  }
 0x541   :  { %v512_v60 = vpop.xlane.xlu1 %511 }
 0x542   :  { %v513_v61 = vrot.slane %v512_v60, 4 }
 0x543   :  { %v523_v62 = vpop.xlane.xlu0 %522 }
 0x544   :  { %v514_v3 = vadd.f32 %v513_v61, %v512_v60  ;;  %v524_v4 = vrot.slane %v523_v62, 4 }
 0x545   :  { %v544_v24 = vpop.xlane.xlu1 %543 }
 0x546   :  { %v525_v5 = vadd.f32 %v524_v4, %v523_v62  ;;  %v515_v6 = vrot.slane %v514_v3, 2  ;;  %v545_v14 = vrot.slane %v544_v24, 4 }
 0x547   :  { %v555_v26 = vpop.xlane.xlu0 %554 }
 0x548   :  { %v526_v11 = vrot.slane %v525_v5, 2  ;;  %v516_v12 = vadd.f32 %v515_v6, %v514_v3  ;;  %v556_v27 = vrot.slane %v555_v26, 4  ;;  %v546_v28 = vadd.f32 %v545_v14, %v544_v24 }
 0x549   :  { %v577_v44 = vpop.permute.xlu1 %576 }
 0x54a   :  { %v517_v16 = vrot.slane %v516_v12, 1  ;;  %v527_v20 = vadd.f32 %v526_v11, %v525_v5  ;;  %v557_v29 = vadd.f32 %v556_v27, %v555_v26  ;;  %v547_v30 = vrot.slane %v546_v28, 2 }
 0x54c   :  { %v518_v21 = vadd.f32 %v517_v16, %v516_v12  ;;  %v528_v22 = vrot.slane %v527_v20, 1  ;;  %v558_v31 = vrot.slane %v557_v29, 2  ;;  %v548_v33 = vadd.f32 %v547_v30, %v546_v28 }
 0x54e   :  { %5758 = vpush %v518_v21  ;;  %v529_v23 = vadd.f32 %v528_v22, %v527_v20  ;;  %v559_v34 = vadd.f32 %v558_v31, %v557_v29  ;;  %v549_v35 = vrot.slane %v548_v33, 1 }
 0x54f   :  { %v583_v63 = vpop.permute.xlu0 %582 }
 0x550   :  { %5760 = vpush %v529_v23  ;;  %v560_v36 = vrot.slane %v559_v34, 1  ;;  %v550_v38 = vadd.f32 %v549_v35, %v548_v33 }
 0x552   :  { %v561_v39 = vadd.f32 %v560_v36, %v559_v34 }
 0x57f   :  { %s5759_s23 = spop %5758 }
 0x580   :  { %s520_s24 = smul.f32 0.0009765625, %s5759_s23 }
 0x581   :  { %s5761_s25 = spop %5760 }
 0x582   :  { %s532_s26 = smul.f32 %s520_s24, %s520_s24  ;;  %v535_v40 = vstv %s520_s24 }
 0x583   :  { %s531_s27 = smul.f32 0.0009765625, %s5761_s25  ;;  %v536_v25 = vsub.f32 %v507_v52, %v535_v40 }
 0x585   :  { %s533_s2 = ssub.f32 %s531_s27, %s532_s26 }
 0x587   :  { %s534_s28 = smax.f32 %s6326_s13, %s533_s2 }
 0x588   :  { %s537_s6 = sadd.f32 1e-05, %s534_s28 }
 0x58a   :  { %v538_v32 = vstv %s537_s6 }
 0x58b   :  { %6024 = vrsqrt.f32 %v538_v32 }
 0x595   :  { %v6025_v37 = vpop.eup %6024 }
 0x596   :  { %5762 = vpush %v6025_v37 }
 0x597   :  { %5764 = vpush %v550_v38 }
 0x598   :  { %5766 = vpush %v561_v39 }
 0x5c7   :  { %s5763_s7 = spop %5762 }
 0x5c8   :  { %v541_v43 = vstv %s5763_s7  ;;  %s5765_s8 = spop %5764 }
 0x5c9   :  { %v542_v45 = vmul.f32 %v541_v43, %v536_v25  ;;  %s6683_s9 = smul.f32 0.0009765625, %s5765_s8  ;;  %s5767_s11 = spop %5766 }
 0x5ca   :  { %s563_s12 = smul.f32 0.0009765625, %s5767_s11 }
 0x5cb   :  { %s564_s14 = smul.f32 %s6683_s9, %s6683_s9  ;;  %v579_v46 = vmul.f32 %v577_v44, %v542_v45  ;;  %v567_v30 = vstv %s6683_s9 }
 0x5cc   :  { %v568_v31 = vsub.f32 %v6671_v54, %v567_v30 }
 0x5cd   :  { %s565_s15 = ssub.f32 %s563_s12, %s564_s14  ;;  %v585_v47 = vadd.f32 %v583_v63, %v579_v46 }
 0x5cf   :  { %s566_s16 = smax.f32 %s6326_s13, %s565_s15  ;;  %v589_v48 = vmul.f32 0.70710677, %v585_v47  ;;  %v587_v14 = vmul.f32 0.5, %v585_v47 }
 0x5d0   :  { %s569_s17 = sadd.f32 1e-05, %s566_s16 }
 0x5d1   :  { %v595_v49 = vand.u32 2147483647, %v589_v48  ;;  %vm591_vm11 = vcmp.ge.f32.partialorder %v589_v48, 0.0 }
 0x5d2   :  { %v570_v50 = vstv %s569_s17  ;;  %v593_v24 = vsel %vm591_vm11, 1.0, %v6327_v2 }
 0x5d3   :  { %6026 = vrsqrt.f32 %v570_v50  ;;  %v597_v51 = vmul.f32 0.3275911, %v595_v49  ;;  %v621_v56 = vsub.f32 0.0, %v595_v49 }
 0x5d5   :  { %v599_v52 = vadd.f32 1.0, %v597_v51  ;;  %v623_v60 = vmul.f32 %v621_v56, %v595_v49 }
 0x5d7   :  { %6028 = vrcp.f32 %v599_v52  ;;  %v625_v3 = vmul.f32 1.442695, %v623_v60 }
 0x5d9   :  { %6030 = vpow2.f32 %v625_v3 }
 0x5dd   :  { %v6027_v55 = vpop.eup %6026 }
 0x5de   :  { %5768 = vpush %v6027_v55 }
 0x5e1   :  { %v6029_v59 = vpop.eup %6028 }
 0x5e2   :  { %v603_v61 = vmul.f32 1.0614054, %v6029_v59 }
 0x5e3   :  { %v6031_v21 = vpop.eup %6030 }
 0x5e4   :  { %v605_v62 = vadd.f32 -1.4531521, %v603_v61  ;;  %v815_v61 = vld [vmem:[#allocation8 + $0x10] sm:$0xff] }
 0x5e6   :  { %v607_v4 = vmul.f32 %v6029_v59, %v605_v62  ;;  %v816_v62 = vld [vmem:[#allocation8 + $0x18] sm:$0xff] }
 0x5e8   :  { %v609_v5 = vadd.f32 1.4214138, %v607_v4 }
 0x5ea   :  { %v611_v6 = vmul.f32 %v6029_v59, %v609_v5  ;;  %v5550_v5 = vpack.c.bf16 %v816_v62, %v815_v61 }
 0x5ec   :  { %v613_v11 = vadd.f32 -0.28449672, %v611_v6  ;;  %v717_v6 = vld [vmem:[#allocation8] sm:$0xff] }
 0x5ee   :  { %v615_v12 = vmul.f32 %v6029_v59, %v613_v11  ;;  %v718_v11 = vld [vmem:[#allocation8 + $0x8] sm:$0xff] }
 0x5f0   :  { %v617_v16 = vadd.f32 0.2548296, %v615_v12  ;;  %v903_v12 = vld [vmem:[#allocation8 + $0x28] sm:$0xff] }
 0x5f2   :  { %v619_v20 = vmul.f32 %v6029_v59, %v617_v16  ;;  %v724_v16 = vpop.permute.xlu1 %723 }
 0x5f4   :  { %v629_v22 = vmul.f32 %v6031_v21, %v619_v20 }
 0x5f6   :  { %v631_v23 = vsub.f32 1.0, %v629_v22 }
 0x5f8   :  { %v633_v26 = vmul.f32 %v631_v23, %v593_v24  ;;  %v729_v23 = vpop.permute.xlu1 %728 }
 0x5fa   :  { %v635_v27 = vadd.f32 1.0, %v633_v26 }
 0x5fc   :  { %v637_v28 = vmul.f32 %v635_v27, %v587_v14 }
 0x5fe   :  { %v715_v29 = vadd.f32 %v6678_v15, %v637_v28 }
 0x60f   :  { %s5769_s1 = spop %5768 }
 0x610   :  { %v573_v32 = vstv %s5769_s1 }
 0x611   :  { %v574_v33 = vmul.f32 %v573_v32, %v568_v31 }
 0x613   :  { %v580_v34 = vmul.f32 %v577_v44, %v574_v33 }
 0x615   :  { %v586_v35 = vadd.f32 %v583_v63, %v580_v34 }
 0x617   :  { %v590_v36 = vmul.f32 0.70710677, %v586_v35  ;;  %v588_v59 = vmul.f32 0.5, %v586_v35 }
 0x619   :  { %v596_v37 = vand.u32 2147483647, %v590_v36  ;;  %vm592_vm12 = vcmp.ge.f32.partialorder %v590_v36, 0.0 }
 0x61a   :  { %v594_v55 = vsel %vm592_vm12, 1.0, %v6327_v2 }
 0x61b   :  { %v598_v38 = vmul.f32 0.3275911, %v596_v37  ;;  %v622_v40 = vsub.f32 0.0, %v596_v37 }
 0x61d   :  { %v600_v39 = vadd.f32 1.0, %v598_v38  ;;  %v624_v43 = vmul.f32 %v622_v40, %v596_v37 }
 0x61f   :  { %6032 = vrcp.f32 %v600_v39  ;;  %v627_v47 = vmul.f32 1.442695, %v624_v43 }
 0x621   :  { %6034 = vpow2.f32 %v627_v47 }
 0x629   :  { %v6033_v25 = vpop.eup %6032 }
 0x62a   :  { %v604_v45 = vmul.f32 1.0614054, %v6033_v25 }
 0x62b   :  { %v6035_v63 = vpop.eup %6034 }
 0x62c   :  { %v606_v46 = vadd.f32 -1.4531521, %v604_v45 }
 0x62e   :  { %v608_v15 = vmul.f32 %v6033_v25, %v606_v46 }
 0x630   :  { %v610_v48 = vadd.f32 1.4214138, %v608_v15 }
 0x632   :  { %v612_v54 = vmul.f32 %v6033_v25, %v610_v48 }
 0x634   :  { %v614_v49 = vadd.f32 -0.28449672, %v612_v54 }
 0x636   :  { %v616_v50 = vmul.f32 %v6033_v25, %v614_v49 }
 0x638   :  { %v618_v51 = vadd.f32 0.2548296, %v616_v50 }
 0x63a   :  { %v620_v44 = vmul.f32 %v6033_v25, %v618_v51 }
 0x63c   :  { %v630_v52 = vmul.f32 %v6035_v63, %v620_v44 }
 0x63e   :  { %v632_v53 = vsub.f32 1.0, %v630_v52 }
 0x640   :  { %v634_v56 = vmul.f32 %v632_v53, %v594_v55 }
 0x642   :  { %v636_v60 = vadd.f32 1.0, %v634_v56 }
 0x644   :  { %v638_v3 = vmul.f32 %v636_v60, %v588_v59 }
 0x646   :  { %v716_v4 = vadd.f32 %v6681_v42, %v638_v3  ;;  %v902_v42 = vld [vmem:[#allocation8 + $0x20] sm:$0xff] }
 0x647   :  { %5317 = vmatprep.mubr.f32.mxu0 %v902_v42 }
 0x648   :  { %738 = vmatprep.subr.mxu1 %v716_v4  ;;  %5318 = vmatmul.mubr.f32.vlgmr.msra.gmra.mrb[2].mxu0 %v903_v12 }
 0x649   :  { %739 = vmatpush1.msra.mxu1 %v715_v29 }
 0x64a   :  { %5110 = vmatmul.mubr.msk.f32.vlgmr.msra.gmra.mrb[4].mxu1 %vm731_vm14, %v717_v6  ;;  %5551 = vmatprep.subr.bf16.mxu1 %v5550_v5 }
 0x64b   :  { %808 = vmatprep.mubr.f32.mxu1 %v6323_v18 }
 0x64e   :  { %5111 = vmatmul.mubr.msk.f32.gmra.mrb[6].mxu1 %vm731_vm14, %v718_v11 }
 0x64f   :  { %5303 = vmatprep.mubr.f32.mxu1 %v6472_v7 }
 0x650   :  { %5553 = vmatpush3.bf16.xpose.msra.mxu1 %v5550_v5 }
 0x657   :  { %5304 = vmatmul.mubr.f32.vlgmr.msra.gmra.mrb[8].mxu1 %v6474_v8 }
 0x658   :  { %5306 = vmatprep.mubr.f32.mxu1 %v6476_v9 }
 0x65b   :  { %5307 = vmatmul.mubr.f32.gmra.mrb[10].mxu1 %v6482_v13  ;;  %v6334_v13 = vmov 7  }
 0x65c   :  { %5929 = vset.pattern.permute.xlu1 %v6334_v13  ;;  %5930 = vset.pattern.permute.xlu0 %v6334_v13 }
 0x65d   :  { %909 = vperm.xlu0 %5930, %v6689_v58  }
 0x6dc   :  { %v910_v36 = vpop.permute.xlu0 %909 }
 0x71b   :  { %v5319_v33 = vpop.f32.mrb[2].mxu0 }
 0x71c   :  { %v978_v35 = vpop.f32.mrb[3].mxu0  ;;  %v6724_v38 = vadd.f32 %v5319_v33, %v910_v36 }
 0x71d   :  { %v804_v20 = vpop.f32.mrb[4].mxu1 }
 0x71e   :  { %v805_v21 = vadd.f32 %v804_v20, %v724_v16  ;;  %v806_v22 = vpop.f32.mrb[5].mxu1 }
 0x71f   :  { %v807_v7 = vadd.f32 %v806_v22, %v724_v16 }
 0x720   :  { %5320 = vmatprep.subr.mxu1 %v805_v21 }
 0x721   :  { %v810_v24 = vpop.f32.mrb[6].mxu1  ;;  %5321 = vmatpush3.msra.mxu1 %v805_v21 }
 0x722   :  { %v811_v26 = vadd.f32 %v810_v24, %v729_v23  ;;  %v812_v14 = vpop.f32.mrb[7].mxu1 }
 0x723   :  { %v813_v31 = vadd.f32 %v812_v14, %v729_v23 }
 0x724   :  { %5332 = vmatprep.subr.mxu0 %v811_v26 }
 0x725   :  { %5333 = vmatpush3.msra.mxu0 %v811_v26 }
 0x726   :  { %5344 = vmatprep.subr.mxu0 %v807_v7 }
 0x72a   :  { %v5305_v8 = vpop.f32.mrb[8].mxu1 }
 0x72b   :  { %v883_v9 = vpop.f32.mrb[9].mxu1 }
 0x72c   :  { %1164 = vrot.lane.b32.xlu1 %v883_v9, %s6333_s18  ;;  %5322 = vmatprep.mubr.msk.f32.mxu1 %vm731_vm14, %v883_v9 }
 0x72d   :  { %5323 = vmatmul.mubr.msk.f32.vlgmr.msra.gmra.mrb[12].mxu1 %vm731_vm14, %v5305_v8 }
 0x72e   :  { %v5308_v27 = vpop.f32.mrb[10].mxu1  ;;  %5329 = vmatprep.mubr.msk.f32.mxu1 %vm6336_vm15, %v6323_v18 }
 0x72f   :  { %v893_v28 = vpop.f32.mrb[11].mxu1 }
 0x730   :  { %1166 = vrot.lane.b32.xlu1 %v5305_v8, %s6333_s18 }
 0x734   :  { %1521 = vrot.lane.b32.xlu1 %v893_v28, %s6333_s18 }
 0x738   :  { %1523 = vrot.lane.b32.xlu1 %v5308_v27, %s6333_s18 }
 0x73c   :  { %905 = vperm.xlu1 %5929, %v6512_v19   ;;  %v6335_v19 = vmov 0.0|0.0  }
 0x73d   :  { %5562 = vmatprep.subr.bf16.mxu1 %v6335_v19 }
 0x79e   :  { %v1165_v29 = vpop.permute.xlu1 %1164 }
 0x79f   :  { %5334 = vmatprep.mubr.msk.f32.mxu0 %vm731_vm14, %v1165_v29 }
 0x7a2   :  { %v1167_v30 = vpop.permute.xlu1 %1166 }
 0x7a3   :  { %5335 = vmatmul.mubr.msk.f32.vlgmr.msra.gmra.mrb[4].mxu0 %vm731_vm14, %v1167_v30 }
 0x7a4   :  { %5345 = vmatpush3.msra.mxu0 %v807_v7  ;;  %5346 = vmatprep.mubr.msk.f32.mxu0 %vm731_vm14, %v893_v28 }
 0x7a5   :  { %5356 = vmatprep.subr.mxu0 %v813_v31 }
 0x7a6   :  { %v1522_v58 = vpop.permute.xlu1 %1521 }
 0x7a7   :  { %5347 = vmatmul.mubr.msk.f32.vlgmr.msra.gmra.mrb[6].mxu0 %vm731_vm14, %v5308_v27 }
 0x7a8   :  { %5357 = vmatpush3.msra.mxu0 %v813_v31  ;;  %5358 = vmatprep.mubr.msk.f32.mxu0 %vm731_vm14, %v1522_v58 }
 0x7aa   :  { %v1524_v32 = vpop.permute.xlu1 %1523 }
 0x7ab   :  { %5359 = vmatmul.mubr.msk.f32.vlgmr.msra.gmra.mrb[8].mxu0 %vm731_vm14, %v1524_v32 }
 0x7ac   :  { %1773 = vmatprep.mubr.f32.mxu0 %v6323_v18 }
 0x7bb   :  { %v906_v34 = vpop.permute.xlu1 %905 }
 0x7bc   :  { %v979_v37 = vadd.f32 %v978_v35, %v906_v34 }
 0x7be   :  { %1447 = vrot.lane.b32.xlu1 %v979_v37, %s6337_s0 }
 0x7c2   :  { %1627 = vrot.lane.b32.xlu1 %v6724_v38, %s6337_s0 }
 0x800   :  { %v5324_v39 = vpop.f32.mrb[12].mxu1 }
 0x801   :  { %v1059_v40 = vpop.f32.mrb[13].mxu1 }
 0x802   :  { %v1068_v25 = vmax.f32 %v1059_v40, %v5324_v39 }
 0x804   :  { %v1069_v43 = vrot.slane %v1068_v25, 4 }
 0x806   :  { %v1070_v45 = vmax.f32 %v1068_v25, %v1069_v43 }
 0x808   :  { %v1071_v46 = vrot.slane %v1070_v45, 2 }
 0x80a   :  { %v1072_v47 = vmax.f32 %v1070_v45, %v1071_v46 }
 0x80c   :  { %v1073_v15 = vrot.slane %v1072_v47, 1 }
 0x80e   :  { %v1074_v48 = vmax.f32 %v1072_v47, %v1073_v15 }
 0x810   :  { %v1075_v54 = vsub.f32 %v1059_v40, %v1074_v48  ;;  %v1076_v49 = vsub.f32 %v5324_v39, %v1074_v48 }
 0x812   :  { %v1077_v50 = vmul.f32 1.442695, %v1075_v54  ;;  %v1079_v51 = vmul.f32 1.442695, %v1076_v49 }
 0x814   :  { %6036 = vpow2.f32 %v1077_v50 }
 0x815   :  { %6038 = vpow2.f32 %v1079_v51 }
 0x81e   :  { %v6037_v44 = vpop.eup %6036 }
 0x81f   :  { %v6039_v63 = vpop.eup %6038 }
 0x820   :  { %v1081_v52 = vadd.f32 %v6039_v63, %v6037_v44 }
 0x822   :  { %v1082_v53 = vrot.slane %v1081_v52, 4 }
 0x824   :  { %v1083_v55 = vadd.f32 %v1082_v53, %v1081_v52 }
 0x826   :  { %v1084_v56 = vrot.slane %v1083_v55, 2 }
 0x828   :  { %v1085_v59 = vadd.f32 %v1084_v56, %v1083_v55 }
 0x82a   :  { %v1086_v60 = vrot.slane %v1085_v59, 1 }
 0x82c   :  { %v1087_v61 = vadd.f32 %v1086_v60, %v1085_v59 }
 0x82e   :  { %6040 = vrcp.f32 %v1087_v61 }
 0x838   :  { %v6041_v62 = vpop.eup %6040 }
 0x839   :  { %v1089_v3 = vmul.f32 %v6041_v62, %v6037_v44  ;;  %v1090_v4 = vmul.f32 %v6041_v62, %v6039_v63 }
 0x83b   :  { %v5563_v5 = vpack.c.bf16 %v1090_v4, %v1089_v3 }
 0x83d   :  { %5564 = vmatpush3.bf16.msra.mxu1 %v5563_v5 }
 0x83e   :  { %5565 = vmatprep.subr.bf16.mxu1 %v6335_v19 }
 0x840   :  { %5330 = vmatmul.mubr.msk.f32.vlgmr.msra.gmra.mrb[14].mxu1 %vm640_vm10, %v979_v37 }
 0x841   :  { %5341 = vmatprep.mubr.msk.f32.mxu1 %vm6336_vm15, %v6323_v18 }
 0x876   :  { %v5336_v6 = vpop.f32.mrb[4].mxu0 }
 0x877   :  { %v1238_v11 = vpop.f32.mrb[5].mxu0 }
 0x878   :  { %v1247_v42 = vmax.f32 %v1238_v11, %v5336_v6 }
 0x87a   :  { %v1248_v12 = vrot.slane %v1247_v42, 4  ;;  %v5348_v16 = vpop.f32.mrb[6].mxu0 }
 0x87b   :  { %v1415_v20 = vpop.f32.mrb[7].mxu0 }
 0x87c   :  { %v1249_v21 = vmax.f32 %v1247_v42, %v1248_v12  ;;  %v1424_v22 = vmax.f32 %v1415_v20, %v5348_v16 }
 0x87e   :  { %v1250_v23 = vrot.slane %v1249_v21, 2  ;;  %v1425_v24 = vrot.slane %v1424_v22, 4  ;;  %v5360_v7 = vpop.f32.mrb[8].mxu0 }
 0x87f   :  { %v1595_v26 = vpop.f32.mrb[9].mxu0 }
 0x880   :  { %v1251_v14 = vmax.f32 %v1249_v21, %v1250_v23  ;;  %v1426_v8 = vmax.f32 %v1424_v22, %v1425_v24  ;;  %v1604_v9 = vmax.f32 %v1595_v26, %v5360_v7 }
 0x882   :  { %v1252_v13 = vrot.slane %v1251_v14, 1  ;;  %v1427_v27 = vrot.slane %v1426_v8, 2  ;;  %v1605_v28 = vrot.slane %v1604_v9, 4 }
 0x884   :  { %v1253_v29 = vmax.f32 %v1251_v14, %v1252_v13  ;;  %v1428_v30 = vmax.f32 %v1426_v8, %v1427_v27  ;;  %v1606_v31 = vmax.f32 %v1604_v9, %v1605_v28 }
 0x886   :  { %v1254_v58 = vsub.f32 %v1238_v11, %v1253_v29  ;;  %v1255_v32 = vsub.f32 %v5336_v6, %v1253_v29  ;;  %v1429_v33 = vrot.slane %v1428_v30, 1  ;;  %v1607_v34 = vrot.slane %v1606_v31, 2 }
 0x888   :  { %v1256_v35 = vmul.f32 1.442695, %v1254_v58  ;;  %v1258_v36 = vmul.f32 1.442695, %v1255_v32  ;;  %v1430_v37 = vmax.f32 %v1428_v30, %v1429_v33  ;;  %v1608_v39 = vmax.f32 %v1606_v31, %v1607_v34  ;;  %v1448_v58 = vpop.permute.xlu1 %1447 }
 0x88a   :  { %6042 = vpow2.f32 %v1256_v35  ;;  %v1431_v40 = vsub.f32 %v1415_v20, %v1430_v37  ;;  %v1432_v25 = vsub.f32 %v5348_v16, %v1430_v37  ;;  %v1609_v43 = vrot.slane %v1608_v39, 1 }
 0x88b   :  { %6044 = vpow2.f32 %v1258_v36  ;;  %v6338_v37 = vmov 8  }
 0x88c   :  { %v1433_v45 = vmul.f32 1.442695, %v1431_v40  ;;  %v1435_v46 = vmul.f32 1.442695, %v1432_v25  ;;  %v1610_v47 = vmax.f32 %v1608_v39, %v1609_v43  ;;  %v1628_v35 = vpop.permute.xlu1 %1627  ;;  %5931 = vset.pattern.permute.xlu0 %v6338_v37  ;;  %v6743_v39 = vld [vmem:[#allocation7] sm:$0xff] }
 0x88d   :  { %1703 = vperm.xlu0 %5931, %v6743_v39  }
 0x88e   :  { %6046 = vpow2.f32 %v1433_v45  ;;  %v1611_v15 = vsub.f32 %v1595_v26, %v1610_v47  ;;  %v1612_v48 = vsub.f32 %v5360_v7, %v1610_v47 }
 0x88f   :  { %6048 = vpow2.f32 %v1435_v46 }
 0x890   :  { %v1613_v54 = vmul.f32 1.442695, %v1611_v15  ;;  %v1615_v49 = vmul.f32 1.442695, %v1612_v48 }
 0x892   :  { %6050 = vpow2.f32 %v1613_v54  ;;  %v1701_v54 = vld [vmem:[#allocation8 + $0x30] sm:$0xff] }
 0x893   :  { %6052 = vpow2.f32 %v1615_v49 }
 0x894   :  { %v6043_v50 = vpop.eup %6042 }
 0x895   :  { %v6045_v51 = vpop.eup %6044 }
 0x896   :  { %v1260_v44 = vadd.f32 %v6045_v51, %v6043_v50 }
 0x898   :  { %v6047_v63 = vpop.eup %6046  ;;  %v1261_v52 = vrot.slane %v1260_v44, 4 }
 0x899   :  { %v6049_v53 = vpop.eup %6048 }
 0x89a   :  { %v1262_v55 = vadd.f32 %v1261_v52, %v1260_v44  ;;  %v1437_v56 = vadd.f32 %v6049_v53, %v6047_v63 }
 0x89c   :  { %v6051_v59 = vpop.eup %6050  ;;  %v1263_v60 = vrot.slane %v1262_v55, 2  ;;  %v1438_v61 = vrot.slane %v1437_v56, 4 }
 0x89d   :  { %v6053_v62 = vpop.eup %6052 }
 0x89e   :  { %v1264_v3 = vadd.f32 %v1263_v60, %v1262_v55  ;;  %v1439_v4 = vadd.f32 %v1438_v61, %v1437_v56  ;;  %v1617_v5 = vadd.f32 %v6053_v62, %v6051_v59 }
 0x8a0   :  { %v1265_v6 = vrot.slane %v1264_v3, 1  ;;  %v1440_v11 = vrot.slane %v1439_v4, 2  ;;  %v1618_v42 = vrot.slane %v1617_v5, 4 }
 0x8a2   :  { %v1266_v12 = vadd.f32 %v1265_v6, %v1264_v3  ;;  %v1441_v16 = vadd.f32 %v1440_v11, %v1439_v4  ;;  %v1619_v20 = vadd.f32 %v1618_v42, %v1617_v5 }
 0x8a4   :  { %6054 = vrcp.f32 %v1266_v12  ;;  %v1442_v21 = vrot.slane %v1441_v16, 1  ;;  %v1620_v22 = vrot.slane %v1619_v20, 2 }
 0x8a6   :  { %v1443_v23 = vadd.f32 %v1442_v21, %v1441_v16  ;;  %v1621_v24 = vadd.f32 %v1620_v22, %v1619_v20 }
 0x8a8   :  { %6056 = vrcp.f32 %v1443_v23  ;;  %v1622_v7 = vrot.slane %v1621_v24, 1 }
 0x8aa   :  { %v1623_v26 = vadd.f32 %v1622_v7, %v1621_v24 }
 0x8ac   :  { %6058 = vrcp.f32 %v1623_v26 }
 0x8ae   :  { %v6055_v14 = vpop.eup %6054 }
 0x8af   :  { %v1268_v8 = vmul.f32 %v6055_v14, %v6043_v50  ;;  %v1269_v9 = vmul.f32 %v6055_v14, %v6045_v51 }
 0x8b1   :  { %v5566_v13 = vpack.c.bf16 %v1269_v9, %v1268_v8  ;;  %v1812_v8 = vld [vmem:[#allocation5 + $0x18] sm:$0xff] }
 0x8b2   :  { %v6057_v27 = vpop.eup %6056 }
 0x8b3   :  { %5567 = vmatpush3.bf16.msra.mxu1 %v5566_v13  ;;  %v1445_v28 = vmul.f32 %v6057_v27, %v6047_v63  ;;  %v1446_v29 = vmul.f32 %v6057_v27, %v6049_v53  ;;  %v6339_v53 = vmov 9  }
 0x8b4   :  { %5568 = vmatprep.subr.bf16.mxu1 %v6335_v19  ;;  %5947 = vset.pattern.permute.xlu1 %v6339_v53 }
 0x8b5   :  { %v5569_v30 = vpack.c.bf16 %v1446_v29, %v1445_v28 }
 0x8b6   :  { %v6059_v31 = vpop.eup %6058  ;;  %5342 = vmatmul.mubr.msk.f32.vlgmr.msra.gmra.mrb[16].mxu1 %vm640_vm10, %v6724_v38 }
 0x8b7   :  { %5570 = vmatpush3.bf16.msra.mxu1 %v5569_v30  ;;  %5353 = vmatprep.mubr.msk.f32.mxu1 %vm6336_vm15, %v6323_v18  ;;  %v1625_v32 = vmul.f32 %v6059_v31, %v6051_v59  ;;  %v1626_v33 = vmul.f32 %v6059_v31, %v6053_v62 }
 0x8b8   :  { %5571 = vmatprep.subr.bf16.mxu1 %v6335_v19 }
 0x8b9   :  { %v5572_v34 = vpack.c.bf16 %v1626_v33, %v1625_v32  ;;  %v6340_v32 = vmov 10   ;;  %v6341_v33 = vmov 11  }
 0x8ba   :  { %5354 = vmatmul.mubr.msk.f32.vlgmr.msra.gmra.mrb[18].mxu1 %vm640_vm10, %v1448_v58  ;;  %5949 = vset.pattern.permute.xlu0 %v6341_v33 }
 0x8bb   :  { %5573 = vmatpush3.bf16.msra.mxu1 %v5572_v34  ;;  %5365 = vmatprep.mubr.msk.f32.mxu1 %vm6336_vm15, %v6323_v18 }
 0x8be   :  { %5366 = vmatmul.mubr.msk.f32.vlgmr.msra.gmra.mrb[20].mxu1 %vm640_vm10, %v1628_v35 }
 0x8bf   :  { %1884 = vmatprep.mubr.f32.mxu1 %v6323_v18 }
 0x90c   :  { %v1704_v49 = vpop.permute.xlu0 %1703 }
 0x913   :  { %v1160_v38 = vpop.f32.mrb[14].mxu1 }
 0x914   :  { %v5331_v36 = vpop.f32.mrb[15].mxu1 }
 0x989   :  { %v1339_v40 = vpop.f32.mrb[16].mxu1 }
 0x98a   :  { %v5576_v25 = vpack.c.bf16 %v1339_v40, %v1160_v38  ;;  %v5343_v43 = vpop.f32.mrb[17].mxu1 }
 0x98d   :  { %v1517_v45 = vpop.f32.mrb[18].mxu1 }
 0x98e   :  { %v5355_v46 = vpop.f32.mrb[19].mxu1 }
 0x991   :  { %v1697_v47 = vpop.f32.mrb[20].mxu1 }
 0x992   :  { %v5574_v15 = vpack.c.bf16 %v1697_v47, %v1517_v45  ;;  %v5367_v48 = vpop.f32.mrb[21].mxu1 }
 0x994   :  { %5575 = vmatprep.subr.bf16.mxu0 %v5574_v15 }
 0x995   :  { %5577 = vmatpush1.bf16.msra.mxu0 %v5576_v25 }
 0x998   :  { %5124 = vmatmul.mubr.msk.f32.vlgmr.msra.gmra.mrb[10].mxu0 %vm640_vm10, %v1701_v54 }
 0x999   :  { %2123 = vmatprep.mubr.f32.mxu0 %v6323_v18 }
 0xa6b   :  { %v1775_v50 = vpop.f32.mrb[10].mxu0 }
 0xa6c   :  { %v6748_v51 = vadd.f32 %v1775_v50, %v1704_v49  ;;  %v1777_v44 = vpop.f32.mrb[11].mxu0 }
 0xa6d   :  { %v6750_v63 = vadd.f32 %v1777_v44, %v1704_v49 }
 0xa6f   :  { %v5942_v52 = vpack.i.bf16 %v6750_v63, %v6748_v51 }
 0xa71   :  { %5943 = vrot.lane.b32.xlu0 %v5942_v52, %s6321_s3  ;;  %5933 = vrot.lane.b32.xlu1 %v5942_v52, %s6320_s29 }
 0xa75   :  { %1806 = vrot.lane.b32.xlu0 %v6750_v63, %s6322_s30  ;;  %5938 = vrot.lane.b32.xlu1 %v5942_v52, %s6319_s4 }
 0xa79   :  { %1804 = vrot.lane.b32.xlu1 %v6748_v51, %s6322_s30 }
 0xa7d   :  { %1814 = vperm.xlu1 %5947, %v6743_v39  }
 0xa81   :  { %5948 = vset.pattern.permute.xlu1 %v6340_v32 }
 0xae3   :  { %v5944_v55 = vpop.permute.xlu0 %5943  ;;  %v5934_v56 = vpop.permute.xlu1 %5933 }
 0xae4   :  { %v5946_v59 = vunpack.i.h.bf16 %v5944_v55  ;;  %v5945_v60 = vunpack.i.l.bf16 %v5944_v55  ;;  %v5936_v61 = vunpack.i.h.bf16 %v5934_v56  ;;  %v5935_v62 = vunpack.i.l.bf16 %v5934_v56 }
 0xae6   :  { %v1801_v6 = vsel %vm93_vm7, %v5946_v59, %v5945_v60  ;;  %v1784_v11 = vsel %vm107_vm6, %v5935_v62, %v5936_v61  ;;  %v1785_v42 = vsel %vm107_vm6, %v5936_v61, %v5935_v62  ;;  %v1800_v22 = vsel %vm93_vm7, %v5945_v60, %v5946_v59 }
 0xae7   :  { %v5939_v3 = vpop.permute.xlu1 %5938  ;;  %v5584_v23 = vpack.c.bf16 %v1801_v6, %v6750_v63  ;;  %v5587_v7 = vpack.c.bf16 %v1800_v22, %v6748_v51  ;;  %v1807_v26 = vpop.permute.xlu0 %1806 }
 0xae8   :  { %v5941_v4 = vunpack.i.h.bf16 %v5939_v3  ;;  %v5940_v5 = vunpack.i.l.bf16 %v5939_v3 }
 0xaea   :  { %v1792_v12 = vsel %vm130_vm5, %v5940_v5, %v5941_v4  ;;  %v1793_v16 = vsel %vm130_vm5, %v5941_v4, %v5940_v5 }
 0xaeb   :  { %v5578_v20 = vpack.c.bf16 %v1792_v12, %v1784_v11  ;;  %v5581_v21 = vpack.c.bf16 %v1793_v16, %v1785_v42  ;;  %v1805_v24 = vpop.permute.xlu1 %1804 }
 0xaec   :  { %v1809_v14 = vsel %vm94_vm8, %v1807_v26, %v1805_v24  ;;  %v1808_v9 = vsel %vm94_vm8, %v1805_v24, %v1807_v26 }
 0xaed   :  { %5580 = vmatprep.subr.msk.bf16.mxu1 %vm6500_vm4, %v5578_v20 }
 0xaee   :  { %5583 = vmatpush1.bf16.msk.msra.mxu1 %vm6500_vm4, %v5581_v21 }
 0xaef   :  { %5586 = vmatprep.subr.msk.bf16.mxu1 %vm6643_vm3, %v5584_v23 }
 0xaf2   :  { %5589 = vmatpush1.bf16.msk.msra.mxu1 %vm6643_vm3, %v5587_v7 }
 0xaf3   :  { %5131 = vmatprep.subr.msk.mxu1 %vm6597_vm13, %v1809_v14 }
 0xaf6   :  { %5132 = vmatpush1.msk.msra.mxu1 %vm6597_vm13, %v1808_v9 }
 0xaf7   :  { %5133 = vmatmul.mubr.msk.f32.vlgmr.msra.gmra.mrb[22].mxu1 %vm436_vm9, %v1812_v8 }
 0xaf8   :  { %2340 = vmatprep.mubr.f32.mxu1 %v6323_v18 }
 0xafc   :  { %v1815_v13 = vpop.permute.xlu1 %1814 }
 0xbca   :  { %v1886_v27 = vpop.f32.mrb[22].mxu1 }
 0xbcb   :  { %v1887_v28 = vadd.f32 %v1886_v27, %v1815_v13  ;;  %v1888_v29 = vpop.f32.mrb[23].mxu1 }
 0xbcc   :  { %v6794_v31 = vadd.f32 %v1888_v29, %v1815_v13 }
 0xbcd   :  { %1891 = vadd.xlane.f32.xlu0 %v1887_v28  ;;  %v1901_v30 = vmul.f32 %v1887_v28, %v1887_v28 }
 0xbce   :  { %v1933_v58 = vmul.f32 %v6794_v31, %v6794_v31 }
 0xbcf   :  { %1902 = vadd.xlane.f32.xlu1 %v1901_v30 }
 0xbd1   :  { %1923 = vadd.xlane.f32.xlu0 %v6794_v31 }
 0xbd5   :  { %1934 = vadd.xlane.f32.xlu0 %v1933_v58 }
 0xbe0   :  { %1956 = vperm.xlu1 %5948, %v6743_v39  }
 0xbeb   :  { %1962 = vperm.xlu0 %5949, %v6743_v39  }
 0xc5a   :  { %v1892_v34 = vpop.xlane.xlu0 %1891 }
 0xc5b   :  { %v1893_v35 = vrot.slane %v1892_v34, 4 }
 0xc5c   :  { %v1903_v38 = vpop.xlane.xlu1 %1902 }
 0xc5d   :  { %v1894_v36 = vadd.f32 %v1893_v35, %v1892_v34  ;;  %v1904_v37 = vrot.slane %v1903_v38, 4 }
 0xc5e   :  { %v1924_v49 = vpop.xlane.xlu0 %1923 }
 0xc5f   :  { %v1895_v40 = vrot.slane %v1894_v36, 2  ;;  %v1905_v25 = vadd.f32 %v1904_v37, %v1903_v38  ;;  %v1925_v44 = vrot.slane %v1924_v49, 4 }
 0xc60   :  { %v1957_v23 = vpop.permute.xlu1 %1956 }
 0xc61   :  { %v1906_v43 = vrot.slane %v1905_v25, 2  ;;  %v1896_v45 = vadd.f32 %v1895_v40, %v1894_v36  ;;  %v1926_v53 = vadd.f32 %v1925_v44, %v1924_v49 }
 0xc62   :  { %v1935_v50 = vpop.xlane.xlu0 %1934 }
 0xc63   :  { %v1897_v46 = vrot.slane %v1896_v45, 1  ;;  %v1907_v47 = vadd.f32 %v1906_v43, %v1905_v25  ;;  %v1936_v52 = vrot.slane %v1935_v50, 4  ;;  %v1927_v56 = vrot.slane %v1926_v53, 2 }
 0xc65   :  { %v1898_v15 = vadd.f32 %v1897_v46, %v1896_v45  ;;  %v1908_v48 = vrot.slane %v1907_v47, 1  ;;  %v1937_v55 = vadd.f32 %v1936_v52, %v1935_v50  ;;  %v1928_v61 = vadd.f32 %v1927_v56, %v1926_v53 }
 0xc67   :  { %5770 = vpush %v1898_v15  ;;  %v1909_v54 = vadd.f32 %v1908_v48, %v1907_v47  ;;  %v1938_v59 = vrot.slane %v1937_v55, 2  ;;  %v1929_v3 = vrot.slane %v1928_v61, 1 }
 0xc69   :  { %5772 = vpush %v1909_v54  ;;  %v1939_v62 = vadd.f32 %v1938_v59, %v1937_v55  ;;  %v1930_v6 = vadd.f32 %v1929_v3, %v1928_v61 }
 0xc6a   :  { %v1963_v7 = vpop.permute.xlu0 %1962 }
 0xc6b   :  { %v1940_v4 = vrot.slane %v1939_v62, 1 }
 0xc6d   :  { %v1941_v11 = vadd.f32 %v1940_v4, %v1939_v62 }
 0xc98   :  { %s5771_s10 = spop %5770 }
 0xc99   :  { %s1900_s19 = smul.f32 0.0009765625, %s5771_s10 }
 0xc9a   :  { %s5773_s20 = spop %5772 }
 0xc9b   :  { %s1912_s21 = smul.f32 %s1900_s19, %s1900_s19  ;;  %v1915_v42 = vstv %s1900_s19 }
 0xc9c   :  { %s1911_s22 = smul.f32 0.0009765625, %s5773_s20  ;;  %v1916_v12 = vsub.f32 %v1887_v28, %v1915_v42 }
 0xc9e   :  { %s1913_s23 = ssub.f32 %s1911_s22, %s1912_s21 }
 0xca0   :  { %s1914_s24 = smax.f32 %s6326_s13, %s1913_s23 }
 0xca1   :  { %s1917_s25 = sadd.f32 1e-05, %s1914_s24 }
 0xca3   :  { %v1918_v60 = vstv %s1917_s25 }
 0xca4   :  { %6060 = vrsqrt.f32 %v1918_v60 }
 0xcae   :  { %v6061_v5 = vpop.eup %6060 }
 0xcaf   :  { %5774 = vpush %v6061_v5 }
 0xcb0   :  { %5776 = vpush %v1930_v6 }
 0xcb1   :  { %5778 = vpush %v1941_v11 }
 0xce0   :  { %s5775_s26 = spop %5774 }
 0xce1   :  { %v1921_v16 = vstv %s5775_s26  ;;  %s5777_s27 = spop %5776 }
 0xce2   :  { %v1922_v20 = vmul.f32 %v1921_v16, %v1916_v12  ;;  %s1932_s2 = smul.f32 0.0009765625, %s5777_s27  ;;  %s5779_s28 = spop %5778 }
 0xce3   :  { %s1943_s6 = smul.f32 0.0009765625, %s5779_s28 }
 0xce4   :  { %s1944_s7 = smul.f32 %s1932_s2, %s1932_s2  ;;  %v1959_v24 = vmul.f32 %v1957_v23, %v1922_v20  ;;  %v1947_v27 = vstv %s1932_s2 }
 0xce5   :  { %v1948_v29 = vsub.f32 %v6794_v31, %v1947_v27 }
 0xce6   :  { %s1945_s8 = ssub.f32 %s1943_s6, %s1944_s7  ;;  %v1965_v26 = vadd.f32 %v1963_v7, %v1959_v24 }
 0xce8   :  { %s1946_s9 = smax.f32 %s6326_s13, %s1945_s8  ;;  %v1969_v14 = vmul.f32 0.70710677, %v1965_v26 }
 0xce9   :  { %s1949_s11 = sadd.f32 1e-05, %s1946_s9 }
 0xcea   :  { %v1975_v8 = vand.u32 2147483647, %v1969_v14  ;;  %vm1971_vm0 = vcmp.ge.f32.partialorder %v1969_v14, 0.0 }
 0xceb   :  { %v1950_v21 = vstv %s1949_s11  ;;  %v1973_v16 = vsel %vm1971_vm0, 1.0, %v6327_v2 }
 0xcec   :  { %6062 = vrsqrt.f32 %v1950_v21  ;;  %v1977_v9 = vmul.f32 0.3275911, %v1975_v8  ;;  %v2001_v43 = vsub.f32 0.0, %v1975_v8 }
 0xcee   :  { %v1979_v13 = vadd.f32 1.0, %v1977_v9  ;;  %v2003_v47 = vmul.f32 %v2001_v43, %v1975_v8  ;;  %v1967_v8 = vmul.f32 0.5, %v1965_v26 }
 0xcf0   :  { %6064 = vrcp.f32 %v1979_v13  ;;  %v2005_v48 = vmul.f32 1.442695, %v2003_v47 }
 0xcf6   :  { %v6063_v22 = vpop.eup %6062 }
 0xcf7   :  { %5780 = vpush %v6063_v22 }
 0xcfa   :  { %v6065_v28 = vpop.eup %6064 }
 0xcfb   :  { %v1983_v30 = vmul.f32 1.0614054, %v6065_v28 }
 0xcfd   :  { %v1985_v34 = vadd.f32 -1.4531521, %v1983_v30 }
 0xcff   :  { %v1987_v36 = vmul.f32 %v6065_v28, %v1985_v34 }
 0xd01   :  { %v1989_v25 = vadd.f32 1.4214138, %v1987_v36 }
 0xd03   :  { %v1991_v46 = vmul.f32 %v6065_v28, %v1989_v25 }
 0xd05   :  { %v1993_v15 = vadd.f32 -0.28449672, %v1991_v46 }
 0xd07   :  { %v1995_v54 = vmul.f32 %v6065_v28, %v1993_v15 }
 0xd09   :  { %v1997_v52 = vadd.f32 0.2548296, %v1995_v54 }
 0xd0b   :  { %v1999_v59 = vmul.f32 %v6065_v28, %v1997_v52  ;;  %v2051_v52 = vld [vmem:[#allocation5 + $0x20] sm:$0xff] }
 0xd28   :  { %s5781_s12 = spop %5780 }
 0xd29   :  { %v1953_v58 = vstv %s5781_s12 }
 0xd2a   :  { %v1954_v32 = vmul.f32 %v1953_v58, %v1948_v29  ;;  %v6342_v29 = vmov 12  }
 0xd2b   :  { %5965 = vset.pattern.permute.xlu1 %v6342_v29  ;;  %v6158_v29 = vld [vmem:[#allocation2 + $0x10] sm:$0xff] }
 0xd2c   :  { %v1960_v33 = vmul.f32 %v1957_v23, %v1954_v32 }
 0xd2e   :  { %v1966_v35 = vadd.f32 %v1963_v7, %v1960_v33 }
 0xd30   :  { %v1970_v38 = vmul.f32 0.70710677, %v1966_v35  ;;  %v1968_v9 = vmul.f32 0.5, %v1966_v35 }
 0xd32   :  { %v1976_v37 = vand.u32 2147483647, %v1970_v38  ;;  %vm1972_vm1 = vcmp.ge.f32.partialorder %v1970_v38, 0.0 }
 0xd33   :  { %v1974_v23 = vsel %vm1972_vm1, 1.0, %v6327_v2 }
 0xd34   :  { %v1978_v40 = vmul.f32 0.3275911, %v1976_v37  ;;  %v2002_v31 = vsub.f32 0.0, %v1976_v37 }
 0xd36   :  { %v1980_v45 = vadd.f32 1.0, %v1978_v40  ;;  %v2004_v50 = vmul.f32 %v2002_v31, %v1976_v37 }
 0xd38   :  { %6066 = vrcp.f32 %v1980_v45  ;;  %v2007_v55 = vmul.f32 1.442695, %v2004_v50 }
 0xd39   :  { %6068 = vpow2.f32 %v2005_v48 }
 0xd3a   :  { %6070 = vpow2.f32 %v2007_v55 }
 0xd42   :  { %v6067_v49 = vpop.eup %6066 }
 0xd43   :  { %v1984_v44 = vmul.f32 1.0614054, %v6067_v49  ;;  %v6069_v62 = vpop.eup %6068 }
 0xd44   :  { %v2009_v3 = vmul.f32 %v6069_v62, %v1999_v59  ;;  %v6071_v12 = vpop.eup %6070 }
 0xd45   :  { %v1986_v53 = vadd.f32 -1.4531521, %v1984_v44 }
 0xd46   :  { %v2011_v6 = vsub.f32 1.0, %v2009_v3 }
 0xd47   :  { %v1988_v56 = vmul.f32 %v6067_v49, %v1986_v53  ;;  %v6157_v53 = vld [vmem:[#allocation2] sm:$0xff] }
 0xd48   :  { %v2013_v20 = vmul.f32 %v2011_v6, %v1973_v16 }
 0xd49   :  { %v1990_v60 = vadd.f32 1.4214138, %v1988_v56 }
 0xd4a   :  { %v2015_v24 = vadd.f32 1.0, %v2013_v20 }
 0xd4b   :  { %v1992_v61 = vmul.f32 %v6067_v49, %v1990_v60 }
 0xd4c   :  { %v2017_v27 = vmul.f32 %v2015_v24, %v1967_v8  ;;  %v2353_v8 = vld [vmem:[#allocation8 + $0x48] sm:$0xff] }
 0xd4d   :  { %v1994_v4 = vadd.f32 -0.28449672, %v1992_v61 }
 0xd4f   :  { %v1996_v5 = vmul.f32 %v6067_v49, %v1994_v4  ;;  %v6343_v4 = vmov 13  }
 0xd51   :  { %v1998_v11 = vadd.f32 0.2548296, %v1996_v5  ;;  %v6344_v5 = vmov 14  }
 0xd52   :  { %5967 = vset.pattern.permute.xlu0 %v6344_v5 }
 0xd53   :  { %v2000_v42 = vmul.f32 %v6067_v49, %v1998_v11 }
 0xd55   :  { %v2010_v21 = vmul.f32 %v6071_v12, %v2000_v42 }
 0xd57   :  { %v2012_v22 = vsub.f32 1.0, %v2010_v21 }
 0xd59   :  { %v2014_v7 = vmul.f32 %v2012_v22, %v1974_v23 }
 0xd5b   :  { %v2016_v13 = vadd.f32 1.0, %v2014_v7 }
 0xd5d   :  { %v2018_v28 = vmul.f32 %v2016_v13, %v1968_v9  ;;  %v2354_v9 = vld [vmem:[#allocation8 + $0x50] sm:$0xff] }
 0xd5f   :  { %v5950_v14 = vpack.i.bf16 %v2018_v28, %v2017_v27 }
 0xd61   :  { %5951 = vrot.lane.b32.xlu1 %v5950_v14, %s6320_s29 }
 0xd65   :  { %5956 = vrot.lane.b32.xlu1 %v5950_v14, %s6319_s4 }
 0xd69   :  { %5961 = vrot.lane.b32.xlu1 %v5950_v14, %s6321_s3 }
 0xd6d   :  { %2043 = vrot.lane.b32.xlu1 %v2017_v27, %s6322_s30 }
 0xd71   :  { %2045 = vrot.lane.b32.xlu1 %v2018_v28, %s6322_s30 }
 0xd75   :  { %2053 = vperm.xlu1 %5965, %v6743_v39  }
 0xd79   :  { %5966 = vset.pattern.permute.xlu1 %v6343_v4 }
 0xdd3   :  { %v5952_v26 = vpop.permute.xlu1 %5951 }
 0xdd4   :  { %v5954_v30 = vunpack.i.h.bf16 %v5952_v26  ;;  %v5953_v58 = vunpack.i.l.bf16 %v5952_v26  ;;  %v6159_v26 = vld [vmem:[#allocation2 + $0x8] sm:$0xff] }
 0xdd6   :  { %v2023_v35 = vsel %vm107_vm6, %v5953_v58, %v5954_v30  ;;  %v2024_v38 = vsel %vm107_vm6, %v5954_v30, %v5953_v58  ;;  %v6160_v30 = vld [vmem:[#allocation2 + $0x18] sm:$0xff] }
 0xdd7   :  { %v5957_v32 = vpop.permute.xlu1 %5956 }
 0xdd8   :  { %v5959_v33 = vunpack.i.h.bf16 %v5957_v32  ;;  %v5958_v34 = vunpack.i.l.bf16 %v5957_v32 }
 0xdda   :  { %v2031_v36 = vsel %vm130_vm5, %v5958_v34, %v5959_v33  ;;  %v2032_v37 = vsel %vm130_vm5, %v5959_v33, %v5958_v34 }
 0xddb   :  { %v5590_v40 = vpack.c.bf16 %v2031_v36, %v2023_v35  ;;  %v5593_v25 = vpack.c.bf16 %v2032_v37, %v2024_v38  ;;  %v5962_v43 = vpop.permute.xlu1 %5961 }
 0xddc   :  { %v5964_v45 = vunpack.i.h.bf16 %v5962_v43  ;;  %v5963_v46 = vunpack.i.l.bf16 %v5962_v43 }
 0xddd   :  { %5592 = vmatprep.subr.msk.bf16.mxu0 %vm6500_vm4, %v5590_v40 }
 0xdde   :  { %v2039_v47 = vsel %vm93_vm7, %v5963_v46, %v5964_v45  ;;  %v2040_v15 = vsel %vm93_vm7, %v5964_v45, %v5963_v46  ;;  %5595 = vmatpush1.bf16.msk.msra.mxu0 %vm6500_vm4, %v5593_v25 }
 0xddf   :  { %v5596_v48 = vpack.c.bf16 %v2040_v15, %v2018_v28  ;;  %v5599_v31 = vpack.c.bf16 %v2039_v47, %v2017_v27  ;;  %v2044_v54 = vpop.permute.xlu1 %2043  ;;  %v5602_v28 = vpack.c.bf16 %v2354_v9, %v2353_v8 }
 0xde1   :  { %5598 = vmatprep.subr.msk.bf16.mxu0 %vm6643_vm3, %v5596_v48 }
 0xde2   :  { %5601 = vmatpush1.bf16.msk.msra.mxu0 %vm6643_vm3, %v5599_v31 }
 0xde3   :  { %v2046_v49 = vpop.permute.xlu1 %2045 }
 0xde4   :  { %v2047_v50 = vsel %vm94_vm8, %v2044_v54, %v2046_v49  ;;  %v2048_v44 = vsel %vm94_vm8, %v2046_v49, %v2044_v54 }
 0xde5   :  { %5140 = vmatprep.subr.msk.mxu0 %vm6597_vm13, %v2048_v44  ;;  %v6345_v44 = vmov 15  }
 0xde6   :  { %5141 = vmatpush1.msk.msra.mxu0 %vm6597_vm13, %v2047_v50 }
 0xde7   :  { %5142 = vmatmul.mubr.msk.f32.vlgmr.msra.gmra.mrb[12].mxu0 %vm436_vm9, %v2051_v52  ;;  %5603 = vmatprep.subr.bf16.mxu0 %v5602_v28 }
 0xde8   :  { %5372 = vmatprep.mubr.f32.mxu0 %v6157_v53  ;;  %v6857_v53 = vld [vmem:[#allocation7 + $0x8] sm:$0xff] }
 0xded   :  { %5605 = vmatpush3.bf16.xpose.msra.mxu0 %v5602_v28 }
 0xdf4   :  { %v2054_v55 = vpop.permute.xlu1 %2053  ;;  %5373 = vmatmul.mubr.f32.vlgmr.msra.gmra.mrb[14].mxu0 %v6158_v29 }
 0xdf5   :  { %5375 = vmatprep.mubr.f32.mxu0 %v6159_v26 }
 0xdf8   :  { %5376 = vmatmul.mubr.f32.gmra.mrb[16].mxu0 %v6160_v30 }
 0xeba   :  { %v2125_v56 = vpop.f32.mrb[12].mxu0 }
 0xebb   :  { %v6841_v59 = vadd.f32 %v2125_v56, %v2054_v55  ;;  %v2127_v60 = vpop.f32.mrb[13].mxu0 }
 0xebc   :  { %v6843_v61 = vadd.f32 %v2127_v60, %v2054_v55 }
 0xebd   :  { %2130 = vadd.xlane.f32.xlu1 %v6841_v59  ;;  %v2140_v62 = vmul.f32 %v6841_v59, %v6841_v59 }
 0xebe   :  { %v2172_v3 = vmul.f32 %v6843_v61, %v6843_v61 }
 0xebf   :  { %2141 = vadd.xlane.f32.xlu0 %v2140_v62 }
 0xec1   :  { %2162 = vadd.xlane.f32.xlu1 %v6843_v61 }
 0xec3   :  { %2173 = vadd.xlane.f32.xlu0 %v2172_v3 }
 0xed2   :  { %2195 = vperm.xlu1 %5966, %v6743_v39  }
 0xed6   :  { %5968 = vset.pattern.permute.xlu1 %v6345_v44 }
 0xed7   :  { %2263 = vperm.xlu1 %5968, %v6743_v39  }
 0xed9   :  { %2201 = vperm.xlu0 %5967, %v6743_v39  }
 0xedb   :  { %2267 = vperm.xlu1 %5968, %v6857_v53  }
 0xf4a   :  { %v2131_v6 = vpop.xlane.xlu1 %2130 }
 0xf4b   :  { %v2132_v11 = vrot.slane %v2131_v6, 4 }
 0xf4c   :  { %v2142_v42 = vpop.xlane.xlu0 %2141 }
 0xf4d   :  { %v2133_v12 = vadd.f32 %v2132_v11, %v2131_v6  ;;  %v2143_v16 = vrot.slane %v2142_v42, 4 }
 0xf4e   :  { %v2163_v58 = vpop.xlane.xlu1 %2162 }
 0xf4f   :  { %v2134_v20 = vrot.slane %v2133_v12, 2  ;;  %v2144_v21 = vadd.f32 %v2143_v16, %v2142_v42  ;;  %v2164_v33 = vrot.slane %v2163_v58, 4 }
 0xf50   :  { %v2174_v32 = vpop.xlane.xlu0 %2173 }
 0xf51   :  { %v2145_v22 = vrot.slane %v2144_v21, 2  ;;  %v2135_v23 = vadd.f32 %v2134_v20, %v2133_v12  ;;  %v2175_v34 = vrot.slane %v2174_v32, 4  ;;  %v2165_v35 = vadd.f32 %v2164_v33, %v2163_v58 }
 0xf52   :  { %v2196_v56 = vpop.permute.xlu1 %2195 }
 0xf53   :  { %v2136_v24 = vrot.slane %v2135_v23, 1  ;;  %v2146_v7 = vadd.f32 %v2145_v22, %v2144_v21  ;;  %v2176_v38 = vadd.f32 %v2175_v34, %v2174_v32  ;;  %v2166_v36 = vrot.slane %v2165_v35, 2 }
 0xf55   :  { %v2137_v13 = vadd.f32 %v2136_v24, %v2135_v23  ;;  %v2147_v27 = vrot.slane %v2146_v7, 1  ;;  %v2177_v37 = vrot.slane %v2176_v38, 2  ;;  %v2167_v25 = vadd.f32 %v2166_v36, %v2165_v35 }
 0xf57   :  { %5782 = vpush %v2137_v13  ;;  %v2148_v14 = vadd.f32 %v2147_v27, %v2146_v7  ;;  %v2178_v43 = vadd.f32 %v2177_v37, %v2176_v38  ;;  %v2168_v45 = vrot.slane %v2167_v25, 1  ;;  %v6864_v38 = vpop.f32.mrb[14].mxu0 }
 0xf58   :  { %v2202_v60 = vpop.permute.xlu0 %2201  ;;  %v2421_v37 = vpop.f32.mrb[15].mxu0 }
 0xf59   :  { %5784 = vpush %v2148_v14  ;;  %v2179_v46 = vrot.slane %v2178_v43, 1  ;;  %v2169_v15 = vadd.f32 %v2168_v45, %v2167_v25  ;;  %2702 = vrot.lane.b32.xlu1 %v2421_v37, %s6333_s18  ;;  %5391 = vmatprep.mubr.msk.f32.mxu0 %vm731_vm14, %v2421_v37  ;;  %v6868_v45 = vpop.f32.mrb[16].mxu0 }
 0xf5b   :  { %v2180_v48 = vadd.f32 %v2179_v46, %v2178_v43 }
 0xf5d   :  { %2704 = vrot.lane.b32.xlu1 %v6864_v38, %s6333_s18 }
 0xf88   :  { %s5783_s14 = spop %5782 }
 0xf89   :  { %s2139_s15 = smul.f32 0.0009765625, %s5783_s14 }
 0xf8a   :  { %s5785_s16 = spop %5784 }
 0xf8b   :  { %s2151_s17 = smul.f32 %s2139_s15, %s2139_s15  ;;  %v2154_v31 = vstv %s2139_s15 }
 0xf8c   :  { %s2150_s1 = smul.f32 0.0009765625, %s5785_s16  ;;  %v2155_v54 = vsub.f32 %v6841_v59, %v2154_v31 }
 0xf8e   :  { %s2152_s10 = ssub.f32 %s2150_s1, %s2151_s17 }
 0xf90   :  { %s2153_s19 = smax.f32 %s6326_s13, %s2152_s10 }
 0xf91   :  { %s2156_s20 = sadd.f32 1e-05, %s2153_s19 }
 0xf93   :  { %v2157_v40 = vstv %s2156_s20 }
 0xf94   :  { %6072 = vrsqrt.f32 %v2157_v40 }
 0xf9e   :  { %v6073_v47 = vpop.eup %6072 }
 0xf9f   :  { %5786 = vpush %v6073_v47  ;;  %v6870_v47 = vpop.f32.mrb[17].mxu0 }
 0xfa0   :  { %5788 = vpush %v2169_v15  ;;  %3059 = vrot.lane.b32.xlu1 %v6870_v47, %s6333_s18 }
 0xfa1   :  { %5790 = vpush %v2180_v48 }
 0xfa4   :  { %3061 = vrot.lane.b32.xlu1 %v6868_v45, %s6333_s18 }
 0xfd0   :  { %s5787_s21 = spop %5786 }
 0xfd1   :  { %v2160_v49 = vstv %s5787_s21  ;;  %s5789_s22 = spop %5788 }
 0xfd2   :  { %v2161_v50 = vmul.f32 %v2160_v49, %v2155_v54  ;;  %s2171_s23 = smul.f32 0.0009765625, %s5789_s22  ;;  %s5791_s24 = spop %5790 }
 0xfd3   :  { %s2182_s25 = smul.f32 0.0009765625, %s5791_s24 }
 0xfd4   :  { %s2183_s26 = smul.f32 %s2171_s23, %s2171_s23  ;;  %v2198_v59 = vmul.f32 %v2196_v56, %v2161_v50  ;;  %v2186_v42 = vstv %s2171_s23 }
 0xfd5   :  { %v2187_v16 = vsub.f32 %v6843_v61, %v2186_v42 }
 0xfd6   :  { %s2184_s27 = ssub.f32 %s2182_s25, %s2183_s26  ;;  %v6860_v62 = vadd.f32 %v2202_v60, %v2198_v59 }
 0xfd8   :  { %s2185_s2 = smax.f32 %s6326_s13, %s2184_s27  ;;  %v2208_v3 = vmul.f32 0.70710677, %v6860_v62 }
 0xfd9   :  { %s2188_s28 = sadd.f32 1e-05, %s2185_s2 }
 0xfda   :  { %v2214_v4 = vand.u32 2147483647, %v2208_v3  ;;  %vm2210_vm2 = vcmp.ge.f32.partialorder %v2208_v3, 0.0 }
 0xfdb   :  { %v2189_v52 = vstv %s2188_s28 }
 0xfdc   :  { %6074 = vrsqrt.f32 %v2189_v52  ;;  %v2216_v5 = vmul.f32 0.3275911, %v2214_v4  ;;  %v2240_v28 = vsub.f32 0.0, %v2214_v4 }
 0xfde   :  { %v2218_v6 = vadd.f32 1.0, %v2216_v5  ;;  %v2242_v26 = vmul.f32 %v2240_v28, %v2214_v4 }
 0xfe0   :  { %6076 = vrcp.f32 %v2218_v6  ;;  %v2244_v58 = vmul.f32 1.442695, %v2242_v26 }
 0xfe6   :  { %v6075_v55 = vpop.eup %6074 }
 0xfe7   :  { %5792 = vpush %v6075_v55  ;;  %v2212_v55 = vsel %vm2210_vm2, 1.0, %v6327_v2 }
 0xfea   :  { %v6077_v11 = vpop.eup %6076 }
 0xfeb   :  { %v2222_v12 = vmul.f32 1.0614054, %v6077_v11 }
 0xfed   :  { %v2224_v22 = vadd.f32 -1.4531521, %v2222_v12  ;;  %v2206_v12 = vmul.f32 0.5, %v6860_v62 }
 0xfef   :  { %v2226_v7 = vmul.f32 %v6077_v11, %v2224_v22 }
 0xff1   :  { %v2228_v13 = vadd.f32 1.4214138, %v2226_v7  ;;  %v2260_v7 = vld [vmem:[#allocation8 + $0x38] sm:$0xff] }
 0xff3   :  { %v2230_v29 = vmul.f32 %v6077_v11, %v2228_v13  ;;  %v6346_v13 = vmov 16  }
 0xff4   :  { %5969 = vset.pattern.permute.xlu1 %v6346_v13  ;;  %5970 = vset.pattern.permute.xlu0 %v6346_v13 }
 0xff5   :  { %v2232_v30 = vadd.f32 -0.28449672, %v2230_v29  ;;  %2443 = vperm.xlu1 %5969, %v6743_v39   ;;  %2447 = vperm.xlu0 %5970, %v6857_v53  }
 0xff7   :  { %v2234_v61 = vmul.f32 %v6077_v11, %v2232_v30 }
 0xff9   :  { %v2236_v36 = vadd.f32 0.2548296, %v2234_v61 }
 0xffb   :  { %v2238_v46 = vmul.f32 %v6077_v11, %v2236_v36 }
0x1018   :  { %s5793_s6 = spop %5792 }
0x1019   :  { %v2192_v20 = vstv %s5793_s6 }
0x101a   :  { %v2193_v21 = vmul.f32 %v2192_v20, %v2187_v16 }
0x101c   :  { %v2199_v23 = vmul.f32 %v2196_v56, %v2193_v21 }
0x101e   :  { %v2205_v24 = vadd.f32 %v2202_v60, %v2199_v23 }
0x1020   :  { %v2209_v8 = vmul.f32 0.70710677, %v2205_v24  ;;  %v2207_v3 = vmul.f32 0.5, %v2205_v24 }
0x1022   :  { %v2215_v9 = vand.u32 2147483647, %v2209_v8  ;;  %vm2211_vm11 = vcmp.ge.f32.partialorder %v2209_v8, 0.0  ;;  %v2261_v8 = vld [vmem:[#allocation8 + $0x40] sm:$0xff] }
0x1023   :  { %v2213_v11 = vsel %vm2211_vm11, 1.0, %v6327_v2 }
0x1024   :  { %v2217_v27 = vmul.f32 0.3275911, %v2215_v9  ;;  %v2241_v32 = vsub.f32 0.0, %v2215_v9 }
0x1026   :  { %v2219_v14 = vadd.f32 1.0, %v2217_v27  ;;  %v2243_v34 = vmul.f32 %v2241_v32, %v2215_v9  ;;  %v2440_v9 = vld [vmem:[#allocation8 + $0x58] sm:$0xff] }
0x1028   :  { %6078 = vrcp.f32 %v2219_v14  ;;  %v2246_v25 = vmul.f32 1.442695, %v2243_v34 }
0x1029   :  { %6080 = vpow2.f32 %v2244_v58 }
0x102a   :  { %6082 = vpow2.f32 %v2246_v25 }
0x1032   :  { %v6079_v33 = vpop.eup %6078 }
0x1033   :  { %v2223_v35 = vmul.f32 1.0614054, %v6079_v33  ;;  %v6081_v48 = vpop.eup %6080 }
0x1034   :  { %v2248_v54 = vmul.f32 %v6081_v48, %v2238_v46  ;;  %v6083_v59 = vpop.eup %6082 }
0x1035   :  { %v2225_v40 = vadd.f32 -1.4531521, %v2223_v35 }
0x1036   :  { %v2250_v44 = vsub.f32 1.0, %v2248_v54 }
0x1037   :  { %v2227_v43 = vmul.f32 %v6079_v33, %v2225_v40 }
0x1038   :  { %v2252_v60 = vmul.f32 %v2250_v44, %v2212_v55 }
0x1039   :  { %v2229_v15 = vadd.f32 1.4214138, %v2227_v43 }
0x103a   :  { %v2254_v6 = vadd.f32 1.0, %v2252_v60 }
0x103b   :  { %v2231_v31 = vmul.f32 %v6079_v33, %v2229_v15 }
0x103c   :  { %v2256_v20 = vmul.f32 %v2254_v6, %v2206_v12 }
0x103d   :  { %v2233_v49 = vadd.f32 -0.28449672, %v2231_v31 }
0x103e   :  { %v2258_v23 = vadd.f32 %v2256_v20, %v6748_v51  ;;  %v2441_v51 = vld [vmem:[#allocation8 + $0x60] sm:$0xff] }
0x103f   :  { %v2235_v50 = vmul.f32 %v6079_v33, %v2233_v49 }
0x1041   :  { %v2237_v52 = vadd.f32 0.2548296, %v2235_v50 }
0x1043   :  { %v2239_v56 = vmul.f32 %v6079_v33, %v2237_v52 }
0x1045   :  { %v2249_v4 = vmul.f32 %v6083_v59, %v2239_v56 }
0x1047   :  { %v2251_v5 = vsub.f32 1.0, %v2249_v4 }
0x1049   :  { %v2253_v42 = vmul.f32 %v2251_v5, %v2213_v11 }
0x104b   :  { %v2255_v16 = vadd.f32 1.0, %v2253_v42 }
0x104d   :  { %v2257_v21 = vmul.f32 %v2255_v16, %v2207_v3 }
0x104f   :  { %v2259_v22 = vadd.f32 %v2257_v21, %v6750_v63  ;;  %v2264_v63 = vpop.permute.xlu1 %2263 }
0x1051   :  { %2276 = vmatprep.subr.mxu1 %v2259_v22 }
0x1052   :  { %2277 = vmatpush1.msra.mxu1 %v2258_v23 }
0x1053   :  { %5143 = vmatmul.mubr.msk.f32.vlgmr.msra.gmra.mrb[24].mxu1 %vm731_vm14, %v2260_v7  ;;  %5607 = vmatprep.subr.bf16.mxu1 %v6583_v0  ;;  %v2268_v62 = vpop.permute.xlu1 %2267 }
0x1054   :  { %2346 = vmatprep.mubr.f32.mxu1 %v6323_v18 }
0x1057   :  { %5144 = vmatmul.mubr.msk.f32.gmra.mrb[26].mxu1 %vm731_vm14, %v2261_v8  ;;  %v2703_v24 = vpop.permute.xlu1 %2702 }
0x1058   :  { %5386 = vmatprep.mubr.f32.mxu1 %v2440_v9 }
0x1059   :  { %5609 = vmatpush3.bf16.xpose.msra.mxu1 %v6583_v0 }
0x105a   :  { %5611 = vmatprep.subr.bf16.mxu1 %v6569_v57 }
0x105b   :  { %v2705_v29 = vpop.permute.xlu1 %2704 }
0x105f   :  { %v3060_v32 = vpop.permute.xlu1 %3059 }
0x1061   :  { %5613 = vmatpush3.bf16.xpose.msra.mxu1 %v6569_v57 }
0x1063   :  { %v3062_v61 = vpop.permute.xlu1 %3061 }
0x1068   :  { %5387 = vmatmul.mubr.f32.vlgmr.msra.gmra.mrb[28].mxu1 %v2441_v51 }
0x1069   :  { %5403 = vmatprep.mubr.msk.f32.mxu1 %vm731_vm14, %v2703_v24 }
0x1074   :  { %v2444_v33 = vpop.permute.xlu1 %2443 }
0x1126   :  { %v2342_v27 = vpop.f32.mrb[24].mxu1 }
0x1127   :  { %v2343_v28 = vadd.f32 %v2342_v27, %v2264_v63  ;;  %v2344_v14 = vpop.f32.mrb[25].mxu1 }
0x1128   :  { %v2345_v39 = vadd.f32 %v2344_v14, %v2264_v63 }
0x1129   :  { %5389 = vmatprep.subr.mxu0 %v2343_v28 }
0x112a   :  { %v2348_v26 = vpop.f32.mrb[26].mxu1  ;;  %5390 = vmatpush3.msra.mxu0 %v2343_v28 }
0x112b   :  { %v2349_v30 = vadd.f32 %v2348_v26, %v2268_v62  ;;  %v2350_v58 = vpop.f32.mrb[27].mxu1  ;;  %5392 = vmatmul.mubr.msk.f32.vlgmr.msra.gmra.mrb[18].mxu0 %vm731_vm14, %v6864_v38  ;;  %5614 = vmatprep.subr.bf16.mxu0 %v6335_v19  ;;  %v2448_v38 = vpop.permute.xlu0 %2447 }
0x112c   :  { %5398 = vmatprep.mubr.msk.f32.mxu0 %vm6336_vm15, %v6323_v18  ;;  %v2351_v53 = vadd.f32 %v2350_v58, %v2268_v62 }
0x112d   :  { %5401 = vmatprep.subr.mxu1 %v2349_v30 }
0x112e   :  { %5402 = vmatpush3.msra.mxu1 %v2349_v30 }
0x112f   :  { %5404 = vmatmul.mubr.msk.f32.vlgmr.msra.gmra.mrb[30].mxu1 %vm731_vm14, %v2705_v29  ;;  %5413 = vmatprep.subr.mxu1 %v2345_v39 }
0x1130   :  { %5414 = vmatpush3.msra.mxu1 %v2345_v39  ;;  %5415 = vmatprep.mubr.msk.f32.mxu1 %vm731_vm14, %v6870_v47 }
0x1131   :  { %5425 = vmatprep.subr.mxu1 %v2351_v53 }
0x1133   :  { %5416 = vmatmul.mubr.msk.f32.vlgmr.msra.gmra.mrb[32].mxu1 %vm731_vm14, %v6868_v45 }
0x1134   :  { %5426 = vmatpush3.msra.mxu1 %v2351_v53  ;;  %5427 = vmatprep.mubr.msk.f32.mxu1 %vm731_vm14, %v3060_v32 }
0x1137   :  { %5428 = vmatmul.mubr.msk.f32.vlgmr.msra.gmra.mrb[34].mxu1 %vm731_vm14, %v3062_v61 }
0x1138   :  { %3311 = vmatprep.mubr.f32.mxu1 %v6323_v18 }
0x113b   :  { %v5388_v34 = vpop.f32.mrb[28].mxu1 }
0x113c   :  { %v2516_v35 = vpop.f32.mrb[29].mxu1  ;;  %v6910_v37 = vadd.f32 %v5388_v34, %v2448_v38 }
0x113d   :  { %v6906_v36 = vadd.f32 %v2516_v35, %v2444_v33 }
0x113f   :  { %2985 = vrot.lane.b32.xlu1 %v6906_v36, %s6337_s0 }
0x1143   :  { %3165 = vrot.lane.b32.xlu1 %v6910_v37, %s6337_s0 }
0x11fe   :  { %v5393_v40 = vpop.f32.mrb[18].mxu0 }
0x11ff   :  { %v2597_v25 = vpop.f32.mrb[19].mxu0 }
0x1200   :  { %v2606_v43 = vmax.f32 %v2597_v25, %v5393_v40 }
0x1202   :  { %v2607_v45 = vrot.slane %v2606_v43, 4  ;;  %v5405_v46 = vpop.f32.mrb[30].mxu1 }
0x1203   :  { %v2776_v47 = vpop.f32.mrb[31].mxu1 }
0x1204   :  { %v2608_v15 = vmax.f32 %v2606_v43, %v2607_v45  ;;  %v2785_v48 = vmax.f32 %v2776_v47, %v5405_v46 }
0x1206   :  { %v2609_v31 = vrot.slane %v2608_v15, 2  ;;  %v2786_v54 = vrot.slane %v2785_v48, 4  ;;  %v5417_v49 = vpop.f32.mrb[32].mxu1 }
0x1207   :  { %v2953_v50 = vpop.f32.mrb[33].mxu1 }
0x1208   :  { %v2610_v44 = vmax.f32 %v2608_v15, %v2609_v31  ;;  %v2787_v52 = vmax.f32 %v2785_v48, %v2786_v54  ;;  %v2962_v55 = vmax.f32 %v2953_v50, %v5417_v49 }
0x120a   :  { %v2611_v56 = vrot.slane %v2610_v44, 1  ;;  %v2788_v59 = vrot.slane %v2787_v52, 2  ;;  %v2963_v60 = vrot.slane %v2962_v55, 4  ;;  %v5429_v4 = vpop.f32.mrb[34].mxu1 }
0x120b   :  { %v3133_v5 = vpop.f32.mrb[35].mxu1 }
0x120c   :  { %v2612_v6 = vmax.f32 %v2610_v44, %v2611_v56  ;;  %v2789_v11 = vmax.f32 %v2787_v52, %v2788_v59  ;;  %v2964_v42 = vmax.f32 %v2962_v55, %v2963_v60  ;;  %v3142_v12 = vmax.f32 %v3133_v5, %v5429_v4 }
0x120e   :  { %v2613_v3 = vsub.f32 %v2597_v25, %v2612_v6  ;;  %v2614_v16 = vsub.f32 %v5393_v40, %v2612_v6  ;;  %v2790_v20 = vrot.slane %v2789_v11, 1  ;;  %v2965_v21 = vrot.slane %v2964_v42, 2 }
0x120f   :  { %v3143_v22 = vrot.slane %v3142_v12, 4 }
0x1210   :  { %v2615_v23 = vmul.f32 1.442695, %v2613_v3  ;;  %v2617_v7 = vmul.f32 1.442695, %v2614_v16  ;;  %v2791_v8 = vmax.f32 %v2789_v11, %v2790_v20  ;;  %v2966_v9 = vmax.f32 %v2964_v42, %v2965_v21 }
0x1211   :  { %v3144_v51 = vmax.f32 %v3142_v12, %v3143_v22 }
0x1212   :  { %6084 = vpow2.f32 %v2615_v23  ;;  %v2792_v63 = vsub.f32 %v2776_v47, %v2791_v8  ;;  %v2793_v62 = vsub.f32 %v5405_v46, %v2791_v8  ;;  %v2967_v24 = vrot.slane %v2966_v9, 1 }
0x1213   :  { %6086 = vpow2.f32 %v2617_v7  ;;  %v3145_v13 = vrot.slane %v3144_v51, 2 }
0x1214   :  { %v2794_v27 = vmul.f32 1.442695, %v2792_v63  ;;  %v2796_v28 = vmul.f32 1.442695, %v2793_v62  ;;  %v2968_v14 = vmax.f32 %v2966_v9, %v2967_v24 }
0x1215   :  { %v3146_v29 = vmax.f32 %v3144_v51, %v3145_v13 }
0x1216   :  { %6088 = vpow2.f32 %v2794_v27  ;;  %v2969_v26 = vsub.f32 %v2953_v50, %v2968_v14  ;;  %v2970_v30 = vsub.f32 %v5417_v49, %v2968_v14 }
0x1217   :  { %6090 = vpow2.f32 %v2796_v28  ;;  %v3147_v58 = vrot.slane %v3146_v29, 1 }
0x1218   :  { %v2971_v39 = vmul.f32 1.442695, %v2969_v26  ;;  %v2973_v53 = vmul.f32 1.442695, %v2970_v30 }
0x1219   :  { %v3148_v32 = vmax.f32 %v3146_v29, %v3147_v58 }
0x121a   :  { %6092 = vpow2.f32 %v2971_v39 }
0x121b   :  { %6094 = vpow2.f32 %v2973_v53  ;;  %v3149_v61 = vsub.f32 %v3133_v5, %v3148_v32  ;;  %v3150_v33 = vsub.f32 %v5429_v4, %v3148_v32 }
0x121c   :  { %v6085_v34 = vpop.eup %6084 }
0x121d   :  { %v6087_v35 = vpop.eup %6086  ;;  %v3151_v38 = vmul.f32 1.442695, %v3149_v61  ;;  %v3153_v40 = vmul.f32 1.442695, %v3150_v33  ;;  %v2986_v61 = vpop.permute.xlu1 %2985 }
0x121e   :  { %v2619_v25 = vadd.f32 %v6087_v35, %v6085_v34 }
0x121f   :  { %6096 = vpow2.f32 %v3151_v38  ;;  %v6930_v38 = vld [vmem:[#allocation7] sm:$0xff] }
0x1220   :  { %v6089_v43 = vpop.eup %6088  ;;  %v2620_v45 = vrot.slane %v2619_v25, 4  ;;  %6098 = vpow2.f32 %v3153_v40 }
0x1221   :  { %v6091_v46 = vpop.eup %6090 }
0x1222   :  { %v2621_v47 = vadd.f32 %v2620_v45, %v2619_v25  ;;  %v2798_v15 = vadd.f32 %v6091_v46, %v6089_v43 }
0x1224   :  { %v6093_v48 = vpop.eup %6092  ;;  %v2622_v31 = vrot.slane %v2621_v47, 2  ;;  %v2799_v54 = vrot.slane %v2798_v15, 4 }
0x1225   :  { %v6095_v49 = vpop.eup %6094 }
0x1226   :  { %v2623_v50 = vadd.f32 %v2622_v31, %v2621_v47  ;;  %v2800_v44 = vadd.f32 %v2799_v54, %v2798_v15  ;;  %v2975_v52 = vadd.f32 %v6095_v49, %v6093_v48 }
0x1228   :  { %v2624_v55 = vrot.slane %v2623_v50, 1  ;;  %v2801_v56 = vrot.slane %v2800_v44, 2  ;;  %v2976_v59 = vrot.slane %v2975_v52, 4 }
0x1229   :  { %v6097_v60 = vpop.eup %6096 }
0x122a   :  { %v6099_v4 = vpop.eup %6098  ;;  %v2625_v5 = vadd.f32 %v2624_v55, %v2623_v50  ;;  %v2802_v6 = vadd.f32 %v2801_v56, %v2800_v44  ;;  %v2977_v11 = vadd.f32 %v2976_v59, %v2975_v52 }
0x122b   :  { %v3155_v42 = vadd.f32 %v6099_v4, %v6097_v60 }
0x122c   :  { %6100 = vrcp.f32 %v2625_v5  ;;  %v2803_v12 = vrot.slane %v2802_v6, 1  ;;  %v2978_v3 = vrot.slane %v2977_v11, 2 }
0x122d   :  { %v3156_v16 = vrot.slane %v3155_v42, 4 }
0x122e   :  { %v2804_v20 = vadd.f32 %v2803_v12, %v2802_v6  ;;  %v2979_v21 = vadd.f32 %v2978_v3, %v2977_v11 }
0x122f   :  { %v3157_v22 = vadd.f32 %v3156_v16, %v3155_v42 }
0x1230   :  { %6102 = vrcp.f32 %v2804_v20  ;;  %v2980_v23 = vrot.slane %v2979_v21, 1 }
0x1231   :  { %v3158_v7 = vrot.slane %v3157_v22, 2 }
0x1232   :  { %v2981_v8 = vadd.f32 %v2980_v23, %v2979_v21 }
0x1233   :  { %v3159_v9 = vadd.f32 %v3158_v7, %v3157_v22 }
0x1234   :  { %6104 = vrcp.f32 %v2981_v8 }
0x1235   :  { %v3160_v51 = vrot.slane %v3159_v9, 1 }
0x1236   :  { %v6101_v63 = vpop.eup %6100 }
0x1237   :  { %v3161_v62 = vadd.f32 %v3160_v51, %v3159_v9  ;;  %v2627_v24 = vmul.f32 %v6101_v63, %v6085_v34  ;;  %v2628_v13 = vmul.f32 %v6101_v63, %v6087_v35  ;;  %v3166_v35 = vpop.permute.xlu1 %3165 }
0x1239   :  { %6106 = vrcp.f32 %v3161_v62  ;;  %v5615_v27 = vpack.c.bf16 %v2628_v13, %v2627_v24 }
0x123a   :  { %v6103_v28 = vpop.eup %6102 }
0x123b   :  { %5616 = vmatpush3.bf16.msra.mxu0 %v5615_v27  ;;  %v2806_v14 = vmul.f32 %v6103_v28, %v6089_v43  ;;  %v2807_v29 = vmul.f32 %v6103_v28, %v6091_v46 }
0x123c   :  { %5617 = vmatprep.subr.bf16.mxu0 %v6335_v19 }
0x123d   :  { %v5618_v26 = vpack.c.bf16 %v2807_v29, %v2806_v14  ;;  %v3350_v14 = vld [vmem:[#allocation5 + $0x28] sm:$0xff] }
0x123e   :  { %v6105_v30 = vpop.eup %6104  ;;  %5399 = vmatmul.mubr.msk.f32.vlgmr.msra.gmra.mrb[20].mxu0 %vm640_vm10, %v6906_v36 }
0x123f   :  { %5619 = vmatpush3.bf16.msra.mxu0 %v5618_v26  ;;  %5410 = vmatprep.mubr.msk.f32.mxu0 %vm6336_vm15, %v6323_v18  ;;  %v2983_v58 = vmul.f32 %v6105_v30, %v6093_v48  ;;  %v2984_v39 = vmul.f32 %v6105_v30, %v6095_v49  ;;  %v3239_v49 = vld [vmem:[#allocation8 + $0x68] sm:$0xff] }
0x1240   :  { %5620 = vmatprep.subr.bf16.mxu0 %v6335_v19 }
0x1241   :  { %v5621_v53 = vpack.c.bf16 %v2984_v39, %v2983_v58 }
0x1242   :  { %5411 = vmatmul.mubr.msk.f32.vlgmr.msra.gmra.mrb[22].mxu0 %vm640_vm10, %v6910_v37  ;;  %v6347_v37 = vmov 17  }
0x1243   :  { %v6107_v32 = vpop.eup %6106  ;;  %5622 = vmatpush3.bf16.msra.mxu0 %v5621_v53  ;;  %5422 = vmatprep.mubr.msk.f32.mxu0 %vm6336_vm15, %v6323_v18 }
0x1244   :  { %5623 = vmatprep.subr.bf16.mxu0 %v6335_v19  ;;  %v3163_v36 = vmul.f32 %v6107_v32, %v6097_v60  ;;  %v3164_v33 = vmul.f32 %v6107_v32, %v6099_v4  ;;  %5971 = vset.pattern.permute.xlu0 %v6347_v37  ;;  %v6348_v60 = vmov 18  }
0x1245   :  { %3241 = vperm.xlu0 %5971, %v6930_v38   ;;  %5987 = vset.pattern.permute.xlu1 %v6348_v60 }
0x1246   :  { %5423 = vmatmul.mubr.msk.f32.vlgmr.msra.gmra.mrb[24].mxu0 %vm640_vm10, %v2986_v61  ;;  %v5624_v34 = vpack.c.bf16 %v3164_v33, %v3163_v36  ;;  %v6349_v36 = vmov 19   ;;  %v6350_v33 = vmov 20  }
0x1247   :  { %5434 = vmatprep.mubr.msk.f32.mxu0 %vm6336_vm15, %v6323_v18 }
0x1248   :  { %5625 = vmatpush3.bf16.msra.mxu0 %v5624_v34 }
0x1249   :  { %5989 = vset.pattern.permute.xlu0 %v6350_v33 }
0x124b   :  { %5435 = vmatmul.mubr.msk.f32.vlgmr.msra.gmra.mrb[26].mxu0 %vm640_vm10, %v3166_v35 }
0x124c   :  { %3422 = vmatprep.mubr.f32.mxu0 %v6323_v18 }
0x12c4   :  { %v3242_v50 = vpop.permute.xlu0 %3241 }
0x1311   :  { %v2698_v40 = vpop.f32.mrb[20].mxu0 }
0x1312   :  { %v5400_v25 = vpop.f32.mrb[21].mxu0 }
0x1315   :  { %v2877_v43 = vpop.f32.mrb[22].mxu0 }
0x1316   :  { %v5628_v45 = vpack.c.bf16 %v2877_v43, %v2698_v40  ;;  %v5412_v46 = vpop.f32.mrb[23].mxu0 }
0x1319   :  { %v3055_v47 = vpop.f32.mrb[24].mxu0 }
0x131a   :  { %v5424_v15 = vpop.f32.mrb[25].mxu0 }
0x131e   :  { %v3235_v48 = vpop.f32.mrb[26].mxu0 }
0x131f   :  { %v5626_v31 = vpack.c.bf16 %v3235_v48, %v3055_v47  ;;  %v5436_v54 = vpop.f32.mrb[27].mxu0 }
0x1321   :  { %5627 = vmatprep.subr.bf16.mxu1 %v5626_v31 }
0x1322   :  { %5629 = vmatpush1.bf16.msra.mxu1 %v5628_v45 }
0x1325   :  { %5157 = vmatmul.mubr.msk.f32.vlgmr.msra.gmra.mrb[36].mxu1 %vm640_vm10, %v3239_v49 }
0x1326   :  { %3661 = vmatprep.mubr.f32.mxu1 %v6323_v18 }
0x13f8   :  { %v3313_v44 = vpop.f32.mrb[36].mxu1 }
0x13f9   :  { %v6935_v52 = vadd.f32 %v3313_v44, %v3242_v50  ;;  %v3315_v55 = vpop.f32.mrb[37].mxu1 }
0x13fa   :  { %v6937_v56 = vadd.f32 %v3315_v55, %v3242_v50 }
0x13fc   :  { %v5982_v59 = vpack.i.bf16 %v6937_v56, %v6935_v52 }
0x13fe   :  { %5983 = vrot.lane.b32.xlu0 %v5982_v59, %s6321_s3  ;;  %5973 = vrot.lane.b32.xlu1 %v5982_v59, %s6320_s29 }
0x1402   :  { %3344 = vrot.lane.b32.xlu0 %v6937_v56, %s6322_s30  ;;  %5978 = vrot.lane.b32.xlu1 %v5982_v59, %s6319_s4 }
0x1406   :  { %3342 = vrot.lane.b32.xlu1 %v6935_v52, %s6322_s30 }
0x140a   :  { %3352 = vperm.xlu1 %5987, %v6930_v38  }
0x140e   :  { %5988 = vset.pattern.permute.xlu1 %v6349_v36 }
0x1470   :  { %v5984_v4 = vpop.permute.xlu0 %5983  ;;  %v5974_v5 = vpop.permute.xlu1 %5973 }
0x1471   :  { %v5986_v6 = vunpack.i.h.bf16 %v5984_v4  ;;  %v5985_v11 = vunpack.i.l.bf16 %v5984_v4  ;;  %v5976_v42 = vunpack.i.h.bf16 %v5974_v5  ;;  %v5975_v12 = vunpack.i.l.bf16 %v5974_v5 }
0x1473   :  { %v3339_v21 = vsel %vm93_vm7, %v5986_v6, %v5985_v11  ;;  %v3322_v22 = vsel %vm107_vm6, %v5975_v12, %v5976_v42  ;;  %v3323_v23 = vsel %vm107_vm6, %v5976_v42, %v5975_v12  ;;  %v3338_v63 = vsel %vm93_vm7, %v5985_v11, %v5986_v6 }
0x1474   :  { %v5979_v3 = vpop.permute.xlu1 %5978  ;;  %v5636_v62 = vpack.c.bf16 %v3339_v21, %v6937_v56  ;;  %v5639_v13 = vpack.c.bf16 %v3338_v63, %v6935_v52  ;;  %v3345_v27 = vpop.permute.xlu0 %3344 }
0x1475   :  { %v5981_v16 = vunpack.i.h.bf16 %v5979_v3  ;;  %v5980_v20 = vunpack.i.l.bf16 %v5979_v3 }
0x1477   :  { %v3330_v7 = vsel %vm130_vm5, %v5980_v20, %v5981_v16  ;;  %v3331_v8 = vsel %vm130_vm5, %v5981_v16, %v5980_v20 }
0x1478   :  { %v5630_v9 = vpack.c.bf16 %v3330_v7, %v3322_v22  ;;  %v5633_v51 = vpack.c.bf16 %v3331_v8, %v3323_v23  ;;  %v3343_v24 = vpop.permute.xlu1 %3342 }
0x1479   :  { %v3347_v28 = vsel %vm94_vm8, %v3345_v27, %v3343_v24  ;;  %v3346_v29 = vsel %vm94_vm8, %v3343_v24, %v3345_v27 }
0x147a   :  { %5632 = vmatprep.subr.msk.bf16.mxu0 %vm6500_vm4, %v5630_v9 }
0x147b   :  { %5635 = vmatpush1.bf16.msk.msra.mxu0 %vm6500_vm4, %v5633_v51 }
0x147c   :  { %5638 = vmatprep.subr.msk.bf16.mxu0 %vm6643_vm3, %v5636_v62 }
0x147f   :  { %5641 = vmatpush1.bf16.msk.msra.mxu0 %vm6643_vm3, %v5639_v13 }
0x1480   :  { %5164 = vmatprep.subr.msk.mxu0 %vm6597_vm13, %v3347_v28 }
0x1483   :  { %5165 = vmatpush1.msk.msra.mxu0 %vm6597_vm13, %v3346_v29 }
0x1484   :  { %5166 = vmatmul.mubr.msk.f32.vlgmr.msra.gmra.mrb[28].mxu0 %vm436_vm9, %v3350_v14 }
0x1485   :  { %3878 = vmatprep.mubr.f32.mxu0 %v6323_v18 }
0x1489   :  { %v3353_v26 = vpop.permute.xlu1 %3352 }
0x1557   :  { %v3424_v30 = vpop.f32.mrb[28].mxu0 }
0x1558   :  { %v3425_v58 = vadd.f32 %v3424_v30, %v3353_v26  ;;  %v3426_v39 = vpop.f32.mrb[29].mxu0 }
0x1559   :  { %v6981_v32 = vadd.f32 %v3426_v39, %v3353_v26 }
0x155a   :  { %3429 = vadd.xlane.f32.xlu0 %v3425_v58  ;;  %v3439_v53 = vmul.f32 %v3425_v58, %v3425_v58 }
0x155b   :  { %v3471_v61 = vmul.f32 %v6981_v32, %v6981_v32 }
0x155c   :  { %3440 = vadd.xlane.f32.xlu1 %v3439_v53 }
0x155e   :  { %3461 = vadd.xlane.f32.xlu0 %v6981_v32 }
0x1562   :  { %3472 = vadd.xlane.f32.xlu0 %v3471_v61 }
0x156d   :  { %3494 = vperm.xlu1 %5988, %v6930_v38  }
0x1578   :  { %3500 = vperm.xlu0 %5989, %v6930_v38  }
0x15e7   :  { %v3430_v34 = vpop.xlane.xlu0 %3429 }
0x15e8   :  { %v3431_v35 = vrot.slane %v3430_v34, 4 }
0x15e9   :  { %v3441_v37 = vpop.xlane.xlu1 %3440 }
0x15ea   :  { %v3432_v40 = vadd.f32 %v3431_v35, %v3430_v34  ;;  %v3442_v25 = vrot.slane %v3441_v37, 4 }
0x15eb   :  { %v3462_v50 = vpop.xlane.xlu0 %3461 }
0x15ec   :  { %v3433_v43 = vrot.slane %v3432_v40, 2  ;;  %v3443_v45 = vadd.f32 %v3442_v25, %v3441_v37  ;;  %v3463_v55 = vrot.slane %v3462_v50, 4 }
0x15ed   :  { %v3495_v62 = vpop.permute.xlu1 %3494 }
0x15ee   :  { %v3444_v46 = vrot.slane %v3443_v45, 2  ;;  %v3434_v47 = vadd.f32 %v3433_v43, %v3432_v40  ;;  %v3464_v60 = vadd.f32 %v3463_v55, %v3462_v50 }
0x15ef   :  { %v3473_v44 = vpop.xlane.xlu0 %3472 }
0x15f0   :  { %v3435_v15 = vrot.slane %v3434_v47, 1  ;;  %v3445_v48 = vadd.f32 %v3444_v46, %v3443_v45  ;;  %v3474_v59 = vrot.slane %v3473_v44, 4  ;;  %v3465_v5 = vrot.slane %v3464_v60, 2 }
0x15f2   :  { %v3436_v31 = vadd.f32 %v3435_v15, %v3434_v47  ;;  %v3446_v54 = vrot.slane %v3445_v48, 1  ;;  %v3475_v4 = vadd.f32 %v3474_v59, %v3473_v44  ;;  %v3466_v42 = vadd.f32 %v3465_v5, %v3464_v60 }
0x15f4   :  { %5794 = vpush %v3436_v31  ;;  %v3447_v49 = vadd.f32 %v3446_v54, %v3445_v48  ;;  %v3476_v6 = vrot.slane %v3475_v4, 2  ;;  %v3467_v3 = vrot.slane %v3466_v42, 1 }
0x15f6   :  { %5796 = vpush %v3447_v49  ;;  %v3477_v12 = vadd.f32 %v3476_v6, %v3475_v4  ;;  %v3468_v21 = vadd.f32 %v3467_v3, %v3466_v42 }
0x15f7   :  { %v3501_v13 = vpop.permute.xlu0 %3500 }
0x15f8   :  { %v3478_v16 = vrot.slane %v3477_v12, 1 }
0x15fa   :  { %v3479_v22 = vadd.f32 %v3478_v16, %v3477_v12 }
0x1625   :  { %s5795_s7 = spop %5794 }
0x1626   :  { %s3438_s8 = smul.f32 0.0009765625, %s5795_s7 }
0x1627   :  { %s5797_s9 = spop %5796 }
0x1628   :  { %s3450_s11 = smul.f32 %s3438_s8, %s3438_s8  ;;  %v3453_v23 = vstv %s3438_s8 }
0x1629   :  { %s3449_s12 = smul.f32 0.0009765625, %s5797_s9  ;;  %v3454_v7 = vsub.f32 %v3425_v58, %v3453_v23 }
0x162b   :  { %s3451_s14 = ssub.f32 %s3449_s12, %s3450_s11 }
0x162d   :  { %s3452_s15 = smax.f32 %s6326_s13, %s3451_s14 }
0x162e   :  { %s3455_s16 = sadd.f32 1e-05, %s3452_s15 }
0x1630   :  { %v3456_v11 = vstv %s3455_s16 }
0x1631   :  { %6108 = vrsqrt.f32 %v3456_v11 }
0x163b   :  { %v6109_v20 = vpop.eup %6108 }
0x163c   :  { %5798 = vpush %v6109_v20 }
0x163d   :  { %5800 = vpush %v3468_v21 }
0x163e   :  { %5802 = vpush %v3479_v22 }
0x166d   :  { %s5799_s17 = spop %5798 }
0x166e   :  { %v3459_v8 = vstv %s5799_s17  ;;  %s5801_s1 = spop %5800 }
0x166f   :  { %v3460_v9 = vmul.f32 %v3459_v8, %v3454_v7  ;;  %s3470_s10 = smul.f32 0.0009765625, %s5801_s1  ;;  %s5803_s19 = spop %5802 }
0x1670   :  { %s3481_s20 = smul.f32 0.0009765625, %s5803_s19 }
0x1671   :  { %s3482_s21 = smul.f32 %s3470_s10, %s3470_s10  ;;  %v3497_v24 = vmul.f32 %v3495_v62, %v3460_v9  ;;  %v3485_v30 = vstv %s3470_s10 }
0x1672   :  { %v3486_v39 = vsub.f32 %v6981_v32, %v3485_v30 }
0x1673   :  { %s3483_s22 = ssub.f32 %s3481_s20, %s3482_s21  ;;  %v3503_v27 = vadd.f32 %v3501_v13, %v3497_v24 }
0x1675   :  { %s3484_s23 = smax.f32 %s6326_s13, %s3483_s22  ;;  %v3507_v28 = vmul.f32 0.70710677, %v3503_v27 }
0x1676   :  { %s3487_s24 = sadd.f32 1e-05, %s3484_s23 }
0x1677   :  { %v3513_v14 = vand.u32 2147483647, %v3507_v28  ;;  %vm3509_vm12 = vcmp.ge.f32.partialorder %v3507_v28, 0.0 }
0x1678   :  { %v3488_v51 = vstv %s3487_s24  ;;  %v3511_v8 = vsel %vm3509_vm12, 1.0, %v6327_v2 }
0x1679   :  { %6110 = vrsqrt.f32 %v3488_v51  ;;  %v3515_v29 = vmul.f32 0.3275911, %v3513_v14  ;;  %v3539_v46 = vsub.f32 0.0, %v3513_v14 }
0x167b   :  { %v3517_v26 = vadd.f32 1.0, %v3515_v29  ;;  %v3541_v48 = vmul.f32 %v3539_v46, %v3513_v14  ;;  %v3505_v14 = vmul.f32 0.5, %v3503_v27 }
0x167d   :  { %6112 = vrcp.f32 %v3517_v26  ;;  %v3543_v54 = vmul.f32 1.442695, %v3541_v48 }
0x1683   :  { %v6111_v63 = vpop.eup %6110 }
0x1684   :  { %5804 = vpush %v6111_v63 }
0x1687   :  { %v6113_v58 = vpop.eup %6112 }
0x1688   :  { %v3521_v53 = vmul.f32 1.0614054, %v6113_v58 }
0x168a   :  { %v3523_v34 = vadd.f32 -1.4531521, %v3521_v53 }
0x168c   :  { %v3525_v40 = vmul.f32 %v6113_v58, %v3523_v34 }
0x168e   :  { %v3527_v45 = vadd.f32 1.4214138, %v3525_v40 }
0x1690   :  { %v3529_v15 = vmul.f32 %v6113_v58, %v3527_v45 }
0x1692   :  { %v3531_v31 = vadd.f32 -0.28449672, %v3529_v15 }
0x1694   :  { %v3533_v49 = vmul.f32 %v6113_v58, %v3531_v31 }
0x1696   :  { %v3535_v59 = vadd.f32 0.2548296, %v3533_v49 }
0x1698   :  { %v3537_v6 = vmul.f32 %v6113_v58, %v3535_v59  ;;  %v3589_v59 = vld [vmem:[#allocation5 + $0x30] sm:$0xff] }
0x16b5   :  { %s5805_s25 = spop %5804 }
0x16b6   :  { %v3491_v61 = vstv %s5805_s25 }
0x16b7   :  { %v3492_v36 = vmul.f32 %v3491_v61, %v3486_v39  ;;  %v6351_v39 = vmov 21  }
0x16b8   :  { %6005 = vset.pattern.permute.xlu1 %v6351_v39 }
0x16b9   :  { %v3498_v33 = vmul.f32 %v3495_v62, %v3492_v36 }
0x16bb   :  { %v3504_v35 = vadd.f32 %v3501_v13, %v3498_v33 }
0x16bd   :  { %v3508_v37 = vmul.f32 0.70710677, %v3504_v35  ;;  %v3506_v29 = vmul.f32 0.5, %v3504_v35 }
0x16bf   :  { %v3514_v25 = vand.u32 2147483647, %v3508_v37  ;;  %vm3510_vm0 = vcmp.ge.f32.partialorder %v3508_v37, 0.0 }
0x16c0   :  { %v3512_v62 = vsel %vm3510_vm0, 1.0, %v6327_v2 }
0x16c1   :  { %v3516_v43 = vmul.f32 0.3275911, %v3514_v25  ;;  %v3540_v32 = vsub.f32 0.0, %v3514_v25 }
0x16c3   :  { %v3518_v47 = vadd.f32 1.0, %v3516_v43  ;;  %v3542_v44 = vmul.f32 %v3540_v32, %v3514_v25 }
0x16c5   :  { %6114 = vrcp.f32 %v3518_v47  ;;  %v3545_v4 = vmul.f32 1.442695, %v3542_v44 }
0x16c6   :  { %6116 = vpow2.f32 %v3543_v54 }
0x16c7   :  { %6118 = vpow2.f32 %v3545_v4 }
0x16cf   :  { %v6115_v50 = vpop.eup %6114 }
0x16d0   :  { %v3522_v55 = vmul.f32 1.0614054, %v6115_v50  ;;  %v6117_v12 = vpop.eup %6116 }
0x16d1   :  { %v3547_v3 = vmul.f32 %v6117_v12, %v3537_v6  ;;  %v6119_v7 = vpop.eup %6118 }
0x16d2   :  { %v3524_v60 = vadd.f32 -1.4531521, %v3522_v55 }
0x16d3   :  { %v3549_v21 = vsub.f32 1.0, %v3547_v3 }
0x16d4   :  { %v3526_v5 = vmul.f32 %v6115_v50, %v3524_v60 }
0x16d5   :  { %v3551_v9 = vmul.f32 %v3549_v21, %v3511_v8 }
0x16d6   :  { %v3528_v11 = vadd.f32 1.4214138, %v3526_v5 }
0x16d7   :  { %v3553_v24 = vadd.f32 1.0, %v3551_v9 }
0x16d8   :  { %v3530_v42 = vmul.f32 %v6115_v50, %v3528_v11  ;;  %v6352_v11 = vmov 22  }
0x16d9   :  { %v3555_v30 = vmul.f32 %v3553_v24, %v3505_v14 }
0x16da   :  { %v3532_v16 = vadd.f32 -0.28449672, %v3530_v42  ;;  %v6353_v42 = vmov 23  }
0x16db   :  { %6007 = vset.pattern.permute.xlu0 %v6353_v42 }
0x16dc   :  { %v3534_v20 = vmul.f32 %v6115_v50, %v3532_v16 }
0x16de   :  { %v3536_v22 = vadd.f32 0.2548296, %v3534_v20 }
0x16e0   :  { %v3538_v23 = vmul.f32 %v6115_v50, %v3536_v22 }
0x16e2   :  { %v3548_v51 = vmul.f32 %v6119_v7, %v3538_v23 }
0x16e4   :  { %v3550_v63 = vsub.f32 1.0, %v3548_v51 }
0x16e6   :  { %v3552_v13 = vmul.f32 %v3550_v63, %v3512_v62  ;;  %v3891_v63 = vld [vmem:[#allocation8 + $0x80] sm:$0xff]  ;;  %v3892_v62 = vld [vmem:[#allocation8 + $0x88] sm:$0xff] }
0x16e7   :  { %v5654_v14 = vpack.c.bf16 %v3892_v62, %v3891_v63 }
0x16e8   :  { %v3554_v26 = vadd.f32 1.0, %v3552_v13 }
0x16ea   :  { %v3556_v58 = vmul.f32 %v3554_v26, %v3506_v29  ;;  %v6164_v26 = vld [vmem:[#allocation2 + $0x10] sm:$0xff] }
0x16ec   :  { %v5990_v28 = vpack.i.bf16 %v3556_v58, %v3555_v30 }
0x16ee   :  { %5991 = vrot.lane.b32.xlu1 %v5990_v28, %s6320_s29 }
0x16f2   :  { %5996 = vrot.lane.b32.xlu1 %v5990_v28, %s6319_s4 }
0x16f6   :  { %6001 = vrot.lane.b32.xlu1 %v5990_v28, %s6321_s3 }
0x16fa   :  { %3581 = vrot.lane.b32.xlu1 %v3555_v30, %s6322_s30 }
0x16fe   :  { %3583 = vrot.lane.b32.xlu1 %v3556_v58, %s6322_s30 }
0x1702   :  { %3591 = vperm.xlu1 %6005, %v6930_v38  }
0x1706   :  { %6006 = vset.pattern.permute.xlu1 %v6352_v11 }
0x1760   :  { %v5992_v27 = vpop.permute.xlu1 %5991 }
0x1761   :  { %v5994_v53 = vunpack.i.h.bf16 %v5992_v27  ;;  %v5993_v61 = vunpack.i.l.bf16 %v5992_v27 }
0x1763   :  { %v3561_v35 = vsel %vm107_vm6, %v5993_v61, %v5994_v53  ;;  %v3562_v37 = vsel %vm107_vm6, %v5994_v53, %v5993_v61 }
0x1764   :  { %v5997_v36 = vpop.permute.xlu1 %5996 }
0x1765   :  { %v5999_v33 = vunpack.i.h.bf16 %v5997_v36  ;;  %v5998_v34 = vunpack.i.l.bf16 %v5997_v36 }
0x1767   :  { %v3569_v40 = vsel %vm130_vm5, %v5998_v34, %v5999_v33  ;;  %v3570_v25 = vsel %vm130_vm5, %v5999_v33, %v5998_v34 }
0x1768   :  { %v5642_v43 = vpack.c.bf16 %v3569_v40, %v3561_v35  ;;  %v5645_v45 = vpack.c.bf16 %v3570_v25, %v3562_v37  ;;  %v6002_v46 = vpop.permute.xlu1 %6001 }
0x1769   :  { %v6004_v47 = vunpack.i.h.bf16 %v6002_v46  ;;  %v6003_v15 = vunpack.i.l.bf16 %v6002_v46 }
0x176a   :  { %5644 = vmatprep.subr.msk.bf16.mxu1 %vm6500_vm4, %v5642_v43 }
0x176b   :  { %v3577_v48 = vsel %vm93_vm7, %v6003_v15, %v6004_v47  ;;  %v3578_v31 = vsel %vm93_vm7, %v6004_v47, %v6003_v15  ;;  %5647 = vmatpush1.bf16.msk.msra.mxu1 %vm6500_vm4, %v5645_v45 }
0x176c   :  { %v5648_v54 = vpack.c.bf16 %v3578_v31, %v3556_v58  ;;  %v5651_v32 = vpack.c.bf16 %v3577_v48, %v3555_v30  ;;  %v3582_v49 = vpop.permute.xlu1 %3581  ;;  %v6165_v30 = vld [vmem:[#allocation2 + $0x8] sm:$0xff]  ;;  %v6166_v58 = vld [vmem:[#allocation2 + $0x18] sm:$0xff] }
0x176e   :  { %5650 = vmatprep.subr.msk.bf16.mxu1 %vm6643_vm3, %v5648_v54 }
0x176f   :  { %5653 = vmatpush1.bf16.msk.msra.mxu1 %vm6643_vm3, %v5651_v32  ;;  %v6354_v32 = vmov 24  }
0x1770   :  { %v3584_v50 = vpop.permute.xlu1 %3583 }
0x1771   :  { %v3585_v44 = vsel %vm94_vm8, %v3582_v49, %v3584_v50  ;;  %v3586_v55 = vsel %vm94_vm8, %v3584_v50, %v3582_v49  ;;  %v7044_v50 = vld [vmem:[#allocation7 + $0x8] sm:$0xff] }
0x1772   :  { %5173 = vmatprep.subr.msk.mxu1 %vm6597_vm13, %v3586_v55 }
0x1773   :  { %5174 = vmatpush1.msk.msra.mxu1 %vm6597_vm13, %v3585_v44 }
0x1774   :  { %5175 = vmatmul.mubr.msk.f32.vlgmr.msra.gmra.mrb[38].mxu1 %vm436_vm9, %v3589_v59  ;;  %5655 = vmatprep.subr.bf16.mxu1 %v5654_v14 }
0x1775   :  { %5441 = vmatprep.mubr.f32.mxu1 %v6163_v17 }
0x177a   :  { %5657 = vmatpush3.bf16.xpose.msra.mxu1 %v5654_v14 }
0x1781   :  { %v3592_v41 = vpop.permute.xlu1 %3591  ;;  %5442 = vmatmul.mubr.f32.vlgmr.msra.gmra.mrb[40].mxu1 %v6164_v26 }
0x1782   :  { %5444 = vmatprep.mubr.f32.mxu1 %v6165_v30 }
0x1785   :  { %5445 = vmatmul.mubr.f32.gmra.mrb[42].mxu1 %v6166_v58 }
0x1847   :  { %v3663_v60 = vpop.f32.mrb[38].mxu1 }
0x1848   :  { %v7028_v4 = vadd.f32 %v3663_v60, %v3592_v41  ;;  %v3665_v5 = vpop.f32.mrb[39].mxu1 }
0x1849   :  { %v7030_v6 = vadd.f32 %v3665_v5, %v3592_v41 }
0x184a   :  { %3668 = vadd.xlane.f32.xlu1 %v7028_v4  ;;  %v3678_v1 = vmul.f32 %v7028_v4, %v7028_v4 }
0x184b   :  { %v3710_v10 = vmul.f32 %v7030_v6, %v7030_v6 }
0x184c   :  { %3679 = vadd.xlane.f32.xlu0 %v3678_v1 }
0x184e   :  { %3700 = vadd.xlane.f32.xlu1 %v7030_v6 }
0x1850   :  { %3711 = vadd.xlane.f32.xlu0 %v3710_v10 }
0x185f   :  { %3733 = vperm.xlu1 %6006, %v6930_v38  }
0x1863   :  { %6008 = vset.pattern.permute.xlu1 %v6354_v32 }
0x1864   :  { %3801 = vperm.xlu1 %6008, %v6930_v38  }
0x1866   :  { %3739 = vperm.xlu0 %6007, %v6930_v38  }
0x1868   :  { %3805 = vperm.xlu1 %6008, %v7044_v50  }
0x18d7   :  { %v3669_v12 = vpop.xlane.xlu1 %3668 }
0x18d8   :  { %v3670_v3 = vrot.slane %v3669_v12, 4 }
0x18d9   :  { %v3680_v16 = vpop.xlane.xlu0 %3679 }
0x18da   :  { %v3671_v20 = vadd.f32 %v3670_v3, %v3669_v12  ;;  %v3681_v21 = vrot.slane %v3680_v16, 4 }
0x18db   :  { %v3701_v28 = vpop.xlane.xlu1 %3700 }
0x18dc   :  { %v3672_v22 = vrot.slane %v3671_v20, 2  ;;  %v3682_v23 = vadd.f32 %v3681_v21, %v3680_v16  ;;  %v3702_v27 = vrot.slane %v3701_v28, 4 }
0x18dd   :  { %v3712_v39 = vpop.xlane.xlu0 %3711 }
0x18de   :  { %v3683_v7 = vrot.slane %v3682_v23, 2  ;;  %v3673_v8 = vadd.f32 %v3672_v22, %v3671_v20  ;;  %v3713_v53 = vrot.slane %v3712_v39, 4  ;;  %v3703_v61 = vadd.f32 %v3702_v27, %v3701_v28 }
0x18df   :  { %v3734_v55 = vpop.permute.xlu1 %3733 }
0x18e0   :  { %v3674_v9 = vrot.slane %v3673_v8, 1  ;;  %v3684_v51 = vadd.f32 %v3683_v7, %v3682_v23  ;;  %v3714_v36 = vadd.f32 %v3713_v53, %v3712_v39  ;;  %v3704_v33 = vrot.slane %v3703_v61, 2  ;;  %v7051_v39 = vpop.f32.mrb[40].mxu1 }
0x18e1   :  { %v3959_v53 = vpop.f32.mrb[41].mxu1 }
0x18e2   :  { %v3675_v24 = vadd.f32 %v3674_v9, %v3673_v8  ;;  %v3685_v13 = vrot.slane %v3684_v51, 1  ;;  %v3715_v34 = vrot.slane %v3714_v36, 2  ;;  %v3705_v37 = vadd.f32 %v3704_v33, %v3703_v61  ;;  %4240 = vrot.lane.b32.xlu1 %v3959_v53, %s6333_s18  ;;  %5460 = vmatprep.mubr.msk.f32.mxu1 %vm731_vm14, %v3959_v53 }
0x18e4   :  { %5806 = vpush %v3675_v24  ;;  %v3686_v29 = vadd.f32 %v3685_v13, %v3684_v51  ;;  %v3716_v40 = vadd.f32 %v3715_v34, %v3714_v36  ;;  %v3706_v25 = vrot.slane %v3705_v37, 1  ;;  %v7055_v34 = vpop.f32.mrb[42].mxu1 }
0x18e5   :  { %v3740_v17 = vpop.permute.xlu0 %3739 }
0x18e6   :  { %5808 = vpush %v3686_v29  ;;  %v3717_v43 = vrot.slane %v3716_v40, 1  ;;  %v3707_v46 = vadd.f32 %v3706_v25, %v3705_v37  ;;  %v7057_v37 = vpop.f32.mrb[43].mxu1  ;;  %4242 = vrot.lane.b32.xlu1 %v7051_v39, %s6333_s18 }
0x18e8   :  { %v3718_v47 = vadd.f32 %v3717_v43, %v3716_v40 }
0x18ea   :  { %4597 = vrot.lane.b32.xlu1 %v7057_v37, %s6333_s18 }
0x18ee   :  { %4599 = vrot.lane.b32.xlu1 %v7055_v34, %s6333_s18  ;;  %s6357_s18 = smov [#allocation11]  }
0x1915   :  { %s5807_s4 = spop %5806 }
0x1916   :  { %s3677_s29 = smul.f32 0.0009765625, %s5807_s4 }
0x1917   :  { %s5809_s3 = spop %5808 }
0x1918   :  { %s3689_s30 = smul.f32 %s3677_s29, %s3677_s29  ;;  %v3692_v15 = vstv %s3677_s29 }
0x1919   :  { %s3688_s26 = smul.f32 0.0009765625, %s5809_s3  ;;  %v3693_v48 = vsub.f32 %v7028_v4, %v3692_v15 }
0x191b   :  { %s3690_s27 = ssub.f32 %s3688_s26, %s3689_s30 }
0x191d   :  { %s3691_s2 = smax.f32 %s6326_s13, %s3690_s27 }
0x191e   :  { %s3694_s28 = sadd.f32 1e-05, %s3691_s2 }
0x1920   :  { %v3695_v35 = vstv %s3694_s28 }
0x1921   :  { %6120 = vrsqrt.f32 %v3695_v35 }
0x192b   :  { %v6121_v45 = vpop.eup %6120 }
0x192c   :  { %5810 = vpush %v6121_v45 }
0x192d   :  { %5812 = vpush %v3707_v46 }
0x192e   :  { %5814 = vpush %v3718_v47 }
0x195d   :  { %s5811_s6 = spop %5810 }
0x195e   :  { %v3698_v31 = vstv %s5811_s6  ;;  %s5813_s7 = spop %5812 }
0x195f   :  { %v3699_v54 = vmul.f32 %v3698_v31, %v3693_v48  ;;  %s3709_s8 = smul.f32 0.0009765625, %s5813_s7  ;;  %s5815_s9 = spop %5814 }
0x1960   :  { %s3720_s11 = smul.f32 0.0009765625, %s5815_s9 }
0x1961   :  { %s3721_s12 = smul.f32 %s3709_s8, %s3709_s8  ;;  %v3736_v59 = vmul.f32 %v3734_v55, %v3699_v54  ;;  %v3724_v11 = vstv %s3709_s8 }
0x1962   :  { %v3725_v12 = vsub.f32 %v7030_v6, %v3724_v11 }
0x1963   :  { %s3722_s14 = ssub.f32 %s3720_s11, %s3721_s12  ;;  %v7047_v41 = vadd.f32 %v3740_v17, %v3736_v59 }
0x1965   :  { %s3723_s15 = smax.f32 %s6326_s13, %s3722_s14  ;;  %v3746_v60 = vmul.f32 0.70710677, %v7047_v41 }
0x1966   :  { %s3726_s16 = sadd.f32 1e-05, %s3723_s15 }
0x1967   :  { %v3752_v4 = vand.u32 2147483647, %v3746_v60  ;;  %vm3748_vm4 = vcmp.ge.f32.partialorder %v3746_v60, 0.0 }
0x1968   :  { %v3727_v49 = vstv %s3726_s16  ;;  %v3750_v31 = vsel %vm3748_vm4, 1.0, %v6327_v2 }
0x1969   :  { %6122 = vrsqrt.f32 %v3727_v49  ;;  %v3754_v5 = vmul.f32 0.3275911, %v3752_v4  ;;  %v3778_v63 = vsub.f32 0.0, %v3752_v4 }
0x196b   :  { %v3756_v1 = vadd.f32 1.0, %v3754_v5  ;;  %v3780_v13 = vmul.f32 %v3778_v63, %v3752_v4  ;;  %v3744_v5 = vmul.f32 0.5, %v7047_v41 }
0x196d   :  { %6124 = vrcp.f32 %v3756_v1  ;;  %v3782_v29 = vmul.f32 1.442695, %v3780_v13 }
0x1973   :  { %v6123_v44 = vpop.eup %6122 }
0x1974   :  { %5816 = vpush %v6123_v44 }
0x1977   :  { %v6125_v10 = vpop.eup %6124 }
0x1978   :  { %v3760_v42 = vmul.f32 1.0614054, %v6125_v10 }
0x197a   :  { %v3762_v20 = vadd.f32 -1.4531521, %v3760_v42 }
0x197c   :  { %v3764_v23 = vmul.f32 %v6125_v10, %v3762_v20 }
0x197e   :  { %v3766_v9 = vadd.f32 1.4214138, %v3764_v23 }
0x1980   :  { %v3768_v24 = vmul.f32 %v6125_v10, %v3766_v9 }
0x1982   :  { %v3770_v14 = vadd.f32 -0.28449672, %v3768_v24 }
0x1984   :  { %v3772_v6 = vmul.f32 %v6125_v10, %v3770_v14 }
0x1986   :  { %v3774_v27 = vadd.f32 0.2548296, %v3772_v6 }
0x1988   :  { %v3776_v35 = vmul.f32 %v6125_v10, %v3774_v27 }
0x19a5   :  { %s5817_s13 = spop %5816 }
0x19a6   :  { %v3730_v3 = vstv %s5817_s13 }
0x19a7   :  { %v3731_v16 = vmul.f32 %v3730_v3, %v3725_v12  ;;  %v3798_v3 = vld [vmem:[#allocation8 + $0x70] sm:$0xff] }
0x19a9   :  { %v3737_v21 = vmul.f32 %v3734_v55, %v3731_v16  ;;  %v3978_v16 = vld [vmem:[#allocation8 + $0x90] sm:$0xff] }
0x19ab   :  { %v3743_v22 = vadd.f32 %v3740_v17, %v3737_v21  ;;  %v6355_v21 = vmov 25  }
0x19ac   :  { %6009 = vset.pattern.permute.xlu1 %v6355_v21  ;;  %6010 = vset.pattern.permute.xlu0 %v6355_v21 }
0x19ad   :  { %v3747_v7 = vmul.f32 0.70710677, %v3743_v22  ;;  %v3745_v60 = vmul.f32 0.5, %v3743_v22  ;;  %3981 = vperm.xlu1 %6009, %v6930_v38   ;;  %3985 = vperm.xlu0 %6010, %v7044_v50  }
0x19af   :  { %v3753_v8 = vand.u32 2147483647, %v3747_v7  ;;  %vm3749_vm5 = vcmp.ge.f32.partialorder %v3747_v7, 0.0 }
0x19b0   :  { %v3751_v17 = vsel %vm3749_vm5, 1.0, %v6327_v2  ;;  %v3799_v2 = vld [vmem:[#allocation8 + $0x78] sm:$0xff] }
0x19b1   :  { %v3755_v51 = vmul.f32 0.3275911, %v3753_v8  ;;  %v3779_v26 = vsub.f32 0.0, %v3753_v8 }
0x19b3   :  { %v3757_v62 = vadd.f32 1.0, %v3755_v51  ;;  %v3781_v58 = vmul.f32 %v3779_v26, %v3753_v8 }
0x19b5   :  { %6126 = vrcp.f32 %v3757_v62  ;;  %v3784_v36 = vmul.f32 1.442695, %v3781_v58 }
0x19b6   :  { %6128 = vpow2.f32 %v3782_v29 }
0x19b7   :  { %6130 = vpow2.f32 %v3784_v36 }
0x19bf   :  { %v6127_v30 = vpop.eup %6126 }
0x19c0   :  { %v3761_v28 = vmul.f32 1.0614054, %v6127_v30  ;;  %v6129_v25 = vpop.eup %6128 }
0x19c1   :  { %v3786_v45 = vmul.f32 %v6129_v25, %v3776_v35  ;;  %v6131_v32 = vpop.eup %6130 }
0x19c2   :  { %v3763_v61 = vadd.f32 -1.4531521, %v3761_v28 }
0x19c3   :  { %v3788_v15 = vsub.f32 1.0, %v3786_v45 }
0x19c4   :  { %v3765_v33 = vmul.f32 %v6127_v30, %v3763_v61 }
0x19c5   :  { %v3790_v49 = vmul.f32 %v3788_v15, %v3750_v31 }
0x19c6   :  { %v3767_v40 = vadd.f32 1.4214138, %v3765_v33 }
0x19c7   :  { %v3792_v59 = vadd.f32 1.0, %v3790_v49 }
0x19c8   :  { %v3769_v43 = vmul.f32 %v6127_v30, %v3767_v40 }
0x19c9   :  { %v3794_v10 = vmul.f32 %v3792_v59, %v3744_v5 }
0x19ca   :  { %v3771_v46 = vadd.f32 -0.28449672, %v3769_v43 }
0x19cb   :  { %v3796_v12 = vadd.f32 %v3794_v10, %v6935_v52  ;;  %v3979_v52 = vld [vmem:[#allocation8 + $0x98] sm:$0xff] }
0x19cc   :  { %v3773_v47 = vmul.f32 %v6127_v30, %v3771_v46 }
0x19ce   :  { %v3775_v48 = vadd.f32 0.2548296, %v3773_v47 }
0x19d0   :  { %v3777_v54 = vmul.f32 %v6127_v30, %v3775_v48 }
0x19d2   :  { %v3787_v44 = vmul.f32 %v6131_v32, %v3777_v54 }
0x19d4   :  { %v3789_v55 = vsub.f32 1.0, %v3787_v44 }
0x19d6   :  { %v3791_v4 = vmul.f32 %v3789_v55, %v3751_v17 }
0x19d8   :  { %v3793_v1 = vadd.f32 1.0, %v3791_v4 }
0x19da   :  { %v3795_v11 = vmul.f32 %v3793_v1, %v3745_v60 }
0x19dc   :  { %v3797_v42 = vadd.f32 %v3795_v11, %v6937_v56  ;;  %v3802_v56 = vpop.permute.xlu1 %3801 }
0x19de   :  { %3814 = vmatprep.subr.mxu0 %v3797_v42 }
0x19df   :  { %3815 = vmatpush1.msra.mxu0 %v3796_v12 }
0x19e0   :  { %5176 = vmatmul.mubr.msk.f32.vlgmr.msra.gmra.mrb[30].mxu0 %vm731_vm14, %v3798_v3  ;;  %5659 = vmatprep.subr.bf16.mxu0 %v6583_v0  ;;  %v3806_v41 = vpop.permute.xlu1 %3805 }
0x19e1   :  { %3884 = vmatprep.mubr.f32.mxu0 %v6323_v18 }
0x19e4   :  { %5177 = vmatmul.mubr.msk.f32.gmra.mrb[32].mxu0 %vm731_vm14, %v3799_v2  ;;  %v4241_v20 = vpop.permute.xlu1 %4240 }
0x19e5   :  { %5455 = vmatprep.mubr.f32.mxu0 %v3978_v16 }
0x19e6   :  { %5661 = vmatpush3.bf16.xpose.msra.mxu0 %v6583_v0 }
0x19e7   :  { %5663 = vmatprep.subr.bf16.mxu0 %v6569_v57 }
0x19ee   :  { %5665 = vmatpush3.bf16.xpose.msra.mxu0 %v6569_v57  ;;  %v4243_v57 = vpop.permute.xlu1 %4242 }
0x19f2   :  { %v4598_v51 = vpop.permute.xlu1 %4597 }
0x19f5   :  { %5456 = vmatmul.mubr.f32.vlgmr.msra.gmra.mrb[34].mxu0 %v3979_v52 }
0x19f6   :  { %5472 = vmatprep.mubr.msk.f32.mxu0 %vm731_vm14, %v4241_v20  ;;  %v4600_v63 = vpop.permute.xlu1 %4599 }
0x1a2c   :  { %v3982_v62 = vpop.permute.xlu1 %3981  ;;  %v3986_v14 = vpop.permute.xlu0 %3985 }
0x1ab3   :  { %v3880_v22 = vpop.f32.mrb[30].mxu0 }
0x1ab4   :  { %v3881_v0 = vadd.f32 %v3880_v22, %v3802_v56  ;;  %v3882_v23 = vpop.f32.mrb[31].mxu0 }
0x1ab5   :  { %v3883_v38 = vadd.f32 %v3882_v23, %v3802_v56 }
0x1ab6   :  { %5458 = vmatprep.subr.mxu1 %v3881_v0 }
0x1ab7   :  { %v3886_v7 = vpop.f32.mrb[32].mxu0  ;;  %5459 = vmatpush3.msra.mxu1 %v3881_v0 }
0x1ab8   :  { %v3887_v8 = vadd.f32 %v3886_v7, %v3806_v41  ;;  %v3888_v9 = vpop.f32.mrb[33].mxu0  ;;  %5461 = vmatmul.mubr.msk.f32.vlgmr.msra.gmra.mrb[44].mxu1 %vm731_vm14, %v7051_v39  ;;  %5666 = vmatprep.subr.bf16.mxu1 %v6335_v19 }
0x1ab9   :  { %5467 = vmatprep.mubr.msk.f32.mxu1 %vm6336_vm15, %v6323_v18  ;;  %v3889_v50 = vadd.f32 %v3888_v9, %v3806_v41 }
0x1aba   :  { %5470 = vmatprep.subr.mxu0 %v3887_v8 }
0x1abb   :  { %5471 = vmatpush3.msra.mxu0 %v3887_v8 }
0x1abc   :  { %5473 = vmatmul.mubr.msk.f32.vlgmr.msra.gmra.mrb[36].mxu0 %vm731_vm14, %v4243_v57  ;;  %5482 = vmatprep.subr.mxu0 %v3883_v38 }
0x1abd   :  { %5483 = vmatpush3.msra.mxu0 %v3883_v38  ;;  %5484 = vmatprep.mubr.msk.f32.mxu0 %vm731_vm14, %v7057_v37 }
0x1abe   :  { %5494 = vmatprep.subr.mxu0 %v3889_v50 }
0x1ac0   :  { %5485 = vmatmul.mubr.msk.f32.vlgmr.msra.gmra.mrb[38].mxu0 %vm731_vm14, %v7055_v34 }
0x1ac1   :  { %5495 = vmatpush3.msra.mxu0 %v3889_v50  ;;  %5496 = vmatprep.mubr.msk.f32.mxu0 %vm731_vm14, %v4598_v51 }
0x1ac4   :  { %5497 = vmatmul.mubr.msk.f32.vlgmr.msra.gmra.mrb[40].mxu0 %vm731_vm14, %v4600_v63 }
0x1ac5   :  { %4849 = vmatprep.mubr.f32.mxu0 %v6323_v18 }
0x1ac8   :  { %v5457_v24 = vpop.f32.mrb[34].mxu0 }
0x1ac9   :  { %v4054_v13 = vpop.f32.mrb[35].mxu0  ;;  %v7097_v26 = vadd.f32 %v5457_v24, %v3986_v14 }
0x1aca   :  { %v7093_v29 = vadd.f32 %v4054_v13, %v3982_v62 }
0x1acc   :  { %4523 = vrot.lane.b32.xlu1 %v7093_v29, %s6337_s0 }
0x1ad0   :  { %4703 = vrot.lane.b32.xlu1 %v7097_v26, %s6337_s0  ;;  %s5072_s0 = sshll.u32 %s6357_s18, 4  ;;  %s5073_s0 = int_to_ptr.vmem [resolvable:$true] %s5072_s0 }
0x1ad1   :  { %s6279_s17 = scalar_lea.vmem %s5073_s0, 512  ;;  %p6284_p13 = scmp.lt.s32.totalorder %s5073_s0, %s5073_s0 }
0x1ad2   :  { %p6280_p12 = scmp.ne.s32.totalorder %s5073_s0, %s6279_s17  ;;  %p6285_p0 = scmp.lt.s32.totalorder %s6279_s17, %s6279_s17 }
0x1ad4   :  { %p6286_p1 = por %p6285_p0, %p6284_p13 }
0x1ad6   :  { %p6287_p2 = pnand %p6286_p1, %p6280_p12 }
0x1b8b   :  { %v5462_v6 = vpop.f32.mrb[44].mxu1 }
0x1b8c   :  { %v4135_v30 = vpop.f32.mrb[45].mxu1 }
0x1b8d   :  { %v4144_v58 = vmax.f32 %v4135_v30, %v5462_v6 }
0x1b8f   :  { %v4145_v28 = vrot.slane %v4144_v58, 4  ;;  %v5474_v39 = vpop.f32.mrb[36].mxu0 }
0x1b90   :  { %v4314_v27 = vpop.f32.mrb[37].mxu0 }
0x1b91   :  { %v4146_v53 = vmax.f32 %v4144_v58, %v4145_v28  ;;  %v4323_v61 = vmax.f32 %v4314_v27, %v5474_v39 }
0x1b93   :  { %v4147_v36 = vrot.slane %v4146_v53, 2  ;;  %v4324_v33 = vrot.slane %v4323_v61, 4  ;;  %v5486_v34 = vpop.f32.mrb[38].mxu0 }
0x1b94   :  { %v4491_v35 = vpop.f32.mrb[39].mxu0 }
0x1b95   :  { %v4148_v37 = vmax.f32 %v4146_v53, %v4147_v36  ;;  %v4325_v40 = vmax.f32 %v4323_v61, %v4324_v33  ;;  %v4500_v25 = vmax.f32 %v4491_v35, %v5486_v34 }
0x1b97   :  { %v4149_v43 = vrot.slane %v4148_v37, 1  ;;  %v4326_v45 = vrot.slane %v4325_v40, 2  ;;  %v4501_v46 = vrot.slane %v4500_v25, 4  ;;  %v5498_v47 = vpop.f32.mrb[40].mxu0 }
0x1b98   :  { %v4671_v15 = vpop.f32.mrb[41].mxu0 }
0x1b99   :  { %v4150_v48 = vmax.f32 %v4148_v37, %v4149_v43  ;;  %v4327_v31 = vmax.f32 %v4325_v40, %v4326_v45  ;;  %v4502_v54 = vmax.f32 %v4500_v25, %v4501_v46  ;;  %v4680_v32 = vmax.f32 %v4671_v15, %v5498_v47 }
0x1b9b   :  { %v4151_v49 = vsub.f32 %v4135_v30, %v4150_v48  ;;  %v4152_v44 = vsub.f32 %v5462_v6, %v4150_v48  ;;  %v4328_v55 = vrot.slane %v4327_v31, 1  ;;  %v4503_v59 = vrot.slane %v4502_v54, 2 }
0x1b9c   :  { %v4681_v17 = vrot.slane %v4680_v32, 4 }
0x1b9d   :  { %v4153_v4 = vmul.f32 1.442695, %v4151_v49  ;;  %v4155_v5 = vmul.f32 1.442695, %v4152_v44  ;;  %v4329_v60 = vmax.f32 %v4327_v31, %v4328_v55  ;;  %v4504_v1 = vmax.f32 %v4502_v54, %v4503_v59 }
0x1b9e   :  { %v4682_v10 = vmax.f32 %v4680_v32, %v4681_v17 }
0x1b9f   :  { %6132 = vpow2.f32 %v4153_v4  ;;  %v4330_v11 = vsub.f32 %v4314_v27, %v4329_v60  ;;  %v4331_v42 = vsub.f32 %v5474_v39, %v4329_v60  ;;  %v4505_v12 = vrot.slane %v4504_v1, 1 }
0x1ba0   :  { %6134 = vpow2.f32 %v4155_v5  ;;  %v4683_v3 = vrot.slane %v4682_v10, 2 }
0x1ba1   :  { %v4332_v2 = vmul.f32 1.442695, %v4330_v11  ;;  %v4334_v16 = vmul.f32 1.442695, %v4331_v42  ;;  %v4506_v52 = vmax.f32 %v4504_v1, %v4505_v12 }
0x1ba2   :  { %v4684_v56 = vmax.f32 %v4682_v10, %v4683_v3 }
0x1ba3   :  { %6136 = vpow2.f32 %v4332_v2  ;;  %v4507_v41 = vsub.f32 %v4491_v35, %v4506_v52  ;;  %v4508_v20 = vsub.f32 %v5486_v34, %v4506_v52 }
0x1ba4   :  { %6138 = vpow2.f32 %v4334_v16  ;;  %v4685_v21 = vrot.slane %v4684_v56, 1 }
0x1ba5   :  { %v4509_v22 = vmul.f32 1.442695, %v4507_v41  ;;  %v4511_v0 = vmul.f32 1.442695, %v4508_v20 }
0x1ba6   :  { %v4686_v23 = vmax.f32 %v4684_v56, %v4685_v21  ;;  %v4524_v56 = vpop.permute.xlu1 %4523 }
0x1ba7   :  { %6140 = vpow2.f32 %v4509_v22  ;;  %v4859_v22 = vld [vmem:[#allocation10 + $0x18] sm:$0xff] }
0x1ba8   :  { %6142 = vpow2.f32 %v4511_v0  ;;  %v4687_v7 = vsub.f32 %v4671_v15, %v4686_v23  ;;  %v4688_v57 = vsub.f32 %v5498_v47, %v4686_v23  ;;  %v4856_v0 = vld [vmem:[#allocation10] sm:$0xff]  ;;  %v6356_v23 = vmov 26  }
0x1ba9   :  { %v6133_v8 = vpop.eup %6132  ;;  %6011 = vset.pattern.permute.xlu0 %v6356_v23 }
0x1baa   :  { %v6135_v9 = vpop.eup %6134  ;;  %v4689_v38 = vmul.f32 1.442695, %v4687_v7  ;;  %v4691_v50 = vmul.f32 1.442695, %v4688_v57  ;;  %v4704_v21 = vpop.permute.xlu1 %4703  ;;  %v4858_v7 = vld [vmem:[#allocation10 + $0x10] sm:$0xff]  ;;  %v4861_v57 = vld [vmem:[#allocation10 + $0x28] sm:$0xff] }
0x1bab   :  { %v4157_v51 = vadd.f32 %v6135_v9, %v6133_v8 }
0x1bac   :  { %6144 = vpow2.f32 %v4689_v38  ;;  %v7119_v38 = vpack.c.bf16 %v4858_v7, %v4856_v0 }
0x1bad   :  { %v6137_v63 = vpop.eup %6136  ;;  %v4158_v62 = vrot.slane %v4157_v51, 4  ;;  %6146 = vpow2.f32 %v4691_v50 }
0x1bae   :  { %v6139_v24 = vpop.eup %6138 }
0x1baf   :  { %v4159_v13 = vadd.f32 %v4158_v62, %v4157_v51  ;;  %v4336_v14 = vadd.f32 %v6139_v24, %v6137_v63  ;;  %v4860_v51 = vld [vmem:[#allocation10 + $0x20] sm:$0xff] }
0x1bb1   :  { %v6141_v6 = vpop.eup %6140  ;;  %v4160_v30 = vrot.slane %v4159_v13, 2  ;;  %v4337_v58 = vrot.slane %v4336_v14, 4 }
0x1bb2   :  { %v6143_v28 = vpop.eup %6142 }
0x1bb3   :  { %v4161_v39 = vadd.f32 %v4160_v30, %v4159_v13  ;;  %v4338_v27 = vadd.f32 %v4337_v58, %v4336_v14  ;;  %v4513_v53 = vadd.f32 %v6143_v28, %v6141_v6  ;;  %v4867_v13 = vld [vmem:[#allocation10 + $0x58] sm:$0xff]  ;;  %v4866_v30 = vld [vmem:[#allocation10 + $0x50] sm:$0xff] }
0x1bb5   :  { %v4162_v61 = vrot.slane %v4161_v39, 1  ;;  %v4339_v36 = vrot.slane %v4338_v27, 2  ;;  %v4514_v33 = vrot.slane %v4513_v53, 4 }
0x1bb6   :  { %v6145_v34 = vpop.eup %6144 }
0x1bb7   :  { %v6147_v35 = vpop.eup %6146  ;;  %v4163_v37 = vadd.f32 %v4162_v61, %v4161_v39  ;;  %v4340_v40 = vadd.f32 %v4339_v36, %v4338_v27  ;;  %v4515_v25 = vadd.f32 %v4514_v33, %v4513_v53  ;;  %v4871_v39 = vld [vmem:[#allocation10 + $0x78] sm:$0xff]  ;;  %v4868_v53 = vld [vmem:[#allocation10 + $0x60] sm:$0xff]  ;;  %v4870_v61 = vld [vmem:[#allocation10 + $0x70] sm:$0xff] }
0x1bb8   :  { %v4693_v43 = vadd.f32 %v6147_v35, %v6145_v34  ;;  %v5696_v36 = vpack.c.bf16 %v4870_v61, %v4868_v53  ;;  %v4873_v33 = vld [vmem:[#allocation10 + $0x88] sm:$0xff] }
0x1bb9   :  { %6148 = vrcp.f32 %v4163_v37  ;;  %v4341_v45 = vrot.slane %v4340_v40, 1  ;;  %v4516_v46 = vrot.slane %v4515_v25, 2  ;;  %v4872_v37 = vld [vmem:[#allocation10 + $0x80] sm:$0xff] }
0x1bba   :  { %v4694_v47 = vrot.slane %v4693_v43, 4 }
0x1bbb   :  { %v4342_v15 = vadd.f32 %v4341_v45, %v4340_v40  ;;  %v4517_v48 = vadd.f32 %v4516_v46, %v4515_v25  ;;  %v4874_v40 = vld [vmem:[#allocation10 + $0x90] sm:$0xff]  ;;  %v4879_v45 = vld [vmem:[#allocation10 + $0xb8] sm:$0xff] }
0x1bbc   :  { %v4695_v31 = vadd.f32 %v4694_v47, %v4693_v43  ;;  %v5700_v25 = vpack.c.bf16 %v4874_v40, %v4872_v37  ;;  %v4877_v43 = vld [vmem:[#allocation10 + $0xa8] sm:$0xff]  ;;  %v4876_v47 = vld [vmem:[#allocation10 + $0xa0] sm:$0xff] }
0x1bbd   :  { %6150 = vrcp.f32 %v4342_v15  ;;  %v4518_v54 = vrot.slane %v4517_v48, 1  ;;  %v5702_v46 = vpack.c.bf16 %v4879_v45, %v4877_v43  ;;  %v4878_v15 = vld [vmem:[#allocation10 + $0xb0] sm:$0xff] }
0x1bbe   :  { %v4696_v32 = vrot.slane %v4695_v31, 2 }
0x1bbf   :  { %v4519_v49 = vadd.f32 %v4518_v54, %v4517_v48  ;;  %v5704_v48 = vpack.c.bf16 %v4878_v15, %v4876_v47  ;;  %v4883_v54 = vld [vmem:[#allocation10 + $0xd8] sm:$0xff] }
0x1bc0   :  { %v4697_v44 = vadd.f32 %v4696_v32, %v4695_v31  ;;  %v4881_v31 = vld [vmem:[#allocation10 + $0xc8] sm:$0xff] }
0x1bc1   :  { %6152 = vrcp.f32 %v4519_v49  ;;  %v5706_v32 = vpack.c.bf16 %v4883_v54, %v4881_v31  ;;  %v4880_v49 = vld [vmem:[#allocation10 + $0xc0] sm:$0xff] }
0x1bc2   :  { %v4698_v55 = vrot.slane %v4697_v44, 1 }
0x1bc3   :  { %v6149_v59 = vpop.eup %6148 }
0x1bc4   :  { %v4699_v17 = vadd.f32 %v4698_v55, %v4697_v44  ;;  %v4165_v4 = vmul.f32 %v6149_v59, %v6133_v8  ;;  %v4166_v5 = vmul.f32 %v6149_v59, %v6135_v9  ;;  %v4863_v8 = vld [vmem:[#allocation10 + $0x38] sm:$0xff]  ;;  %v6168_v9 = vld [vmem:[#allocation7] sm:$0xff]  ;;  %v4882_v44 = vld [vmem:[#allocation10 + $0xd0] sm:$0xff] }
0x1bc5   :  { %4779 = vperm.xlu0 %6011, %v6168_v9   ;;  %v7121_v50 = vpack.c.bf16 %v4863_v8, %v4861_v57  ;;  %v5708_v55 = vpack.c.bf16 %v4882_v44, %v4880_v49 }
0x1bc6   :  { %6154 = vrcp.f32 %v4699_v17  ;;  %v5667_v60 = vpack.c.bf16 %v4166_v5, %v4165_v4 }
0x1bc7   :  { %v6151_v1 = vpop.eup %6150 }
0x1bc8   :  { %5668 = vmatpush3.bf16.msra.mxu1 %v5667_v60  ;;  %v4344_v10 = vmul.f32 %v6151_v1, %v6137_v63  ;;  %v4345_v11 = vmul.f32 %v6151_v1, %v6139_v24  ;;  %v4862_v63 = vld [vmem:[#allocation10 + $0x30] sm:$0xff]  ;;  %v4865_v24 = vld [vmem:[#allocation10 + $0x48] sm:$0xff] }
0x1bc9   :  { %5669 = vmatprep.subr.bf16.mxu1 %v6335_v19  ;;  %v5688_v62 = vpack.c.bf16 %v4862_v63, %v4860_v51  ;;  %v5690_v14 = vpack.c.bf16 %v4867_v13, %v4865_v24 }
0x1bca   :  { %v5670_v42 = vpack.c.bf16 %v4345_v11, %v4344_v10 }
0x1bcb   :  { %v6153_v12 = vpop.eup %6152  ;;  %5468 = vmatmul.mubr.msk.f32.vlgmr.msra.gmra.mrb[46].mxu1 %vm640_vm10, %v7093_v29 }
0x1bcc   :  { %5671 = vmatpush3.bf16.msra.mxu1 %v5670_v42  ;;  %5479 = vmatprep.mubr.msk.f32.mxu1 %vm6336_vm15, %v6323_v18  ;;  %v4521_v3 = vmul.f32 %v6153_v12, %v6141_v6  ;;  %v4522_v2 = vmul.f32 %v6153_v12, %v6143_v28  ;;  %v4864_v6 = vld [vmem:[#allocation10 + $0x40] sm:$0xff]  ;;  %v4869_v28 = vld [vmem:[#allocation10 + $0x68] sm:$0xff] }
0x1bcd   :  { %5672 = vmatprep.subr.bf16.mxu1 %v6335_v19  ;;  %v5692_v58 = vpack.c.bf16 %v4866_v30, %v4864_v6  ;;  %v5694_v27 = vpack.c.bf16 %v4871_v39, %v4869_v28 }
0x1bce   :  { %v5673_v16 = vpack.c.bf16 %v4522_v2, %v4521_v3  ;;  %v4777_v3 = vld [vmem:[#allocation8 + $0xa0] sm:$0xff]  ;;  %v4885_v2 = vld [vmem:[#allocation10 + $0xe8] sm:$0xff] }
0x1bcf   :  { %5480 = vmatmul.mubr.msk.f32.vlgmr.msra.gmra.mrb[48].mxu1 %vm640_vm10, %v7097_v26  ;;  %v4857_v26 = vld [vmem:[#allocation10 + $0x8] sm:$0xff] }
0x1bd0   :  { %v6155_v52 = vpop.eup %6154  ;;  %5674 = vmatpush3.bf16.msra.mxu1 %v5673_v16  ;;  %5491 = vmatprep.mubr.msk.f32.mxu1 %vm6336_vm15, %v6323_v18  ;;  %v4887_v16 = vld [vmem:[#allocation10 + $0xf8] sm:$0xff] }
0x1bd1   :  { %5675 = vmatprep.subr.bf16.mxu1 %v6335_v19  ;;  %v4701_v29 = vmul.f32 %v6155_v52, %v6145_v34  ;;  %v4702_v41 = vmul.f32 %v6155_v52, %v6147_v35  ;;  %v7117_v19 = vpack.c.bf16 %v4859_v22, %v4857_v26  ;;  %v4875_v34 = vld [vmem:[#allocation10 + $0x98] sm:$0xff]  ;;  %v5710_v52 = vpack.c.bf16 %v4887_v16, %v4885_v2 }
0x1bd2   :  { %v5698_v35 = vpack.c.bf16 %v4875_v34, %v4873_v33 }
0x1bd3   :  { %5492 = vmatmul.mubr.msk.f32.vlgmr.msra.gmra.mrb[50].mxu1 %vm640_vm10, %v4524_v56  ;;  %v5676_v20 = vpack.c.bf16 %v4702_v41, %v4701_v29  ;;  %v4884_v56 = vld [vmem:[#allocation10 + $0xe0] sm:$0xff]  ;;  %v4886_v29 = vld [vmem:[#allocation10 + $0xf0] sm:$0xff] }
0x1bd4   :  { %5503 = vmatprep.mubr.msk.f32.mxu1 %vm6336_vm15, %v6323_v18  ;;  %v5712_v41 = vpack.c.bf16 %v4886_v29, %v4884_v56 }
0x1bd5   :  { %5677 = vmatpush3.bf16.msra.mxu1 %v5676_v20 }
0x1bd6   :  { %5683 = vmatprep.subr.bf16.mxu1 %v7117_v19 }
0x1bd8   :  { %5504 = vmatmul.mubr.msk.f32.vlgmr.msra.gmra.mrb[52].mxu1 %vm640_vm10, %v4704_v21 }
0x1bd9   :  { %4952 = vmatprep.mubr.f32.mxu1 %v6323_v18  ;;  %5685 = vmatpush1.bf16.msra.mxu1 %v7119_v38 }
0x1bda   :  { %5687 = vmatprep.subr.bf16.mxu1 %v7121_v50 }
0x1bdd   :  { %5689 = vmatpush1.bf16.msra.mxu1 %v5688_v62 }
0x1bde   :  { %5691 = vmatprep.subr.bf16.mxu1 %v5690_v14 }
0x1be1   :  { %5693 = vmatpush1.bf16.msra.mxu1 %v5692_v58 }
0x1be2   :  { %5695 = vmatprep.subr.bf16.mxu1 %v5694_v27 }
0x1be5   :  { %5697 = vmatpush1.bf16.msra.mxu1 %v5696_v36 }
0x1be6   :  { %5699 = vmatprep.subr.bf16.mxu1 %v5698_v35 }
0x1be9   :  { %5701 = vmatpush1.bf16.msra.mxu1 %v5700_v25 }
0x1bea   :  { %5703 = vmatprep.subr.bf16.mxu1 %v5702_v46 }
0x1bed   :  { %5705 = vmatpush1.bf16.msra.mxu1 %v5704_v48 }
0x1bee   :  { %5707 = vmatprep.subr.bf16.mxu1 %v5706_v32 }
0x1bf1   :  { %5709 = vmatpush1.bf16.msra.mxu1 %v5708_v55 }
0x1bf2   :  { %5711 = vmatprep.subr.bf16.mxu1 %v5710_v52 }
0x1bf5   :  { %5713 = vmatpush1.bf16.msra.mxu1 %v5712_v41 }
0x1c9e   :  { %v4236_v59 = vpop.f32.mrb[46].mxu1 }
0x1c9f   :  { %v5469_v17 = vpop.f32.mrb[47].mxu1 }
0x1ca2   :  { %v4415_v4 = vpop.f32.mrb[48].mxu1 }
0x1ca3   :  { %v5680_v5 = vpack.c.bf16 %v4415_v4, %v4236_v59  ;;  %v5481_v60 = vpop.f32.mrb[49].mxu1 }
0x1ca6   :  { %v4593_v1 = vpop.f32.mrb[50].mxu1 }
0x1ca7   :  { %v5493_v10 = vpop.f32.mrb[51].mxu1 }
0x1cab   :  { %v4773_v11 = vpop.f32.mrb[52].mxu1 }
0x1cac   :  { %v5678_v42 = vpack.c.bf16 %v4773_v11, %v4593_v1  ;;  %v5505_v12 = vpop.f32.mrb[53].mxu1 }
0x1cae   :  { %5679 = vmatprep.subr.bf16.mxu0 %v5678_v42 }
0x1caf   :  { %5681 = vmatpush1.bf16.msra.mxu0 %v5680_v5 }
0x1cb0   :  { %5715 = vmatprep.subr.bf16.mxu0 %v7117_v19 }
0x1cb2   :  { %5190 = vmatmul.mubr.msk.f32.vlgmr.msra.gmra.mrb[42].mxu0 %vm640_vm10, %v4777_v3 }
0x1cb3   :  { %5717 = vmatpush1.bf16.msra.mxu0 %v7119_v38  ;;  %5057 = vmatprep.mubr.f32.mxu0 %v6323_v18  ;;  %v4780_v18 = vpop.permute.xlu0 %4779 }
0x1cb4   :  { %5719 = vmatprep.subr.bf16.mxu0 %v7121_v50 }
0x1cb7   :  { %5721 = vmatpush1.bf16.msra.mxu0 %v5688_v62 }
0x1cb8   :  { %5723 = vmatprep.subr.bf16.mxu0 %v5690_v14 }
0x1cbb   :  { %5725 = vmatpush1.bf16.msra.mxu0 %v5692_v58 }
0x1cbc   :  { %5727 = vmatprep.subr.bf16.mxu0 %v5694_v27 }
0x1cbf   :  { %5729 = vmatpush1.bf16.msra.mxu0 %v5696_v36 }
0x1cc0   :  { %5731 = vmatprep.subr.bf16.mxu0 %v5698_v35 }
0x1cc3   :  { %5733 = vmatpush1.bf16.msra.mxu0 %v5700_v25 }
0x1cc4   :  { %5735 = vmatprep.subr.bf16.mxu0 %v5702_v46 }
0x1cc7   :  { %5737 = vmatpush1.bf16.msra.mxu0 %v5704_v48 }
0x1cc8   :  { %5739 = vmatprep.subr.bf16.mxu0 %v5706_v32 }
0x1ccb   :  { %5741 = vmatpush1.bf16.msra.mxu0 %v5708_v55 }
0x1ccc   :  { %5743 = vmatprep.subr.bf16.mxu0 %v5710_v52 }
0x1ccf   :  { %5745 = vmatpush1.bf16.msra.mxu0 %v5712_v41 }
0x1d85   :  { %v4851_v20 = vpop.f32.mrb[42].mxu0 }
0x1d86   :  { %v4853_v21 = vpop.f32.mrb[43].mxu0  ;;  %v4852_v26 = vadd.f32 %v4851_v20, %v4780_v18 }
0x1d87   :  { %v4854_v22 = vadd.f32 %v4853_v21, %v4780_v18 }
0x1d88   :  { %4953 = vmatmul.mubr.f32.vlgmr.msra.gmra.mrb[54].mxu1 %v4852_v26 }
0x1d89   :  { %5058 = vmatmul.mubr.f32.vlgmr.msra.gmra.mrb[44].mxu0 %v4854_v22 }
0x1e5b   :  { %v4954_v0 = vpop.f32.mrb[54].mxu1 }
0x1e5c   :  { %4959 = vst [vmem:[#allocation11] sm:$0xff] %v4954_v0  ;;  %v5059_v23 = vpop.f32.mrb[44].mxu0  ;;  %v4956_v19 = vpop.f32.mrb[55].mxu1 }
0x1e5d   :  { %5064 = vst [vmem:[#allocation11 + $0x10] sm:$0xff] %v5059_v23  ;;  %4960 = vst [vmem:[#allocation11 + $0x8] sm:$0xff] %v4956_v19  ;;  %v5061_v7 = vpop.f32.mrb[45].mxu0 }
0x1e5e   :  { %5065 = vst [vmem:[#allocation11 + $0x18] sm:$0xff] %v5061_v7 }
0x1e5f   :  { %6290 = shalt.err (!%p6287_p2)
}
0x1e60   :  { %s6291_s19 = scalar_lea.hbm %s7148_s5, 512 }
0x1e61   :  { %p6292_p3 = scmp.ne.s32.totalorder %s7148_s5, %s6291_s19  ;;  %p6295_p4 = scmp.lt.u32.totalorder %s6291_s19, %s7148_s5 }
0x1e63   :  { %p6297_p5 = pnand %p6295_p4, %p6292_p3 }
0x1e65   :  { %6300 = shalt.err (!%p6297_p5)
}
0x1e66   :  { %5075 = dma.vmem_to_hbm [thread:$0]  %s5073_s0, 512, %s7148_s5, [#allocation4]  }
0x1e67   :  { %6307 = dma.done.wait [#allocation4], 512  }
0x1e68   :  { %6308 = vsyncadd [#allocation4], 4294966784 }
0x1e69   :  { %5079 = vsyncpa [#allocation3], 1 }
0x1e6a   :  { %5080 = vsyncpa [#allocation6], 1 }
0x1e6b   :  { %5081 = vsyncpa [#allocation9], 1 }
0x1e6c   :  { %5082 = vsyncpa [#allocation4], 1 }

</bundles_post_ra>
